<compile_context>
chip_gen: v6e
topology: v6e:2x2x1
jax: 0.10.0
libtpu: 0.0.40
codegen_flags: <defaults>
</compile_context>

<pallas_src>
import jax
import jax.numpy as jnp
import numpy as np
from jax.experimental import pallas as pl
from jax.experimental.pallas import tpu as pltpu

VMEM = pltpu.MemorySpace.VMEM
HIGHEST = jax.lax.Precision.HIGHEST
BN_EPS = 1e-5


def _dot(a, b):
    return jnp.dot(a, b, preferred_element_type=jnp.float32, precision=HIGHEST)


# ----------------------------------------------------------------------------- #
# Fused whole-network Pallas kernel
# ----------------------------------------------------------------------------- #
def _net_kernel(h0_ref, e0_ref, gsd_ref, gdt_ref, pool_ref,
                w_eh, b_eh, w_ee, b_ee,
                w_hcat, b_hcat, w_c, b_c,
                bnh_s, bnh_o, bne_s, bne_o,
                w0, b0, w1, b1, w2, b2,
                out_ref, scat_ref):
    D = w_eh.shape[1]          # hidden width (32)
    L = w_hcat.shape[0]        # number of GatedGCN layers (static)
    E = gdt_ref.shape[1]       # number of edges

    Gsd = gsd_ref[...]         # (2E, N) stacked one-hot: rows [0:E]=src gather, [E:2E]=dst gather
    GdT = gdt_ref[...]         # (N, E) pre-transposed dst matrix (scatter-add)

    # lane-dense 128-wide scatter operand; columns [2D:4D] stay zero for the whole kernel
    scat_ref[...] = jnp.zeros_like(scat_ref)

    # input embeddings (fused into the same kernel)
    h = _dot(h0_ref[...], w_eh[...]) + b_eh[...]          # (N, D)
    e = _dot(e0_ref[...], w_ee[...]) + b_ee[...]          # (E, D)

    # static unroll over the (small) layer count; h and e stay resident on-chip
    for l in range(L):
        # one 128-lane-dense projection: columns are [Dh | Bh | Ah | Eh]
        proj = _dot(h, w_hcat[l]) + b_hcat[l]             # (N, 4D)
        Ce = _dot(e, w_c[l]) + b_c[l]                     # (E, D)

        # fused src+dst gathers: ONE matmul on the full 128-lane proj (no masked sub-slice)
        gathered = _dot(Gsd, proj)                        # (2E, 4D)
        src_g = gathered[:E]                              # per-edge rows of proj at src nodes
        dst_g = gathered[E:]                              # per-edge rows of proj at dst nodes
        Dh_src = src_g[:, :D]
        Bh_src = src_g[:, D:2 * D]
        Eh_dst = dst_g[:, 3 * D:]

        e_new = Ce + Dh_src + Eh_dst
        sigma = jax.nn.sigmoid(e_new)

        # fused scatter-add: numerator and denominator via ONE lane-dense GdT matmul.
        # operand layout: [sigma*Bh_src | sigma | 0 | 0]  (zeros written once above)
        scat_ref[:, :D] = sigma * Bh_src
        scat_ref[:, D:2 * D] = sigma
        sc = _dot(GdT, scat_ref[...])                     # (N, 4D); cols [2D:4D] are zero
        h_new = proj[:, 2 * D:3 * D] + sc[:, :D] / (sc[:, D:2 * D] + 1e-6)

        # BatchNorm1d(eval) folded to scale/shift -> ReLU -> residual (dropout = identity)
        h = h + jnp.maximum(h_new * bnh_s[l] + bnh_o[l], 0.0)
        e = e + jnp.maximum(e_new * bne_s[l] + bne_o[l], 0.0)

    # mean-nodes readout + MLPReadout, fused into the same kernel
    hg = _dot(pool_ref[...], h)                            # (G, D)
    y = jnp.maximum(_dot(hg, w0[...]) + b0[...], 0.0)      # D -> D/2, relu
    y = jnp.maximum(_dot(y, w1[...]) + b1[...], 0.0)       # D/2 -> D/4, relu
    out_ref[...] = _dot(y, w2[...]) + b2[...]              # D/4 -> n_classes


def _fold_bn(q):
    scale = q['gamma'] * jax.lax.rsqrt(q['var'] + BN_EPS)
    shift = q['beta'] - q['mean'] * scale
    return scale, shift


@jax.jit
def gated_gcn_net_pallas(params, h, e, g_src, g_dst, g_dst_t, pool):
    layers = params['layers']
    hidden = params['emb_h']['w'].shape[1]
    E = e.shape[0]

    # host-side (trivial-size) weight fusion: [D | B | A | E] column order
    w_hcat = jnp.stack([jnp.concatenate(
        [lp['D']['w'], lp['B']['w'], lp['A']['w'], lp['E']['w']], axis=1) for lp in layers])
    b_hcat = jnp.stack([jnp.concatenate(
        [lp['D']['b'], lp['B']['b'], lp['A']['b'], lp['E']['b']], axis=1) for lp in layers])
    w_c = jnp.stack([lp['C']['w'] for lp in layers])
    b_c = jnp.stack([lp['C']['b'] for lp in layers])

    bnh = [_fold_bn(lp['bn_h']) for lp in layers]
    bne = [_fold_bn(lp['bn_e']) for lp in layers]
    bnh_s = jnp.stack([s for s, _ in bnh]); bnh_o = jnp.stack([o for _, o in bnh])
    bne_s = jnp.stack([s for s, _ in bne]); bne_o = jnp.stack([o for _, o in bne])

    # one stacked gather matrix (src rows then dst rows) replaces two separate one-hot matmuls
    g_gather = jnp.concatenate([g_src, g_dst], axis=0)     # (2E, N)

    mlp = params['mlp']
    n_classes = mlp[2]['w'].shape[1]
    G = pool.shape[0]

    args = (h, e, g_gather, g_dst_t, pool,
            params['emb_h']['w'], params['emb_h']['b'],
            params['emb_e']['w'], params['emb_e']['b'],
            w_hcat, b_hcat, w_c, b_c,
            bnh_s, bnh_o, bne_s, bne_o,
            mlp[0]['w'], mlp[0]['b'], mlp[1]['w'], mlp[1]['b'], mlp[2]['w'], mlp[2]['b'])

    return pl.pallas_call(
        _net_kernel,
        out_shape=jax.ShapeDtypeStruct((G, n_classes), jnp.float32),
        in_specs=[pl.BlockSpec(memory_space=VMEM)] * len(args),
        out_specs=pl.BlockSpec(memory_space=VMEM),
        scratch_shapes=[pltpu.VMEM((E, 4 * hidden), jnp.float32)],
        compiler_params=pltpu.CompilerParams(vmem_limit_bytes=32 * 1024 * 1024),
    )(*args)


# ----------------------------------------------------------------------------- #
# Pure-JAX reference (unfused, full BN math) for validation
# ----------------------------------------------------------------------------- #
def gated_gcn_net_ref(params, h, e, g_src, g_dst, pool):
    lin = lambda x, p: _dot(x, p['w']) + p['b']
    h = lin(h, params['emb_h'])
    e = lin(e, params['emb_e'])
    for p in params['layers']:
        Ah, Bh, Ce = lin(h, p['A']), lin(h, p['B']), lin(e, p['C'])
        Dh, Eh = lin(h, p['D']), lin(h, p['E'])
        e_new = Ce + _dot(g_src, Dh) + _dot(g_dst, Eh)
        sigma = jax.nn.sigmoid(e_new)
        h_new = Ah + _dot(g_dst.T, sigma * _dot(g_src, Bh)) / (_dot(g_dst.T, sigma) + 1e-6)
        bn = lambda x, q: (x - q['mean']) * jax.lax.rsqrt(q['var'] + BN_EPS) * q['gamma'] + q['beta']
        h = h + jnp.maximum(bn(h_new, p['bn_h']), 0.0)
        e = e + jnp.maximum(bn(e_new, p['bn_e']), 0.0)
    hg = _dot(pool, h)
    y = jnp.maximum(lin(hg, params['mlp'][0]), 0.0)
    y = jnp.maximum(lin(y, params['mlp'][1]), 0.0)
    return lin(y, params['mlp'][2])


# ----------------------------------------------------------------------------- #
# Deterministic parameter / graph construction
# ----------------------------------------------------------------------------- #
def init_linear(key, d_in, d_out):
    k1, k2 = jax.random.split(key)
    return {'w': (jax.random.normal(k1, (d_in, d_out), jnp.float32) / np.sqrt(d_in)),
            'b': jax.random.normal(k2, (1, d_out), jnp.float32) * 0.01}


def init_bn(key, d):
    k1, k2, k3, k4 = jax.random.split(key, 4)
    return {'gamma': 1.0 + 0.1 * jax.random.normal(k1, (1, d), jnp.float32),
            'beta': 0.1 * jax.random.normal(k2, (1, d), jnp.float32),
            'mean': 0.1 * jax.random.normal(k3, (1, d), jnp.float32),
            'var': 1.0 + 0.1 * jnp.abs(jax.random.normal(k4, (1, d), jnp.float32))}


def init_params(key, in_dim, edge_dim, hidden_dim, out_dim, n_classes, n_layers):
    # stacked/fused layer weights + residual require uniform layer width here
    assert hidden_dim == out_dim, "fused kernel assumes hidden_dim == out_dim (residual path)"
    keys = iter(jax.random.split(key, 64))
    params = {'emb_h': init_linear(next(keys), in_dim, hidden_dim),
              'emb_e': init_linear(next(keys), edge_dim, hidden_dim)}
    dims = [(hidden_dim, hidden_dim)] * (n_layers - 1) + [(hidden_dim, out_dim)]
    layers = []
    for d_in, d_out in dims:
        layers.append({
            'A': init_linear(next(keys), d_in, d_out),
            'B': init_linear(next(keys), d_in, d_out),
            'C': init_linear(next(keys), d_in, d_out),
            'D': init_linear(next(keys), d_in, d_out),
            'E': init_linear(next(keys), d_in, d_out),
            'bn_h': init_bn(next(keys), d_out),
            'bn_e': init_bn(next(keys), d_out),
        })
    params['layers'] = layers
    # MLPReadout: out_dim -> out_dim//2 -> out_dim//4 -> n_classes
    params['mlp'] = [init_linear(next(keys), out_dim, out_dim // 2),
                     init_linear(next(keys), out_dim // 2, out_dim // 4),
                     init_linear(next(keys), out_dim // 4, n_classes)]
    return params


def build_graph(num_graphs=4, nodes_per_graph=8):
    # N and E are multiples of 8 (sublane-aligned) so MXU rows are not mostly padding.
    src, dst, node_graph = [], [], []
    for g in range(num_graphs):
        off = g * nodes_per_graph
        node_graph += [g] * nodes_per_graph
        for i in range(nodes_per_graph):         # bidirectional ring per graph
            a, b = off + i, off + (i + 1) % nodes_per_graph
            src += [a, b]
            dst += [b, a]
    N = num_graphs * nodes_per_graph
    E = len(src)
    g_src = jnp.zeros((E, N), jnp.float32).at[jnp.arange(E), jnp.array(src)].set(1.0)
    g_dst = jnp.zeros((E, N), jnp.float32).at[jnp.arange(E), jnp.array(dst)].set(1.0)
    g_dst_t = jnp.asarray(g_dst.T)               # pre-transposed for the scatter-add matmul
    pool = jnp.zeros((num_graphs, N), jnp.float32)
    for g in range(num_graphs):
        idx = [i for i, gg in enumerate(node_graph) if gg == g]
        pool = pool.at[g, jnp.array(idx)].set(1.0 / len(idx))   # mean readout
    return g_src, g_dst, g_dst_t, pool, N, E


if __name__ == "__main__":
    # net_params: readout='mean', batch_norm=True, residual=True, dropout=0.0 (eval mode)
    in_dim, edge_dim = 6, 4
    hidden_dim, out_dim = 32, 32
    n_classes, n_layers = 3, 2          # L = 2 -> one hidden->hidden layer + one hidden->out layer

    key = jax.random.PRNGKey(0)
    k_params, k_h, k_e = jax.random.split(key, 3)

    g_src, g_dst, g_dst_t, pool, N, E = build_graph(num_graphs=4, nodes_per_graph=8)
    params = init_params(k_params, in_dim, edge_dim, hidden_dim, out_dim, n_classes, n_layers)

    h = jax.random.normal(k_h, (N, in_dim), jnp.float32)
    e = jax.random.normal(k_e, (E, edge_dim), jnp.float32)

    out = gated_gcn_net_pallas(params, h, e, g_src, g_dst, g_dst_t, pool)
    out = jax.block_until_ready(out)

    ref = gated_gcn_net_ref(params, h, e, g_src, g_dst, pool)
    np.testing.assert_allclose(np.asarray(out), np.asarray(ref), rtol=1e-4, atol=1e-4)

    print("KERNEL_OK")
</pallas_src>

<mosaic_0001>
module attributes {stable_mosaic.version = 11 : i64} {
  func.func @_net_kernel(%arg0: memref<32x6xf32, #tpu.memory_space<vmem>>, %arg1: memref<64x4xf32, #tpu.memory_space<vmem>>, %arg2: memref<128x32xf32, #tpu.memory_space<vmem>>, %arg3: memref<32x64xf32, #tpu.memory_space<vmem>>, %arg4: memref<4x32xf32, #tpu.memory_space<vmem>>, %arg5: memref<6x32xf32, #tpu.memory_space<vmem>>, %arg6: memref<1x32xf32, #tpu.memory_space<vmem>>, %arg7: memref<4x32xf32, #tpu.memory_space<vmem>>, %arg8: memref<1x32xf32, #tpu.memory_space<vmem>>, %arg9: memref<2x32x128xf32, #tpu.memory_space<vmem>>, %arg10: memref<2x1x128xf32, #tpu.memory_space<vmem>>, %arg11: memref<2x32x32xf32, #tpu.memory_space<vmem>>, %arg12: memref<2x1x32xf32, #tpu.memory_space<vmem>>, %arg13: memref<2x1x32xf32, #tpu.memory_space<vmem>>, %arg14: memref<2x1x32xf32, #tpu.memory_space<vmem>>, %arg15: memref<2x1x32xf32, #tpu.memory_space<vmem>>, %arg16: memref<2x1x32xf32, #tpu.memory_space<vmem>>, %arg17: memref<32x16xf32, #tpu.memory_space<vmem>>, %arg18: memref<1x16xf32, #tpu.memory_space<vmem>>, %arg19: memref<16x8xf32, #tpu.memory_space<vmem>>, %arg20: memref<1x8xf32, #tpu.memory_space<vmem>>, %arg21: memref<8x3xf32, #tpu.memory_space<vmem>>, %arg22: memref<1x3xf32, #tpu.memory_space<vmem>>, %arg23: memref<4x3xf32, #tpu.memory_space<vmem>>, %arg24: memref<64x128xf32, #tpu.memory_space<vmem>>) attributes {dimension_semantics = [], scalar_prefetch = 0 : i64, scratch_operands = 1 : i64, tpu.core_type = #tpu.core_type<tc>} {
    %c0 = arith.constant 0 : index
    %c0_0 = arith.constant 0 : index
    %0 = vector.load %arg2[%c0, %c0_0] : memref<128x32xf32, #tpu.memory_space<vmem>>, vector<128x32xf32>
    %c0_1 = arith.constant 0 : index
    %c0_2 = arith.constant 0 : index
    %1 = vector.load %arg3[%c0_1, %c0_2] : memref<32x64xf32, #tpu.memory_space<vmem>>, vector<32x64xf32>
    %cst = arith.constant 0.000000e+00 : f32
    %2 = vector.broadcast %cst : f32 to vector<64x128xf32>
    %c0_3 = arith.constant 0 : index
    %c0_4 = arith.constant 0 : index
    %3 = vector.load %arg24[%c0_3, %c0_4] : memref<64x128xf32, #tpu.memory_space<vmem>>, vector<64x128xf32>
    tpu.vector_store %arg24[%c0_3, %c0_4], %2 {strides = array<i32>} : memref<64x128xf32, #tpu.memory_space<vmem>>, vector<64x128xf32>,
    %c0_5 = arith.constant 0 : index
    %c0_6 = arith.constant 0 : index
    %4 = vector.load %arg0[%c0_5, %c0_6] : memref<32x6xf32, #tpu.memory_space<vmem>>, vector<32x6xf32>
    %c0_7 = arith.constant 0 : index
    %c0_8 = arith.constant 0 : index
    %5 = vector.load %arg5[%c0_7, %c0_8] : memref<6x32xf32, #tpu.memory_space<vmem>>, vector<6x32xf32>
    %cst_9 = arith.constant dense<0.000000e+00> : vector<32x32xf32>
    %6 = tpu.matmul %4, %5, %cst_9 {dimension_numbers = #tpu.dot_dimension_numbers<[1], [0], [0], [1], [0, 0, 1, 1], [], []>, precision = #tpu.contract_precision<fp32>} : vector<32x6xf32>, vector<6x32xf32>, vector<32x32xf32> -> vector<32x32xf32>
    %c0_10 = arith.constant 0 : index
    %c0_11 = arith.constant 0 : index
    %7 = vector.load %arg6[%c0_10, %c0_11] : memref<1x32xf32, #tpu.memory_space<vmem>>, vector<1x32xf32>
    %8 = vector.broadcast %7 : vector<1x32xf32> to vector<32x32xf32>
    %9 = arith.addf %6, %8 : vector<32x32xf32>
    %c0_12 = arith.constant 0 : index
    %c0_13 = arith.constant 0 : index
    %10 = vector.load %arg1[%c0_12, %c0_13] : memref<64x4xf32, #tpu.memory_space<vmem>>, vector<64x4xf32>
    %c0_14 = arith.constant 0 : index
    %c0_15 = arith.constant 0 : index
    %11 = vector.load %arg7[%c0_14, %c0_15] : memref<4x32xf32, #tpu.memory_space<vmem>>, vector<4x32xf32>
    %cst_16 = arith.constant dense<0.000000e+00> : vector<64x32xf32>
    %12 = tpu.matmul %10, %11, %cst_16 {dimension_numbers = #tpu.dot_dimension_numbers<[1], [0], [0], [1], [0, 0, 1, 1], [], []>, precision = #tpu.contract_precision<fp32>} : vector<64x4xf32>, vector<4x32xf32>, vector<64x32xf32> -> vector<64x32xf32>
    %c0_17 = arith.constant 0 : index
    %c0_18 = arith.constant 0 : index
    %13 = vector.load %arg8[%c0_17, %c0_18] : memref<1x32xf32, #tpu.memory_space<vmem>>, vector<1x32xf32>
    %14 = vector.broadcast %13 : vector<1x32xf32> to vector<64x32xf32>
    %15 = arith.addf %12, %14 : vector<64x32xf32>
    %c0_19 = arith.constant 0 : index
    %c0_20 = arith.constant 0 : index
    %c0_21 = arith.constant 0 : index
    %16 = vector.load %arg9[%c0_19, %c0_20, %c0_21] : memref<2x32x128xf32, #tpu.memory_space<vmem>>, vector<1x32x128xf32>
    %17 = vector.shape_cast %16 : vector<1x32x128xf32> to vector<32x128xf32>
    %cst_22 = arith.constant dense<0.000000e+00> : vector<32x128xf32>
    %18 = tpu.matmul %9, %17, %cst_22 {dimension_numbers = #tpu.dot_dimension_numbers<[1], [0], [0], [1], [0, 0, 1, 1], [], []>, precision = #tpu.contract_precision<fp32>} : vector<32x32xf32>, vector<32x128xf32>, vector<32x128xf32> -> vector<32x128xf32>
    %c0_23 = arith.constant 0 : index
    %c0_24 = arith.constant 0 : index
    %c0_25 = arith.constant 0 : index
    %19 = vector.load %arg10[%c0_23, %c0_24, %c0_25] : memref<2x1x128xf32, #tpu.memory_space<vmem>>, vector<1x1x128xf32>
    %20 = vector.shape_cast %19 : vector<1x1x128xf32> to vector<1x128xf32>
    %21 = vector.broadcast %20 : vector<1x128xf32> to vector<32x128xf32>
    %22 = arith.addf %18, %21 : vector<32x128xf32>
    %c0_26 = arith.constant 0 : index
    %c0_27 = arith.constant 0 : index
    %c0_28 = arith.constant 0 : index
    %23 = vector.load %arg11[%c0_26, %c0_27, %c0_28] : memref<2x32x32xf32, #tpu.memory_space<vmem>>, vector<1x32x32xf32>
    %24 = vector.shape_cast %23 : vector<1x32x32xf32> to vector<32x32xf32>
    %cst_29 = arith.constant dense<0.000000e+00> : vector<64x32xf32>
    %25 = tpu.matmul %15, %24, %cst_29 {dimension_numbers = #tpu.dot_dimension_numbers<[1], [0], [0], [1], [0, 0, 1, 1], [], []>, precision = #tpu.contract_precision<fp32>} : vector<64x32xf32>, vector<32x32xf32>, vector<64x32xf32> -> vector<64x32xf32>
    %c0_30 = arith.constant 0 : index
    %c0_31 = arith.constant 0 : index
    %c0_32 = arith.constant 0 : index
    %26 = vector.load %arg12[%c0_30, %c0_31, %c0_32] : memref<2x1x32xf32, #tpu.memory_space<vmem>>, vector<1x1x32xf32>
    %27 = vector.shape_cast %26 : vector<1x1x32xf32> to vector<1x32xf32>
    %28 = vector.broadcast %27 : vector<1x32xf32> to vector<64x32xf32>
    %29 = arith.addf %25, %28 : vector<64x32xf32>
    %cst_33 = arith.constant dense<0.000000e+00> : vector<128x128xf32>
    %30 = tpu.matmul %0, %22, %cst_33 {dimension_numbers = #tpu.dot_dimension_numbers<[1], [0], [0], [1], [0, 0, 1, 1], [], []>, precision = #tpu.contract_precision<fp32>} : vector<128x32xf32>, vector<32x128xf32>, vector<128x128xf32> -> vector<128x128xf32>
    %31 = vector.extract_strided_slice %30 {offsets = [0, 0], sizes = [64, 128], strides = [1, 1]} : vector<128x128xf32> to vector<64x128xf32>
    %32 = vector.extract_strided_slice %30 {offsets = [64, 0], sizes = [64, 128], strides = [1, 1]} : vector<128x128xf32> to vector<64x128xf32>
    %33 = vector.extract_strided_slice %31 {offsets = [0, 0], sizes = [64, 32], strides = [1, 1]} : vector<64x128xf32> to vector<64x32xf32>
    %34 = vector.extract_strided_slice %31 {offsets = [0, 32], sizes = [64, 32], strides = [1, 1]} : vector<64x128xf32> to vector<64x32xf32>
    %35 = vector.extract_strided_slice %32 {offsets = [0, 96], sizes = [64, 32], strides = [1, 1]} : vector<64x128xf32> to vector<64x32xf32>
    %36 = arith.addf %29, %33 : vector<64x32xf32>
    %37 = arith.addf %36, %35 : vector<64x32xf32>
    %38 = arith.negf %37 : vector<64x32xf32>
    %39 = math.exp %38 : vector<64x32xf32>
    %cst_34 = arith.constant 1.000000e+00 : f32
    %40 = vector.broadcast %cst_34 : f32 to vector<64x32xf32>
    %41 = arith.addf %40, %39 : vector<64x32xf32>
    %42 = arith.divf %40, %41 : vector<64x32xf32>
    %43 = arith.mulf %42, %34 : vector<64x32xf32>
    %c0_35 = arith.constant 0 : index
    %c0_36 = arith.constant 0 : index
    %44 = vector.load %arg24[%c0_35, %c0_36] : memref<64x128xf32, #tpu.memory_space<vmem>>, vector<64x32xf32>
    tpu.vector_store %arg24[%c0_35, %c0_36], %43 {strides = array<i32>} : memref<64x128xf32, #tpu.memory_space<vmem>>, vector<64x32xf32>,
    %c0_37 = arith.constant 0 : index
    %c32 = arith.constant 32 : index
    %45 = vector.load %arg24[%c0_37, %c32] : memref<64x128xf32, #tpu.memory_space<vmem>>, vector<64x32xf32>
    tpu.vector_store %arg24[%c0_37, %c32], %42 {strides = array<i32>} : memref<64x128xf32, #tpu.memory_space<vmem>>, vector<64x32xf32>,
    %c0_38 = arith.constant 0 : index
    %c0_39 = arith.constant 0 : index
    %46 = vector.load %arg24[%c0_38, %c0_39] : memref<64x128xf32, #tpu.memory_space<vmem>>, vector<64x128xf32>
    %cst_40 = arith.constant dense<0.000000e+00> : vector<32x128xf32>
    %47 = tpu.matmul %1, %46, %cst_40 {dimension_numbers = #tpu.dot_dimension_numbers<[1], [0], [0], [1], [0, 0, 1, 1], [], []>, precision = #tpu.contract_precision<fp32>} : vector<32x64xf32>, vector<64x128xf32>, vector<32x128xf32> -> vector<32x128xf32>
    %48 = vector.extract_strided_slice %22 {offsets = [0, 64], sizes = [32, 32], strides = [1, 1]} : vector<32x128xf32> to vector<32x32xf32>
    %49 = vector.extract_strided_slice %47 {offsets = [0, 0], sizes = [32, 32], strides = [1, 1]} : vector<32x128xf32> to vector<32x32xf32>
    %50 = vector.extract_strided_slice %47 {offsets = [0, 32], sizes = [32, 32], strides = [1, 1]} : vector<32x128xf32> to vector<32x32xf32>
    %cst_41 = arith.constant 9.99999997E-7 : f32
    %51 = vector.broadcast %cst_41 : f32 to vector<32x32xf32>
    %52 = arith.addf %50, %51 : vector<32x32xf32>
    %53 = arith.divf %49, %52 : vector<32x32xf32>
    %54 = arith.addf %48, %53 : vector<32x32xf32>
    %c0_42 = arith.constant 0 : index
    %c0_43 = arith.constant 0 : index
    %c0_44 = arith.constant 0 : index
    %55 = vector.load %arg13[%c0_42, %c0_43, %c0_44] : memref<2x1x32xf32, #tpu.memory_space<vmem>>, vector<1x1x32xf32>
    %56 = vector.shape_cast %55 : vector<1x1x32xf32> to vector<1x32xf32>
    %57 = vector.broadcast %56 : vector<1x32xf32> to vector<32x32xf32>
    %58 = arith.mulf %54, %57 : vector<32x32xf32>
    %c0_45 = arith.constant 0 : index
    %c0_46 = arith.constant 0 : index
    %c0_47 = arith.constant 0 : index
    %59 = vector.load %arg14[%c0_45, %c0_46, %c0_47] : memref<2x1x32xf32, #tpu.memory_space<vmem>>, vector<1x1x32xf32>
    %60 = vector.shape_cast %59 : vector<1x1x32xf32> to vector<1x32xf32>
    %61 = vector.broadcast %60 : vector<1x32xf32> to vector<32x32xf32>
    %62 = arith.addf %58, %61 : vector<32x32xf32>
    %cst_48 = arith.constant 0.000000e+00 : f32
    %63 = vector.broadcast %cst_48 : f32 to vector<32x32xf32>
    %64 = arith.maximumf %62, %63 : vector<32x32xf32>
    %65 = arith.addf %9, %64 : vector<32x32xf32>
    %c0_49 = arith.constant 0 : index
    %c0_50 = arith.constant 0 : index
    %c0_51 = arith.constant 0 : index
    %66 = vector.load %arg15[%c0_49, %c0_50, %c0_51] : memref<2x1x32xf32, #tpu.memory_space<vmem>>, vector<1x1x32xf32>
    %67 = vector.shape_cast %66 : vector<1x1x32xf32> to vector<1x32xf32>
    %68 = vector.broadcast %67 : vector<1x32xf32> to vector<64x32xf32>
    %69 = arith.mulf %37, %68 : vector<64x32xf32>
    %c0_52 = arith.constant 0 : index
    %c0_53 = arith.constant 0 : index
    %c0_54 = arith.constant 0 : index
    %70 = vector.load %arg16[%c0_52, %c0_53, %c0_54] : memref<2x1x32xf32, #tpu.memory_space<vmem>>, vector<1x1x32xf32>
    %71 = vector.shape_cast %70 : vector<1x1x32xf32> to vector<1x32xf32>
    %72 = vector.broadcast %71 : vector<1x32xf32> to vector<64x32xf32>
    %73 = arith.addf %69, %72 : vector<64x32xf32>
    %cst_55 = arith.constant 0.000000e+00 : f32
    %74 = vector.broadcast %cst_55 : f32 to vector<64x32xf32>
    %75 = arith.maximumf %73, %74 : vector<64x32xf32>
    %76 = arith.addf %15, %75 : vector<64x32xf32>
    %c1 = arith.constant 1 : index
    %c0_56 = arith.constant 0 : index
    %c0_57 = arith.constant 0 : index
    %77 = vector.load %arg9[%c1, %c0_56, %c0_57] : memref<2x32x128xf32, #tpu.memory_space<vmem>>, vector<1x32x128xf32>
    %78 = vector.shape_cast %77 : vector<1x32x128xf32> to vector<32x128xf32>
    %cst_58 = arith.constant dense<0.000000e+00> : vector<32x128xf32>
    %79 = tpu.matmul %65, %78, %cst_58 {dimension_numbers = #tpu.dot_dimension_numbers<[1], [0], [0], [1], [0, 0, 1, 1], [], []>, precision = #tpu.contract_precision<fp32>} : vector<32x32xf32>, vector<32x128xf32>, vector<32x128xf32> -> vector<32x128xf32>
    %c1_59 = arith.constant 1 : index
    %c0_60 = arith.constant 0 : index
    %c0_61 = arith.constant 0 : index
    %80 = vector.load %arg10[%c1_59, %c0_60, %c0_61] : memref<2x1x128xf32, #tpu.memory_space<vmem>>, vector<1x1x128xf32>
    %81 = vector.shape_cast %80 : vector<1x1x128xf32> to vector<1x128xf32>
    %82 = vector.broadcast %81 : vector<1x128xf32> to vector<32x128xf32>
    %83 = arith.addf %79, %82 : vector<32x128xf32>
    %c1_62 = arith.constant 1 : index
    %c0_63 = arith.constant 0 : index
    %c0_64 = arith.constant 0 : index
    %84 = vector.load %arg11[%c1_62, %c0_63, %c0_64] : memref<2x32x32xf32, #tpu.memory_space<vmem>>, vector<1x32x32xf32>
    %85 = vector.shape_cast %84 : vector<1x32x32xf32> to vector<32x32xf32>
    %cst_65 = arith.constant dense<0.000000e+00> : vector<64x32xf32>
    %86 = tpu.matmul %76, %85, %cst_65 {dimension_numbers = #tpu.dot_dimension_numbers<[1], [0], [0], [1], [0, 0, 1, 1], [], []>, precision = #tpu.contract_precision<fp32>} : vector<64x32xf32>, vector<32x32xf32>, vector<64x32xf32> -> vector<64x32xf32>
    %c1_66 = arith.constant 1 : index
    %c0_67 = arith.constant 0 : index
    %c0_68 = arith.constant 0 : index
    %87 = vector.load %arg12[%c1_66, %c0_67, %c0_68] : memref<2x1x32xf32, #tpu.memory_space<vmem>>, vector<1x1x32xf32>
    %88 = vector.shape_cast %87 : vector<1x1x32xf32> to vector<1x32xf32>
    %89 = vector.broadcast %88 : vector<1x32xf32> to vector<64x32xf32>
    %90 = arith.addf %86, %89 : vector<64x32xf32>
    %cst_69 = arith.constant dense<0.000000e+00> : vector<128x128xf32>
    %91 = tpu.matmul %0, %83, %cst_69 {dimension_numbers = #tpu.dot_dimension_numbers<[1], [0], [0], [1], [0, 0, 1, 1], [], []>, precision = #tpu.contract_precision<fp32>} : vector<128x32xf32>, vector<32x128xf32>, vector<128x128xf32> -> vector<128x128xf32>
    %92 = vector.extract_strided_slice %91 {offsets = [0, 0], sizes = [64, 128], strides = [1, 1]} : vector<128x128xf32> to vector<64x128xf32>
    %93 = vector.extract_strided_slice %91 {offsets = [64, 0], sizes = [64, 128], strides = [1, 1]} : vector<128x128xf32> to vector<64x128xf32>
    %94 = vector.extract_strided_slice %92 {offsets = [0, 0], sizes = [64, 32], strides = [1, 1]} : vector<64x128xf32> to vector<64x32xf32>
    %95 = vector.extract_strided_slice %92 {offsets = [0, 32], sizes = [64, 32], strides = [1, 1]} : vector<64x128xf32> to vector<64x32xf32>
    %96 = vector.extract_strided_slice %93 {offsets = [0, 96], sizes = [64, 32], strides = [1, 1]} : vector<64x128xf32> to vector<64x32xf32>
    %97 = arith.addf %90, %94 : vector<64x32xf32>
    %98 = arith.addf %97, %96 : vector<64x32xf32>
    %99 = arith.negf %98 : vector<64x32xf32>
    %100 = math.exp %99 : vector<64x32xf32>
    %cst_70 = arith.constant 1.000000e+00 : f32
    %101 = vector.broadcast %cst_70 : f32 to vector<64x32xf32>
    %102 = arith.addf %101, %100 : vector<64x32xf32>
    %103 = arith.divf %101, %102 : vector<64x32xf32>
    %104 = arith.mulf %103, %95 : vector<64x32xf32>
    %c0_71 = arith.constant 0 : index
    %c0_72 = arith.constant 0 : index
    %105 = vector.load %arg24[%c0_71, %c0_72] : memref<64x128xf32, #tpu.memory_space<vmem>>, vector<64x32xf32>
    tpu.vector_store %arg24[%c0_71, %c0_72], %104 {strides = array<i32>} : memref<64x128xf32, #tpu.memory_space<vmem>>, vector<64x32xf32>,
    %c0_73 = arith.constant 0 : index
    %c32_74 = arith.constant 32 : index
    %106 = vector.load %arg24[%c0_73, %c32_74] : memref<64x128xf32, #tpu.memory_space<vmem>>, vector<64x32xf32>
    tpu.vector_store %arg24[%c0_73, %c32_74], %103 {strides = array<i32>} : memref<64x128xf32, #tpu.memory_space<vmem>>, vector<64x32xf32>,
    %c0_75 = arith.constant 0 : index
    %c0_76 = arith.constant 0 : index
    %107 = vector.load %arg24[%c0_75, %c0_76] : memref<64x128xf32, #tpu.memory_space<vmem>>, vector<64x128xf32>
    %cst_77 = arith.constant dense<0.000000e+00> : vector<32x128xf32>
    %108 = tpu.matmul %1, %107, %cst_77 {dimension_numbers = #tpu.dot_dimension_numbers<[1], [0], [0], [1], [0, 0, 1, 1], [], []>, precision = #tpu.contract_precision<fp32>} : vector<32x64xf32>, vector<64x128xf32>, vector<32x128xf32> -> vector<32x128xf32>
    %109 = vector.extract_strided_slice %83 {offsets = [0, 64], sizes = [32, 32], strides = [1, 1]} : vector<32x128xf32> to vector<32x32xf32>
    %110 = vector.extract_strided_slice %108 {offsets = [0, 0], sizes = [32, 32], strides = [1, 1]} : vector<32x128xf32> to vector<32x32xf32>
    %111 = vector.extract_strided_slice %108 {offsets = [0, 32], sizes = [32, 32], strides = [1, 1]} : vector<32x128xf32> to vector<32x32xf32>
    %cst_78 = arith.constant 9.99999997E-7 : f32
    %112 = vector.broadcast %cst_78 : f32 to vector<32x32xf32>
    %113 = arith.addf %111, %112 : vector<32x32xf32>
    %114 = arith.divf %110, %113 : vector<32x32xf32>
    %115 = arith.addf %109, %114 : vector<32x32xf32>
    %c1_79 = arith.constant 1 : index
    %c0_80 = arith.constant 0 : index
    %c0_81 = arith.constant 0 : index
    %116 = vector.load %arg13[%c1_79, %c0_80, %c0_81] : memref<2x1x32xf32, #tpu.memory_space<vmem>>, vector<1x1x32xf32>
    %117 = vector.shape_cast %116 : vector<1x1x32xf32> to vector<1x32xf32>
    %118 = vector.broadcast %117 : vector<1x32xf32> to vector<32x32xf32>
    %119 = arith.mulf %115, %118 : vector<32x32xf32>
    %c1_82 = arith.constant 1 : index
    %c0_83 = arith.constant 0 : index
    %c0_84 = arith.constant 0 : index
    %120 = vector.load %arg14[%c1_82, %c0_83, %c0_84] : memref<2x1x32xf32, #tpu.memory_space<vmem>>, vector<1x1x32xf32>
    %121 = vector.shape_cast %120 : vector<1x1x32xf32> to vector<1x32xf32>
    %122 = vector.broadcast %121 : vector<1x32xf32> to vector<32x32xf32>
    %123 = arith.addf %119, %122 : vector<32x32xf32>
    %cst_85 = arith.constant 0.000000e+00 : f32
    %124 = vector.broadcast %cst_85 : f32 to vector<32x32xf32>
    %125 = arith.maximumf %123, %124 : vector<32x32xf32>
    %126 = arith.addf %65, %125 : vector<32x32xf32>
    %c0_86 = arith.constant 0 : index
    %c0_87 = arith.constant 0 : index
    %127 = vector.load %arg4[%c0_86, %c0_87] : memref<4x32xf32, #tpu.memory_space<vmem>>, vector<4x32xf32>
    %cst_88 = arith.constant dense<0.000000e+00> : vector<4x32xf32>
    %128 = tpu.matmul %127, %126, %cst_88 {dimension_numbers = #tpu.dot_dimension_numbers<[1], [0], [0], [1], [0, 0, 1, 1], [], []>, precision = #tpu.contract_precision<fp32>} : vector<4x32xf32>, vector<32x32xf32>, vector<4x32xf32> -> vector<4x32xf32>
    %c0_89 = arith.constant 0 : index
    %c0_90 = arith.constant 0 : index
    %129 = vector.load %arg17[%c0_89, %c0_90] : memref<32x16xf32, #tpu.memory_space<vmem>>, vector<32x16xf32>
    %cst_91 = arith.constant dense<0.000000e+00> : vector<4x16xf32>
    %130 = tpu.matmul %128, %129, %cst_91 {dimension_numbers = #tpu.dot_dimension_numbers<[1], [0], [0], [1], [0, 0, 1, 1], [], []>, precision = #tpu.contract_precision<fp32>} : vector<4x32xf32>, vector<32x16xf32>, vector<4x16xf32> -> vector<4x16xf32>
    %c0_92 = arith.constant 0 : index
    %c0_93 = arith.constant 0 : index
    %131 = vector.load %arg18[%c0_92, %c0_93] : memref<1x16xf32, #tpu.memory_space<vmem>>, vector<1x16xf32>
    %132 = vector.broadcast %131 : vector<1x16xf32> to vector<4x16xf32>
    %133 = arith.addf %130, %132 : vector<4x16xf32>
    %cst_94 = arith.constant 0.000000e+00 : f32
    %134 = vector.broadcast %cst_94 : f32 to vector<4x16xf32>
    %135 = arith.maximumf %133, %134 : vector<4x16xf32>
    %c0_95 = arith.constant 0 : index
    %c0_96 = arith.constant 0 : index
    %136 = vector.load %arg19[%c0_95, %c0_96] : memref<16x8xf32, #tpu.memory_space<vmem>>, vector<16x8xf32>
    %cst_97 = arith.constant dense<0.000000e+00> : vector<4x8xf32>
    %137 = tpu.matmul %135, %136, %cst_97 {dimension_numbers = #tpu.dot_dimension_numbers<[1], [0], [0], [1], [0, 0, 1, 1], [], []>, precision = #tpu.contract_precision<fp32>} : vector<4x16xf32>, vector<16x8xf32>, vector<4x8xf32> -> vector<4x8xf32>
    %c0_98 = arith.constant 0 : index
    %c0_99 = arith.constant 0 : index
    %138 = vector.load %arg20[%c0_98, %c0_99] : memref<1x8xf32, #tpu.memory_space<vmem>>, vector<1x8xf32>
    %139 = vector.broadcast %138 : vector<1x8xf32> to vector<4x8xf32>
    %140 = arith.addf %137, %139 : vector<4x8xf32>
    %cst_100 = arith.constant 0.000000e+00 : f32
    %141 = vector.broadcast %cst_100 : f32 to vector<4x8xf32>
    %142 = arith.maximumf %140, %141 : vector<4x8xf32>
    %c0_101 = arith.constant 0 : index
    %c0_102 = arith.constant 0 : index
    %143 = vector.load %arg21[%c0_101, %c0_102] : memref<8x3xf32, #tpu.memory_space<vmem>>, vector<8x3xf32>
    %cst_103 = arith.constant dense<0.000000e+00> : vector<4x3xf32>
    %144 = tpu.matmul %142, %143, %cst_103 {dimension_numbers = #tpu.dot_dimension_numbers<[1], [0], [0], [1], [0, 0, 1, 1], [], []>, precision = #tpu.contract_precision<fp32>} : vector<4x8xf32>, vector<8x3xf32>, vector<4x3xf32> -> vector<4x3xf32>
    %c0_104 = arith.constant 0 : index
    %c0_105 = arith.constant 0 : index
    %145 = vector.load %arg22[%c0_104, %c0_105] : memref<1x3xf32, #tpu.memory_space<vmem>>, vector<1x3xf32>
    %146 = vector.broadcast %145 : vector<1x3xf32> to vector<4x3xf32>
    %147 = arith.addf %144, %146 : vector<4x3xf32>
    %c0_106 = arith.constant 0 : index
    %c0_107 = arith.constant 0 : index
    %148 = vector.load %arg23[%c0_106, %c0_107] : memref<4x3xf32, #tpu.memory_space<vmem>>, vector<4x3xf32>
    tpu.vector_store %arg23[%c0_106, %c0_107], %147 {strides = array<i32>} : memref<4x3xf32, #tpu.memory_space<vmem>>, vector<4x3xf32>,
    return
  }
}

</mosaic_0001>

<bundles_post_ra>
// kernel: gated_gcn_net_pallas.1
= control target key start
LH: loop header
LB: loop body
LE: loop exit
PB: predicated region body
PF: predicated region fallthrough
CT: control target
= control target key end

     0   :  { %s16049_s0 = inlined_call_operand.vmem [shape: f32[32,6], index: 0, kind: input, shape index: {}]   ;;  %s16050_s1 = inlined_call_operand.vmem [shape: f32[64,4], index: 1, kind: input, shape index: {}]   ;;  %s16051_s2 = inlined_call_operand.vmem [shape: f32[128,32], index: 2, kind: input, shape index: {}]   ;;  %s16052_s3 = inlined_call_operand.vmem [shape: f32[32,64], index: 3, kind: input, shape index: {}]   ;;  %s16053_s4 = inlined_call_operand.vmem [shape: f32[4,32], index: 4, kind: input, shape index: {}]   ;;  %s16054_s5 = inlined_call_operand.vmem [shape: f32[6,32], index: 5, kind: input, shape index: {}]   ;;  %s16055_s6 = inlined_call_operand.vmem [shape: f32[1,32], index: 6, kind: input, shape index: {}]   ;;  %s16056_s7 = inlined_call_operand.vmem [shape: f32[4,32], index: 7, kind: input, shape index: {}]   ;;  %s16057_s8 = inlined_call_operand.vmem [shape: f32[1,32], index: 8, kind: input, shape index: {}]   ;;  %s16058_s9 = inlined_call_operand.vmem [shape: f32[2,32,128], index: 9, kind: input, shape index: {}]   ;;  %s16059_s10 = inlined_call_operand.vmem [shape: f32[2,1,128], index: 10, kind: input, shape index: {}]   ;;  %s16060_s11 = inlined_call_operand.vmem [shape: f32[2,32,32], index: 11, kind: input, shape index: {}]   ;;  %s16061_s12 = inlined_call_operand.vmem [shape: f32[2,1,32], index: 12, kind: input, shape index: {}]   ;;  %s16062_s13 = inlined_call_operand.vmem [shape: f32[2,1,32], index: 13, kind: input, shape index: {}]   ;;  %s16063_s14 = inlined_call_operand.vmem [shape: f32[2,1,32], index: 14, kind: input, shape index: {}]   ;;  %s16064_s15 = inlined_call_operand.vmem [shape: f32[2,1,32], index: 15, kind: input, shape index: {}]   ;;  %s16065_s16 = inlined_call_operand.vmem [shape: f32[2,1,32], index: 16, kind: input, shape index: {}]   ;;  %s16066_s17 = inlined_call_operand.vmem [shape: f32[32,16], index: 17, kind: input, shape index: {}]   ;;  %s16067_s18 = inlined_call_operand.vmem [shape: f32[1,16], index: 18, kind: input, shape index: {}]   ;;  %s16068_s19 = inlined_call_operand.vmem [shape: f32[16,8], index: 19, kind: input, shape index: {}]   ;;  %s16069_s20 = inlined_call_operand.vmem [shape: f32[1,8], index: 20, kind: input, shape index: {}]   ;;  %s16070_s21 = inlined_call_operand.vmem [shape: f32[8,3], index: 21, kind: input, shape index: {}]   ;;  %s16071_s22 = inlined_call_operand.vmem [shape: f32[1,3], index: 22, kind: input, shape index: {}]   ;;  %s16072_s23 = inlined_call_operand.hbm [shape: f32[4,3], index: 23, kind: output, shape index: {}]  }
   0x1   :  { %16217 = sst [smem:[#allocation130_spill]] %s16049_s0 }
   0x2   :  { %16218 = sst [smem:[#allocation131_spill]] %s16050_s1 }
   0x3   :  { %16219 = sst [smem:[#allocation132_spill]] %s16051_s2 }
   0x4   :  { %16220 = sst [smem:[#allocation133_spill]] %s16052_s3 }
   0x5   :  { %16221 = sst [smem:[#allocation134_spill]] %s16053_s4 }
   0x6   :  { %16222 = sst [smem:[#allocation135_spill]] %s16054_s5 }
   0x7   :  { %16223 = sst [smem:[#allocation136_spill]] %s16055_s6 }
   0x8   :  { %16224 = sst [smem:[#allocation137_spill]] %s16056_s7 }
   0x9   :  { %s16225_s24 = sld [smem:[#allocation135_spill]]  ;;  %vm128_vm0 = vcmask 1045504   ;;  %vm115_vm1 = vcmask 48128   ;;  %vm748_vm2 = vcmask 1043456   ;;  %vm723_vm3 = vcmask 31744  }
   0xa   :  { %s16226_s1 = sld [smem:[#allocation130_spill]] }
   0xb   :  { %s16227_s0 = sld [smem:[#allocation137_spill]] }
   0xf   :  { %v107_v0 = vld [vmem:[%s16225_s24] sm:$0x3f]  ;;  %s16228_s24 = sld [smem:[#allocation131_spill]] }
  0x10   :  { %v103_v1 = vld [vmem:[%s16226_s1] sm:$0xff]  ;;  %v104_v2 = vld [vmem:[%s16226_s1 + $0x8] sm:$0xff]  ;;  %v130_v3 = vsel %vm128_vm0, %v107_v0, 0  ;;  %v105_v6 = vld [vmem:[%s16226_s1 + $0x10] sm:$0xff] }
  0x11   :  { %v117_v4 = vsel %vm115_vm1, %v103_v1, 0  ;;  %v120_v5 = vsel %vm115_vm1, %v104_v2, 0  ;;  %v106_v7 = vld [vmem:[%s16226_s1 + $0x18] sm:$0xff]  ;;  %v13120_v8 = vand.u32 4294901760, %v130_v3  ;;  %v123_v11 = vsel %vm115_vm1, %v105_v6, 0 }
  0x12   :  { %v13122_v9 = vand.u32 4294901760, %v117_v4  ;;  %v13124_v10 = vand.u32 4294901760, %v120_v5  ;;  %v715_v12 = vld [vmem:[%s16227_s0] sm:$0xf]  ;;  %v13129_v13 = vand.u32 4294901760, %v123_v11  ;;  %v126_v14 = vsel %vm115_vm1, %v106_v7, 0 }
  0x13   :  { %v750_v15 = vsel %vm748_vm2, %v715_v12, 0  ;;  %11479 = vmatprep.subr.mxu0 %v13120_v8  ;;  %v270_v17 = vsub.f32 %v130_v3, %v13120_v8  ;;  %v13138_v19 = vand.u32 4294901760, %v126_v14 }
  0x14   :  { %v199_v16 = vsub.f32 %v117_v4, %v13122_v9  ;;  %v13135_v18 = vsub.f32 %v120_v5, %v13124_v10  ;;  %11489 = vmatprep.mubr.f32.mxu1 %v13122_v9  ;;  %11480 = vmatpush3.msra.mxu0 %v13120_v8  ;;  %v13142_v20 = vsub.f32 %v123_v11, %v13129_v13  ;;  %v13144_v21 = vand.u32 4294901760, %v750_v15 }
  0x15   :  { %v271_v23 = vand.u32 4294901760, %v270_v17  ;;  %v13148_v25 = vsub.f32 %v126_v14, %v13138_v19  ;;  %11495 = vmatprep.subr.mxu0 %v270_v17  ;;  %v707_v26 = vld [vmem:[%s16228_s24] sm:$0xff] }
  0x16   :  { %v200_v22 = vand.u32 4294901760, %v199_v16  ;;  %v210_v24 = vand.u32 4294901760, %v13135_v18 }
  0x17   :  { %28 = vsyncpa [#allocation4], 0  ;;  %v220_v27 = vand.u32 4294901760, %v13142_v20  ;;  %v272_v29 = vsub.f32 %v270_v17, %v271_v23  ;;  %v230_v31 = vand.u32 4294901760, %v13148_v25  ;;  %v725_v33 = vsel %vm723_vm3, %v707_v26, 0  ;;  %v708_v40 = vld [vmem:[%s16228_s24 + $0x8] sm:$0xff] }
  0x18   :  { %v201_v28 = vsub.f32 %v199_v16, %v200_v22  ;;  %v211_v30 = vsub.f32 %v13135_v18, %v210_v24  ;;  %v13159_v34 = vsub.f32 %v750_v15, %v13144_v21  ;;  %v709_v41 = vld [vmem:[%s16228_s24 + $0x10] sm:$0xff]  ;;  %v13170_v43 = vand.u32 4294901760, %v725_v33  ;;  %v710_v47 = vld [vmem:[%s16228_s24 + $0x18] sm:$0xff]  ;;  %v711_v48 = vld [vmem:[%s16228_s24 + $0x20] sm:$0xff]  ;;  %s16229_s29 = sld [smem:[#allocation136_spill]]  ;;  %s12980_s0 = smov 96  }
  0x19   :  { %v221_v32 = vsub.f32 %v13142_v20, %v220_v27  ;;  %v273_v36 = vand.u32 4294901760, %v272_v29  ;;  %v231_v38 = vsub.f32 %v13148_v25, %v230_v31  ;;  %v728_v45 = vsel %vm723_vm3, %v708_v40, 0  ;;  %v712_v55 = vld [vmem:[%s16228_s24 + $0x28] sm:$0xff]  ;;  %v713_v56 = vld [vmem:[%s16228_s24 + $0x30] sm:$0xff]  ;;  %v714_v1 = vld [vmem:[%s16228_s24 + $0x38] sm:$0xff]  ;;  %s16242_s27 = sld [smem:[#allocation132_spill]] }
  0x1a   :  { %v202_v35 = vand.u32 4294901760, %v201_v28  ;;  %v212_v37 = vand.u32 4294901760, %v211_v30  ;;  %v13173_v44 = vand.u32 4294901760, %v13159_v34  ;;  %v731_v46 = vsel %vm723_vm3, %v709_v41, 0  ;;  %s16410_s24 = sld [smem:[#allocation133_spill]]  ;;  %s12982_s28 = smov 64  }
  0x1b   :  { %v222_v39 = vand.u32 4294901760, %v221_v32  ;;  %11487 = vmatprep.subr.mxu1 %v273_v36  ;;  %v232_v42 = vand.u32 4294901760, %v231_v38  ;;  %v13188_v49 = vsub.f32 %v725_v33, %v13170_v43  ;;  %v13190_v50 = vand.u32 4294901760, %v728_v45 }
  0x1c   :  { %11481 = vmatprep.mubr.f32.mxu0 %v202_v35  ;;  %11488 = vmatpush3.msra.mxu1 %v273_v36  ;;  %v932_v51 = vsub.f32 %v13159_v34, %v13173_v44  ;;  %v13195_v52 = vand.u32 4294901760, %v731_v46  ;;  %v734_v53 = vsel %vm723_vm3, %v710_v47, 0  ;;  %v737_v54 = vsel %vm723_vm3, %v711_v48, 0  ;;  %v1501_v36 = vld [vmem:[%s16058_s9 + $0x10] sm:$0xff] }
  0x1d   :  { %11482 = vmatmul.mubr.f32.vlgmr.msra.gmra.mxu0 %v212_v37  ;;  %11490 = vmatmul.mubr.f32.vlgmr.msra.gmra.mxu1 %v13124_v10  ;;  %v820_v57 = vand.u32 4294901760, %v13188_v49  ;;  %v13209_v58 = vsub.f32 %v728_v45, %v13190_v50  ;;  %v13211_v60 = vand.u32 4294901760, %v734_v53  ;;  %v13217_v62 = vand.u32 4294901760, %v737_v54 }
  0x1e   :  { %11484 = vmatprep.mubr.f32.mxu0 %v222_v39  ;;  %11492 = vmatprep.mubr.f32.mxu1 %v13129_v13  ;;  %v933_v59 = vand.u32 4294901760, %v932_v51  ;;  %v13215_v61 = vsub.f32 %v731_v46, %v13195_v52  ;;  %v740_v63 = vsel %vm723_vm3, %v712_v55, 0  ;;  %v743_v0 = vsel %vm723_vm3, %v713_v56, 0  ;;  %v1500_v39 = vld [vmem:[%s16058_s9 + $0x8] sm:$0xff] }
  0x1f   :  { %11496 = vmatpush3.msra.mxu0 %v270_v17  ;;  %11503 = vmatprep.subr.mxu1 %v13120_v8  ;;  %v821_v2 = vsub.f32 %v13188_v49, %v820_v57  ;;  %v830_v3 = vand.u32 4294901760, %v13209_v58  ;;  %v13232_v4 = vsub.f32 %v734_v53, %v13211_v60  ;;  %v13234_v5 = vand.u32 4294901760, %v740_v63 }
  0x20   :  { %11511 = vmatprep.subr.mxu0 %v271_v23  ;;  %11504 = vmatpush3.msra.mxu1 %v13120_v8  ;;  %v840_v6 = vand.u32 4294901760, %v13215_v61  ;;  %v13241_v7 = vsub.f32 %v737_v54, %v13217_v62  ;;  %v746_v11 = vsel %vm723_vm3, %v714_v1, 0  ;;  %v13328_v38 = vand.u32 4294901760, %v1501_v36 }
  0x21   :  { %11485 = vmatmul.mubr.f32.gmra.mxu0 %v232_v42  ;;  %11493 = vmatmul.mubr.f32.gmra.mxu1 %v13138_v19  ;;  %v831_v12 = vsub.f32 %v13209_v58, %v830_v3  ;;  %v850_v14 = vand.u32 4294901760, %v13232_v4  ;;  %v13253_v15 = vsub.f32 %v740_v63, %v13234_v5  ;;  %v822_v17 = vand.u32 4294901760, %v821_v2 }
  0x22   :  { %11497 = vmatprep.mubr.f32.mxu0 %v199_v16  ;;  %11505 = vmatprep.mubr.f32.mxu1 %v200_v22  ;;  %v13255_v16 = vand.u32 4294901760, %v746_v11  ;;  %v13339_v41 = vsub.f32 %v1501_v36, %v13328_v38  ;;  %v13341_v42 = vand.u32 4294901760, %v1500_v39  ;;  %vm1510_vm4 = vcmask 261120  }
  0x23   :  { %11519 = vmatprep.subr.mxu1 %v13120_v8  ;;  %v851_v22 = vsub.f32 %v13232_v4, %v850_v14  ;;  %vm4329_vm5 = vcmask 523264   ;;  %vm4312_vm6 = vcmask 523520   ;;  %vm12983_vm7 = vmmov 0  }
  0x24   :  { %v13351_v45 = vand.u32 4294901760, %v13339_v41  ;;  %v13354_v46 = vsub.f32 %v1500_v39, %v13341_v42  ;;  %vm9700_vm8 = vcmask 130048   ;;  %vm10172_vm9 = vcmask 64512  }
  0x25   :  { %11498 = vmatmul.mubr.f32.vlgmr.msra.gmra.mxu0 %v13135_v18  ;;  %11506 = vmatmul.mubr.f32.vlgmr.msra.gmra.mxu1 %v210_v24  ;;  %v860_v18 = vand.u32 4294901760, %v13241_v7  ;;  %v889_v24 = vsub.f32 %v746_v11, %v13255_v16  ;;  %vm10622_vm10 = vcmask 19456  }
  0x26   :  { %11500 = vmatprep.mubr.f32.mxu0 %v13142_v20  ;;  %11508 = vmatprep.mubr.f32.mxu1 %v220_v27  ;;  %v852_v27 = vand.u32 4294901760, %v851_v22 }
  0x27   :  { %11512 = vmatpush3.msra.mxu0 %v271_v23  ;;  %11520 = vmatpush3.msra.mxu1 %v13120_v8  ;;  %v13243_v8 = vand.u32 4294901760, %v743_v0  ;;  %v870_v23 = vand.u32 4294901760, %v13253_v15  ;;  %v890_v29 = vand.u32 4294901760, %v889_v24 }
  0x28   :  { %11527 = vmatprep.subr.mxu0 %v13144_v21  ;;  %11541 = vmatprep.subr.mxu1 %v933_v59 }
  0x29   :  { %11501 = vmatmul.mubr.f32.gmra.mxu0 %v13148_v25  ;;  %11509 = vmatmul.mubr.f32.gmra.mxu1 %v230_v31  ;;  %v879_v20 = vsub.f32 %v743_v0, %v13243_v8  ;;  %v861_v25 = vsub.f32 %v13241_v7, %v860_v18  ;;  %v871_v28 = vsub.f32 %v13253_v15, %v870_v23 }
  0x2a   :  { %11513 = vmatprep.mubr.f32.mxu0 %v13122_v9  ;;  %11521 = vmatprep.mubr.f32.mxu1 %v13122_v9  ;;  %v841_v9 = vsub.f32 %v13215_v61, %v840_v6  ;;  %v891_v32 = vsub.f32 %v889_v24, %v890_v29 }
  0x2b   :  { %v880_v26 = vand.u32 4294901760, %v879_v20  ;;  %v862_v30 = vand.u32 4294901760, %v861_v25 }
  0x2c   :  { %v892_v35 = vand.u32 4294901760, %v891_v32 }
  0x2d   :  { %11514 = vmatmul.mubr.f32.vlgmr.msra.gmra.mxu0 %v13124_v10  ;;  %11522 = vmatmul.mubr.f32.vlgmr.msra.gmra.mxu1 %v13124_v10  ;;  %v832_v10 = vand.u32 4294901760, %v831_v12  ;;  %v881_v31 = vsub.f32 %v879_v20, %v880_v26 }
  0x2e   :  { %11516 = vmatprep.mubr.f32.mxu0 %v13129_v13  ;;  %11524 = vmatprep.mubr.f32.mxu1 %v13129_v13  ;;  %v842_v13 = vand.u32 4294901760, %v841_v9 }
  0x2f   :  { %11528 = vmatpush3.msra.mxu0 %v13144_v21  ;;  %11542 = vmatpush3.msra.mxu1 %v933_v59  ;;  %v882_v33 = vand.u32 4294901760, %v881_v31 }
  0x30   :  { %11555 = vmatprep.subr.mxu0 %v13159_v34  ;;  %11569 = vmatprep.subr.mxu1 %v13144_v21 }
  0x31   :  { %11517 = vmatmul.mubr.f32.gmra.mxu0 %v13138_v19  ;;  %11525 = vmatmul.mubr.f32.gmra.mxu1 %v13138_v19  ;;  %v872_v19 = vand.u32 4294901760, %v871_v28 }
  0x32   :  { %11529 = vmatprep.mubr.f32.mxu0 %v822_v17  ;;  %11543 = vmatprep.mubr.f32.mxu1 %v13170_v43 }
  0x35   :  { %11530 = vmatmul.mubr.f32.vlgmr.msra.gmra.mxu0 %v832_v10  ;;  %11544 = vmatmul.mubr.f32.vlgmr.msra.gmra.mxu1 %v13190_v50 }
  0x36   :  { %11532 = vmatprep.mubr.f32.mxu0 %v842_v13  ;;  %11546 = vmatprep.mubr.f32.mxu1 %v13195_v52 }
  0x37   :  { %11556 = vmatpush3.msra.mxu0 %v13159_v34  ;;  %11570 = vmatpush3.msra.mxu1 %v13144_v21 }
  0x38   :  { %11583 = vmatprep.subr.mxu0 %v13173_v44  ;;  %11597 = vmatprep.subr.mxu1 %v13144_v21 }
  0x39   :  { %11533 = vmatmul.mubr.f32.gmra.mxu0 %v852_v27  ;;  %11547 = vmatmul.mubr.f32.gmra.mxu1 %v13211_v60 }
  0x3a   :  { %11535 = vmatprep.mubr.f32.mxu0 %v862_v30  ;;  %11549 = vmatprep.mubr.f32.mxu1 %v13217_v62 }
  0x3d   :  { %11536 = vmatmul.mubr.f32.gmra.mxu0 %v872_v19  ;;  %11550 = vmatmul.mubr.f32.gmra.mxu1 %v13234_v5 }
  0x3e   :  { %11538 = vmatprep.mubr.f32.mxu0 %v882_v33  ;;  %11552 = vmatprep.mubr.f32.mxu1 %v13243_v8 }
  0x41   :  { %11539 = vmatmul.mubr.f32.gmra.mxu0 %v892_v35  ;;  %11553 = vmatmul.mubr.f32.gmra.mxu1 %v13255_v16 }
  0x42   :  { %11557 = vmatprep.mubr.f32.mxu0 %v13188_v49  ;;  %11571 = vmatprep.mubr.f32.mxu1 %v820_v57  ;;  %v1667_v49 = vsub.f32 %v13339_v41, %v13351_v45 }
  0x45   :  { %11558 = vmatmul.mubr.f32.vlgmr.msra.gmra.mxu0 %v13209_v58  ;;  %11572 = vmatmul.mubr.f32.vlgmr.msra.gmra.mxu1 %v830_v3 }
  0x46   :  { %11560 = vmatprep.mubr.f32.mxu0 %v13215_v61  ;;  %11574 = vmatprep.mubr.f32.mxu1 %v840_v6 }
  0x47   :  { %11584 = vmatpush3.msra.mxu0 %v13173_v44  ;;  %11598 = vmatpush3.msra.mxu1 %v13144_v21  ;;  %v1502_v21 = vld [vmem:[%s16058_s9 + $0x18] sm:$0xff] }
  0x48   :  { %v13320_v34 = vand.u32 4294901760, %v1502_v21 }
  0x49   :  { %11561 = vmatmul.mubr.f32.gmra.mxu0 %v13232_v4  ;;  %11575 = vmatmul.mubr.f32.gmra.mxu1 %v850_v14 }
  0x4a   :  { %11563 = vmatprep.mubr.f32.mxu0 %v13241_v7  ;;  %11577 = vmatprep.mubr.f32.mxu1 %v860_v18  ;;  %v13326_v37 = vsub.f32 %v1502_v21, %v13320_v34 }
  0x4b   :  { %11611 = vmatprep.subr.mxu0 %v13320_v34 }
  0x4c   :  { %v13336_v40 = vand.u32 4294901760, %v13326_v37 }
  0x4d   :  { %11564 = vmatmul.mubr.f32.gmra.mxu0 %v13253_v15  ;;  %11578 = vmatmul.mubr.f32.gmra.mxu1 %v870_v23 }
  0x4e   :  { %11566 = vmatprep.mubr.f32.mxu0 %v879_v20  ;;  %11580 = vmatprep.mubr.f32.mxu1 %v880_v26  ;;  %v1660_v44 = vsub.f32 %v13326_v37, %v13336_v40 }
  0x50   :  { %v1661_v48 = vand.u32 4294901760, %v1660_v44 }
  0x51   :  { %11567 = vmatmul.mubr.f32.gmra.mxu0 %v889_v24  ;;  %11581 = vmatmul.mubr.f32.gmra.mxu1 %v890_v29 }
  0x52   :  { %11585 = vmatprep.mubr.f32.mxu0 %v13170_v43  ;;  %11599 = vmatprep.mubr.f32.mxu1 %v13170_v43  ;;  %v1499_v43 = vld [vmem:[%s16058_s9] sm:$0xff] }
  0x53   :  { %v13356_v47 = vand.u32 4294901760, %v1499_v43  ;;  %11625 = vmatprep.subr.mxu1 %v1661_v48 }
  0x55   :  { %11586 = vmatmul.mubr.f32.vlgmr.msra.gmra.mxu0 %v13190_v50  ;;  %11600 = vmatmul.mubr.f32.vlgmr.msra.gmra.mxu1 %v13190_v50  ;;  %v13363_v50 = vand.u32 4294901760, %v13354_v46  ;;  %v13366_v51 = vsub.f32 %v1499_v43, %v13356_v47 }
  0x56   :  { %11588 = vmatprep.mubr.f32.mxu0 %v13195_v52  ;;  %11602 = vmatprep.mubr.f32.mxu1 %v13195_v52  ;;  %v1668_v52 = vand.u32 4294901760, %v1667_v49 }
  0x57   :  { %11612 = vmatpush3.msra.mxu0 %v13320_v34  ;;  %v1674_v53 = vsub.f32 %v13354_v46, %v13363_v50  ;;  %v13373_v54 = vand.u32 4294901760, %v13366_v51  ;;  %11626 = vmatpush3.msra.mxu1 %v1661_v48 }
  0x58   :  { %11613 = vmatprep.subr.mxu0 %v13328_v38  ;;  %11627 = vmatprep.subr.mxu1 %v1668_v52 }
  0x59   :  { %11589 = vmatmul.mubr.f32.gmra.mxu0 %v13211_v60  ;;  %11603 = vmatmul.mubr.f32.gmra.mxu1 %v13211_v60  ;;  %v1675_v55 = vand.u32 4294901760, %v1674_v53  ;;  %v1681_v56 = vsub.f32 %v13366_v51, %v13373_v54  ;;  %v10638_v60 = vld [vmem:[%s16229_s29] ss:$0 sm:$0xff] }
  0x5a   :  { %11591 = vmatprep.mubr.f32.mxu0 %v13217_v62  ;;  %11605 = vmatprep.mubr.f32.mxu1 %v13217_v62 }
  0x5b   :  { %11614 = vmatpush3.msra.mxu0 %v13328_v38  ;;  %11628 = vmatpush3.msra.mxu1 %v1668_v52  ;;  %v1682_v57 = vand.u32 4294901760, %v1681_v56 }
  0x5c   :  { %11615 = vmatprep.subr.mxu0 %v13341_v42  ;;  %11629 = vmatprep.subr.mxu1 %v1675_v55 }
  0x5d   :  { %11592 = vmatmul.mubr.f32.gmra.mxu0 %v13234_v5  ;;  %11606 = vmatmul.mubr.f32.gmra.mxu1 %v13234_v5 }
  0x5e   :  { %11594 = vmatprep.mubr.f32.mxu0 %v13243_v8  ;;  %11608 = vmatprep.mubr.f32.mxu1 %v13243_v8 }
  0x5f   :  { %11616 = vmatpush3.msra.mxu0 %v13341_v42  ;;  %11630 = vmatpush3.msra.mxu1 %v1675_v55 }
  0x60   :  { %11617 = vmatprep.subr.mxu0 %v13356_v47  ;;  %11631 = vmatprep.subr.mxu1 %v1682_v57 }
  0x61   :  { %11595 = vmatmul.mubr.f32.gmra.mxu0 %v13255_v16  ;;  %11609 = vmatmul.mubr.f32.gmra.mxu1 %v13255_v16 }
  0x62   :  { %11618 = vmatpush3.msra.mxu0 %v13356_v47  ;;  %11632 = vmatpush3.msra.mxu1 %v1682_v57 }
  0x63   :  { %11639 = vmatprep.subr.mxu0 %v13326_v37  ;;  %11653 = vmatprep.subr.mxu1 %v13320_v34 }
  0xdd   :  { %v11483_v58 = vpop.f32.mrf.mxu0  ;;  %v11491_v59 = vpop.f32.mrf.mxu1 }
  0xde   :  { %v215_v0 = vadd.f32 %v11483_v58, %v10638_v60 }
  0xdf   :  { %v204_v61 = vpop.f32.mrf.mxu0  ;;  %v310_v62 = vpop.f32.mrf.mxu1 }
  0xe0   :  { %v205_v3 = vadd.f32 %v10638_v60, %v204_v61  ;;  %v317_v6 = vadd.f32 %v11491_v59, %v215_v0 }
  0xe1   :  { %v11486_v63 = vpop.f32.mrf.mxu0  ;;  %v11494_v1 = vpop.f32.mrf.mxu1 }
  0xe2   :  { %v235_v7 = vadd.f32 %v11486_v63, %v10638_v60  ;;  %v311_v12 = vadd.f32 %v310_v62, %v205_v3 }
  0xe3   :  { %v224_v2 = vpop.f32.mrf.mxu0  ;;  %v322_v4 = vpop.f32.mrf.mxu1 }
  0xe4   :  { %v225_v14 = vadd.f32 %v10638_v60, %v224_v2  ;;  %v329_v9 = vadd.f32 %v11494_v1, %v235_v7 }
  0xe5   :  { %v11499_v5 = vpop.f32.mrf.mxu0  ;;  %v11507_v8 = vpop.f32.mrf.mxu1 }
  0xe6   :  { %v410_v15 = vadd.f32 %v11499_v5, %v317_v6  ;;  %v323_v22 = vadd.f32 %v322_v4, %v225_v14  ;;  %v2140_v5 = vld [vmem:[%s16060_s11 + $0x18] sm:$0xff] }
  0xe7   :  { %v402_v11 = vpop.f32.mrf.mxu0  ;;  %v497_v16 = vpop.f32.mrf.mxu1 }
  0xe8   :  { %v403_v18 = vadd.f32 %v402_v11, %v311_v12  ;;  %v506_v23 = vadd.f32 %v11507_v8, %v410_v15 }
  0xe9   :  { %v11502_v17 = vpop.f32.mrf.mxu0  ;;  %v11510_v20 = vpop.f32.mrf.mxu1 }
  0xea   :  { %v424_v24 = vadd.f32 %v11502_v17, %v329_v9  ;;  %v498_v26 = vadd.f32 %v497_v16, %v403_v18  ;;  %v13446_v18 = vand.u32 4294901760, %v2140_v5 }
  0xeb   :  { %v416_v10 = vpop.f32.mrf.mxu0  ;;  %v513_v13 = vpop.f32.mrf.mxu1 }
  0xec   :  { %v417_v27 = vadd.f32 %v416_v10, %v323_v22  ;;  %v522_v31 = vadd.f32 %v11510_v20, %v424_v24 }
  0xed   :  { %v11515_v25 = vpop.f32.mrf.mxu0  ;;  %v11523_v29 = vpop.f32.mrf.mxu1 }
  0xee   :  { %v602_v28 = vadd.f32 %v11515_v25, %v506_v23  ;;  %v514_v21 = vadd.f32 %v513_v13, %v417_v27 }
  0xef   :  { %v595_v30 = vpop.f32.mrf.mxu0  ;;  %v685_v33 = vpop.f32.mrf.mxu1 }
  0xf0   :  { %v13382_v19 = vadd.f32 %v11523_v29, %v602_v28  ;;  %v596_v32 = vadd.f32 %v595_v30, %v498_v26  ;;  %v2139_v28 = vld [vmem:[%s16060_s11 + $0x10] sm:$0xff]  ;;  %v13468_v29 = vsub.f32 %v2140_v5, %v13446_v18 }
  0xf1   :  { %v11518_v35 = vpop.f32.mrf.mxu0  ;;  %v11526_v44 = vpop.f32.mrf.mxu1 }
  0xf2   :  { %16230 = vst [vmem:[#allocation6_spill] sm:$0xff] %v13382_v19  ;;  %v1515_v36 = vsel %vm1510_vm4, %v13382_v19, 0  ;;  %v13386_v39 = vadd.f32 %v685_v33, %v596_v32  ;;  %v614_v43 = vadd.f32 %v11518_v35, %v522_v31  ;;  %v13479_v35 = vand.u32 4294901760, %v2139_v28 }
  0xf3   :  { %v13388_v48 = vand.u32 4294901760, %v1515_v36  ;;  %v607_v49 = vpop.f32.mrf.mxu0  ;;  %v697_v56 = vpop.f32.mrf.mxu1 }
  0xf4   :  { %16231 = vst [vmem:[#allocation7_spill] sm:$0xff] %v13386_v39  ;;  %v1512_v52 = vsel %vm1510_vm4, %v13386_v39, 0  ;;  %v13392_v53 = vadd.f32 %v11526_v44, %v614_v43  ;;  %v608_v55 = vadd.f32 %v607_v49, %v514_v21  ;;  %v2138_v21 = vld [vmem:[%s16060_s11 + $0x8] sm:$0xff]  ;;  %v2137_v49 = vld [vmem:[%s16060_s11] sm:$0xff] }
  0xf5   :  { %v13395_v57 = vsub.f32 %v1515_v36, %v13388_v48  ;;  %v13397_v58 = vand.u32 4294901760, %v1512_v52  ;;  %v13399_v59 = vpop.f32.mrf.mxu0  ;;  %v13405_v62 = vpop.f32.mrf.mxu1 }
  0xf6   :  { %16232 = vst [vmem:[#allocation8_spill] sm:$0xff] %v13392_v53  ;;  %v1521_v60 = vsel %vm1510_vm4, %v13392_v53, 0  ;;  %v13403_v61 = vadd.f32 %v697_v56, %v608_v55  ;;  %v13503_v55 = vand.u32 4294901760, %v2138_v21 }
  0xf7   :  { %v1604_v63 = vand.u32 4294901760, %v13395_v57  ;;  %v13409_v0 = vsub.f32 %v1512_v52, %v13397_v58  ;;  %v13411_v1 = vand.u32 4294901760, %v1521_v60  ;;  %11633 = vmatprep.mubr.f32.mxu1 %v13397_v58  ;;  %v13414_v2 = vpop.f32.mrf.mxu0  ;;  %v13419_v4 = vpop.f32.mrf.mxu1 }
  0xf8   :  { %16233 = vst [vmem:[#allocation9_spill] sm:$0xff] %v13403_v61  ;;  %v1518_v3 = vsel %vm1510_vm4, %v13403_v61, 0  ;;  %11634 = vmatmul.mubr.f32.vlgmr.msra.gmra.mxu1 %v13388_v48 }
  0xf9   :  { %v13425_v6 = vsub.f32 %v1521_v60, %v13411_v1  ;;  %v13427_v7 = vand.u32 4294901760, %v1518_v3  ;;  %11654 = vmatpush3.msra.mxu1 %v13320_v34  ;;  %v1594_v8 = vand.u32 4294901760, %v13409_v0  ;;  %v13431_v11 = vpop.f32.mrf.mxu0  ;;  %v1605_v12 = vsub.f32 %v13395_v57, %v1604_v63  ;;  %v13435_v14 = vpop.f32.mrf.mxu1 }
  0xfa   :  { %11655 = vmatprep.subr.mxu1 %v13328_v38 }
  0xfb   :  { %v13438_v15 = vsub.f32 %v1518_v3, %v13427_v7  ;;  %11636 = vmatprep.mubr.f32.mxu1 %v13427_v7  ;;  %11656 = vmatpush3.msra.mxu1 %v13328_v38  ;;  %v1595_v16 = vsub.f32 %v13409_v0, %v1594_v8  ;;  %v1624_v17 = vand.u32 4294901760, %v13425_v6  ;;  %v13444_v9 = vpop.f32.mrf.mxu0  ;;  %v13450_v20 = vpop.f32.mrf.mxu1  ;;  %v1606_v24 = vand.u32 4294901760, %v1605_v12 }
  0xfc   :  { %11637 = vmatmul.mubr.f32.gmra.mxu1 %v13411_v1  ;;  %11657 = vmatprep.subr.mxu1 %v13341_v42  ;;  %v13515_v3 = vand.u32 4294901760, %v2137_v49 }
  0xfd   :  { %11658 = vmatpush3.msra.mxu1 %v13341_v42  ;;  %11661 = vmatprep.mubr.f32.mxu1 %v1594_v8  ;;  %v1596_v10 = vand.u32 4294901760, %v1595_v16  ;;  %v1614_v22 = vand.u32 4294901760, %v13438_v15  ;;  %v13454_v23 = vpop.f32.mrf.mxu0  ;;  %v13457_v13 = vpop.f32.mrf.mxu1  ;;  %v1625_v26 = vsub.f32 %v13425_v6, %v1624_v17 }
  0xfe   :  { %11659 = vmatprep.subr.mxu1 %v13356_v47 }
  0xff   :  { %11619 = vmatprep.mubr.f32.mxu0 %v1596_v10  ;;  %11660 = vmatpush3.msra.mxu1 %v13356_v47  ;;  %v1615_v25 = vsub.f32 %v13438_v15, %v1614_v22  ;;  %v13462_v27 = vpop.f32.mrf.mxu0  ;;  %v13470_v30 = vpop.f32.mrf.mxu1  ;;  %v1626_v36 = vand.u32 4294901760, %v1625_v26  ;;  %v13537_v10 = vsub.f32 %v2137_v49, %v13515_v3 }
 0x100   :  { %11620 = vmatmul.mubr.f32.vlgmr.msra.gmra.mxu0 %v1606_v24  ;;  %11662 = vmatmul.mubr.f32.vlgmr.msra.gmra.mxu1 %v1604_v63 }
 0x101   :  { %11681 = vmatprep.subr.mxu1 %v13320_v34  ;;  %11640 = vmatpush3.msra.mxu0 %v13326_v37  ;;  %v1616_v31 = vand.u32 4294901760, %v1615_v25  ;;  %v13474_v32 = vpop.f32.mrf.mxu0  ;;  %v13477_v33 = vpop.f32.mrf.mxu1  ;;  %v13489_v37 = vld [vmem:[%s16057_s8] ss:$0 sm:$0xff]  ;;  %v13562_v25 = vand.u32 4294901760, %v13537_v10 }
 0x102   :  { %11664 = vmatprep.mubr.f32.mxu1 %v1614_v22  ;;  %11682 = vmatpush3.msra.mxu1 %v13320_v34  ;;  %v13494_v34 = vand.u32 4294901760, %v13468_v29  ;;  %v835_v56 = vadd.f32 %v13399_v59, %v13489_v37  ;;  %v825_v59 = vadd.f32 %v13489_v37, %v13414_v2 }
 0x103   :  { %11641 = vmatprep.subr.mxu0 %v13339_v41  ;;  %11683 = vmatprep.subr.mxu1 %v13328_v38  ;;  %v13491_v43 = vpop.f32.mrf.mxu0  ;;  %v13497_v44 = vpop.f32.mrf.mxu1 }
 0x104   :  { %11622 = vmatprep.mubr.f32.mxu0 %v1616_v31  ;;  %11642 = vmatpush3.msra.mxu0 %v13339_v41  ;;  %v13509_v41 = vsub.f32 %v2139_v28, %v13479_v35 }
 0x105   :  { %11684 = vmatpush3.msra.mxu1 %v13328_v38  ;;  %11623 = vmatmul.mubr.f32.gmra.mxu0 %v1626_v36  ;;  %v11559_v52 = vpop.f32.mrf.mxu0  ;;  %v11573_v60 = vpop.f32.mrf.mxu1  ;;  %v2349_v38 = vsub.f32 %v13468_v29, %v13494_v34 }
 0x106   :  { %11643 = vmatprep.subr.mxu0 %v13354_v46  ;;  %11665 = vmatmul.mubr.f32.gmra.mxu1 %v1624_v17  ;;  %v13532_v2 = vand.u32 4294901760, %v13509_v41 }
 0x107   :  { %11685 = vmatprep.subr.mxu1 %v13341_v42  ;;  %11644 = vmatpush3.msra.mxu0 %v13354_v46  ;;  %v1086_v63 = vpop.f32.mrf.mxu0  ;;  %v1209_v5 = vpop.f32.mrf.mxu1  ;;  %v13524_v46 = vsub.f32 %v2138_v21, %v13503_v55  ;;  %v2350_v17 = vand.u32 4294901760, %v2349_v38 }
 0x108   :  { %11647 = vmatprep.mubr.f32.mxu0 %v13409_v0  ;;  %11686 = vmatpush3.msra.mxu1 %v13341_v42  ;;  %v977_v0 = vadd.f32 %v13405_v62, %v835_v56  ;;  %v855_v42 = vadd.f32 %v13431_v11, %v13489_v37  ;;  %v845_v62 = vadd.f32 %v13489_v37, %v13444_v9 }
 0x109   :  { %11689 = vmatprep.mubr.f32.mxu1 %v13397_v58  ;;  %11645 = vmatprep.subr.mxu0 %v13366_v51  ;;  %v11562_v8 = vpop.f32.mrf.mxu0  ;;  %v11576_v12 = vpop.f32.mrf.mxu1  ;;  %v13551_v22 = vand.u32 4294901760, %v13524_v46 }
 0x10a   :  { %11687 = vmatprep.subr.mxu1 %v13356_v47  ;;  %11646 = vmatpush3.msra.mxu0 %v13366_v51  ;;  %v971_v51 = vadd.f32 %v13419_v4, %v825_v59  ;;  %v989_v4 = vadd.f32 %v13435_v14, %v855_v42  ;;  %v1094_v9 = vadd.f32 %v11559_v52, %v977_v0 }
 0x10b   :  { %11688 = vmatpush3.msra.mxu1 %v13356_v47  ;;  %11648 = vmatmul.mubr.f32.vlgmr.msra.gmra.mxu0 %v13395_v57  ;;  %v1100_v16 = vpop.f32.mrf.mxu0  ;;  %v13544_v11 = vpop.f32.mrf.mxu1  ;;  %v875_v47 = vadd.f32 %v13454_v23, %v13489_v37  ;;  %v983_v14 = vadd.f32 %v13450_v20, %v845_v62  ;;  %v2363_v31 = vsub.f32 %v13524_v46, %v13551_v22 }
 0x10c   :  { %11667 = vmatprep.subr.mxu0 %v13336_v40  ;;  %11690 = vmatmul.mubr.f32.vlgmr.msra.gmra.mxu1 %v13388_v48  ;;  %v1087_v26 = vadd.f32 %v1086_v63, %v971_v51  ;;  %v1218_v20 = vadd.f32 %v11573_v60, %v1094_v9  ;;  %v1108_v21 = vadd.f32 %v11562_v8, %v989_v4 }
 0x10d   :  { %11650 = vmatprep.mubr.f32.mxu0 %v13438_v15  ;;  %11668 = vmatpush3.msra.mxu0 %v13336_v40  ;;  %v11565_v57 = vpop.f32.mrf.mxu0  ;;  %v11579_v24 = vpop.f32.mrf.mxu1  ;;  %v2356_v15 = vsub.f32 %v13509_v41, %v13532_v2  ;;  %v865_v40 = vadd.f32 %v13489_v37, %v13462_v27  ;;  %v1101_v56 = vadd.f32 %v1100_v16, %v983_v14 }
 0x10e   :  { %11692 = vmatprep.mubr.f32.mxu1 %v13427_v7  ;;  %11669 = vmatprep.subr.mxu0 %v13351_v45 }
 0x10f   :  { %11670 = vmatpush3.msra.mxu0 %v13351_v45  ;;  %v1114_v23 = vpop.f32.mrf.mxu0  ;;  %11715 = vmatprep.subr.mxu1 %v2350_v17  ;;  %v1241_v28 = vpop.f32.mrf.mxu1  ;;  %v1001_v45 = vadd.f32 %v13457_v13, %v875_v47  ;;  %v2357_v49 = vand.u32 4294901760, %v2356_v15  ;;  %v885_v13 = vadd.f32 %v13489_v37, %v13491_v43  ;;  %v1234_v43 = vadd.f32 %v11576_v12, %v1108_v21 }
 0x110   :  { %11651 = vmatmul.mubr.f32.gmra.mxu0 %v13425_v6  ;;  %11671 = vmatprep.subr.mxu0 %v13363_v50  ;;  %v895_v6 = vadd.f32 %v13474_v32, %v13489_v37  ;;  %v1210_v32 = vadd.f32 %v1209_v5, %v1087_v26  ;;  %v1226_v0 = vadd.f32 %v13544_v11, %v1101_v56 }
 0x111   :  { %11693 = vmatmul.mubr.f32.gmra.mxu1 %v13411_v1  ;;  %11672 = vmatpush3.msra.mxu0 %v13363_v50  ;;  %v11568_v27 = vpop.f32.mrf.mxu0  ;;  %v13576_v36 = vpop.f32.mrf.mxu1  ;;  %v995_v50 = vadd.f32 %v13470_v30, %v865_v40  ;;  %v2364_v30 = vand.u32 4294901760, %v2363_v31 }
 0x112   :  { %11675 = vmatprep.mubr.f32.mxu0 %v13397_v58  ;;  %11673 = vmatprep.subr.mxu0 %v13373_v54  ;;  %v2370_v58 = vsub.f32 %v13537_v10, %v13562_v25  ;;  %v1013_v37 = vadd.f32 %v13477_v33, %v895_v6 }
 0x113   :  { %11674 = vmatpush3.msra.mxu0 %v13373_v54  ;;  %v1128_v52 = vpop.f32.mrf.mxu0  ;;  %11716 = vmatpush3.msra.mxu1 %v2350_v17  ;;  %v1257_v60 = vpop.f32.mrf.mxu1  ;;  %v1122_v54 = vadd.f32 %v11565_v57, %v1001_v45  ;;  %v1115_v5 = vadd.f32 %v1114_v23, %v995_v50 }
 0x114   :  { %11676 = vmatmul.mubr.f32.vlgmr.msra.gmra.mxu0 %v13388_v48  ;;  %11695 = vmatprep.subr.mxu0 %v13446_v18  ;;  %v1007_v48 = vadd.f32 %v13497_v44, %v885_v13  ;;  %v1136_v44 = vadd.f32 %v11568_v27, %v1013_v37 }
 0x115   :  { %11678 = vmatprep.mubr.f32.mxu0 %v13427_v7  ;;  %v11587_v63 = vpop.f32.mrf.mxu0  ;;  %11696 = vmatpush3.msra.mxu0 %v13446_v18  ;;  %v11601_v59 = vpop.f32.mrf.mxu1  ;;  %v2371_v7 = vand.u32 4294901760, %v2370_v58  ;;  %v1250_v16 = vadd.f32 %v11579_v24, %v1122_v54  ;;  %v1242_v11 = vadd.f32 %v1241_v28, %v1115_v5 }
 0x116   :  { %v1346_v38 = vadd.f32 %v11587_v63, %v1218_v20  ;;  %11697 = vmatprep.subr.mxu0 %v13479_v35  ;;  %11717 = vmatprep.subr.mxu1 %v2357_v49  ;;  %v1129_v9 = vadd.f32 %v1128_v52, %v1007_v48  ;;  %v1266_v45 = vadd.f32 %v13576_v36, %v1136_v44 }
 0x117   :  { %v1339_v8 = vpop.f32.mrf.mxu0  ;;  %11698 = vmatpush3.msra.mxu0 %v13479_v35  ;;  %11718 = vmatpush3.msra.mxu1 %v2357_v49  ;;  %v1453_v12 = vpop.f32.mrf.mxu1 }
 0x118   :  { %11679 = vmatmul.mubr.f32.gmra.mxu0 %v13411_v1  ;;  %v1340_v42 = vadd.f32 %v1339_v8, %v1210_v32  ;;  %v13594_v33 = vadd.f32 %v11601_v59, %v1346_v38  ;;  %11699 = vmatprep.subr.mxu0 %v13503_v55  ;;  %v1258_v52 = vadd.f32 %v1257_v60, %v1129_v9 }
 0x119   :  { %v11590_v17 = vpop.f32.mrf.mxu0  ;;  %11700 = vmatpush3.msra.mxu0 %v13503_v55  ;;  %11719 = vmatprep.subr.mxu1 %v2364_v30  ;;  %v11604_v1 = vpop.f32.mrf.mxu1 }
 0x11a   :  { %16234 = vst [vmem:[#allocation10_spill] sm:$0xff] %v13594_v33  ;;  %v2152_v51 = vsel %vm1510_vm4, %v13594_v33, 0  ;;  %v1358_v62 = vadd.f32 %v11590_v17, %v1234_v43  ;;  %v13600_v47 = vadd.f32 %v1453_v12, %v1340_v42  ;;  %11701 = vmatprep.subr.mxu0 %v13515_v3  ;;  %11720 = vmatpush3.msra.mxu1 %v2364_v30  ;;  %v13953_v33 = vld [vmem:[%s16061_s12] ss:$0 sm:$0xff] }
 0x11b   :  { %v13603_v57 = vand.u32 4294901760, %v2152_v51  ;;  %v1351_v4 = vpop.f32.mrf.mxu0  ;;  %11702 = vmatpush3.msra.mxu0 %v13515_v3  ;;  %11721 = vmatprep.subr.mxu1 %v2371_v7  ;;  %v1465_v23 = vpop.f32.mrf.mxu1  ;;  %16276 = vst [vmem:[#allocation51_spill] sm:$0xff] %v13953_v33 }
 0x11c   :  { %16235 = vst [vmem:[#allocation11_spill] sm:$0xff] %v13600_v47  ;;  %v2149_v24 = vsel %vm1510_vm4, %v13600_v47, 0  ;;  %v1352_v15 = vadd.f32 %v1351_v4, %v1226_v0  ;;  %v13608_v40 = vadd.f32 %v11604_v1, %v1358_v62  ;;  %11722 = vmatpush3.msra.mxu1 %v2371_v7  ;;  %11735 = vmatprep.subr.mxu0 %v13468_v29 }
 0x11d   :  { %v13612_v14 = vsub.f32 %v2152_v51, %v13603_v57  ;;  %v13614_v26 = vand.u32 4294901760, %v2149_v24  ;;  %v11593_v28 = vpop.f32.mrf.mxu0  ;;  %11755 = vmatprep.subr.mxu1 %v13446_v18  ;;  %v11607_v20 = vpop.f32.mrf.mxu1 }
 0x11e   :  { %16236 = vst [vmem:[#allocation12_spill] sm:$0xff] %v13608_v40  ;;  %v2158_v27 = vsel %vm1510_vm4, %v13608_v40, 0  ;;  %v1370_v31 = vadd.f32 %v11593_v28, %v1250_v16  ;;  %v13620_v6 = vadd.f32 %v1465_v23, %v1352_v15 }
 0x11f   :  { %v2253_v21 = vand.u32 4294901760, %v13612_v14  ;;  %v13624_v49 = vsub.f32 %v2149_v24, %v13614_v26  ;;  %v13626_v50 = vand.u32 4294901760, %v2158_v27  ;;  %v1363_v13 = vpop.f32.mrf.mxu0  ;;  %11723 = vmatprep.mubr.f32.mxu1 %v13614_v26  ;;  %v1477_v56 = vpop.f32.mrf.mxu1 }
 0x120   :  { %16237 = vst [vmem:[#allocation13_spill] sm:$0xff] %v13620_v6  ;;  %v2155_v36 = vsel %vm1510_vm4, %v13620_v6, 0  ;;  %v1364_v58 = vadd.f32 %v1363_v13, %v1242_v11  ;;  %v13631_v32 = vadd.f32 %v11607_v20, %v1370_v31  ;;  %11724 = vmatmul.mubr.f32.vlgmr.msra.gmra.mxu1 %v13603_v57 }
 0x121   :  { %v2254_v54 = vsub.f32 %v13612_v14, %v2253_v21  ;;  %v13638_v63 = vsub.f32 %v2158_v27, %v13626_v50  ;;  %v13640_v30 = vand.u32 4294901760, %v2155_v36  ;;  %v11596_v37 = vpop.f32.mrf.mxu0  ;;  %v2243_v60 = vand.u32 4294901760, %v13624_v49  ;;  %11756 = vmatpush3.msra.mxu1 %v13446_v18  ;;  %v11610_v48 = vpop.f32.mrf.mxu1 }
 0x122   :  { %16238 = vst [vmem:[#allocation14_spill] sm:$0xff] %v13631_v32  ;;  %v2164_v43 = vsel %vm1510_vm4, %v13631_v32, 0  ;;  %v1382_v38 = vadd.f32 %v11596_v37, %v1266_v45  ;;  %v13646_v59 = vadd.f32 %v1477_v56, %v1364_v58  ;;  %11757 = vmatprep.subr.mxu1 %v13479_v35 }
 0x123   :  { %v2255_v5 = vand.u32 4294901760, %v2254_v54  ;;  %v13650_v8 = vsub.f32 %v2155_v36, %v13640_v30  ;;  %v13652_v7 = vand.u32 4294901760, %v2164_v43  ;;  %v1375_v0 = vpop.f32.mrf.mxu0  ;;  %v2244_v42 = vsub.f32 %v13624_v49, %v2243_v60  ;;  %11726 = vmatprep.mubr.f32.mxu1 %v13640_v30  ;;  %11758 = vmatpush3.msra.mxu1 %v13479_v35  ;;  %v1489_v44 = vpop.f32.mrf.mxu1 }
 0x124   :  { %16239 = vst [vmem:[#allocation15_spill] sm:$0xff] %v13646_v59  ;;  %v2161_v12 = vsel %vm1510_vm4, %v13646_v59, 0  ;;  %v1376_v16 = vadd.f32 %v1375_v0, %v1258_v52  ;;  %v13661_v17 = vadd.f32 %v11610_v48, %v1382_v38  ;;  %v2273_v51 = vand.u32 4294901760, %v13638_v63  ;;  %11727 = vmatmul.mubr.f32.gmra.mxu1 %v13626_v50  ;;  %11759 = vmatprep.subr.mxu1 %v13503_v55 }
 0x125   :  { %v13667_v62 = vsub.f32 %v2164_v43, %v13652_v7  ;;  %v13669_v1 = vand.u32 4294901760, %v2161_v12  ;;  %v2245_v11 = vand.u32 4294901760, %v2244_v42  ;;  %v2263_v4 = vand.u32 4294901760, %v13650_v8  ;;  %11760 = vmatpush3.msra.mxu1 %v13503_v55 }
 0x126   :  { %16240 = vst [vmem:[#allocation16_spill] sm:$0xff] %v13661_v17  ;;  %v2170_v9 = vsel %vm1510_vm4, %v13661_v17, 0  ;;  %v13675_v24 = vadd.f32 %v1489_v44, %v1376_v16  ;;  %v2274_v15 = vsub.f32 %v13638_v63, %v2273_v51  ;;  %11761 = vmatprep.subr.mxu1 %v13515_v3  ;;  %v76_v44 = vld [vmem:[%s16242_s27 + $0x8] sm:$0xff] }
 0x127   :  { %v2282_v23 = vsub.f32 %v2161_v12, %v13669_v1  ;;  %v13680_v28 = vand.u32 4294901760, %v2170_v9  ;;  %11703 = vmatprep.mubr.f32.mxu0 %v2245_v11  ;;  %v2264_v45 = vsub.f32 %v13650_v8, %v2263_v4  ;;  %v2293_v27 = vand.u32 4294901760, %v13667_v62  ;;  %11729 = vmatprep.mubr.f32.mxu1 %v13669_v1 }
 0x128   :  { %16241 = vst [vmem:[#allocation17_spill] sm:$0xff] %v13675_v24  ;;  %v2167_v31 = vsel %vm1510_vm4, %v13675_v24, 0  ;;  %11704 = vmatmul.mubr.f32.vlgmr.msra.gmra.mxu0 %v2255_v5  ;;  %v2275_v20 = vand.u32 4294901760, %v2274_v15  ;;  %11730 = vmatmul.mubr.f32.gmra.mxu1 %v13652_v7  ;;  %v2962_v15 = vsel %vm1510_vm4, %v76_v44, 0 }
 0x129   :  { %v13689_v13 = vsub.f32 %v2170_v9, %v13680_v28  ;;  %v13691_v52 = vand.u32 4294901760, %v2167_v31  ;;  %v2265_v36 = vand.u32 4294901760, %v2264_v45  ;;  %v2283_v58 = vand.u32 4294901760, %v2282_v23  ;;  %11736 = vmatpush3.msra.mxu0 %v13468_v29  ;;  %11762 = vmatpush3.msra.mxu1 %v13515_v3  ;;  %v77_v45 = vld [vmem:[%s16242_s27 + $0x10] sm:$0xff] }
 0x12a   :  { %v2294_v56 = vsub.f32 %v13667_v62, %v2293_v27  ;;  %11737 = vmatprep.subr.mxu0 %v13509_v41  ;;  %11795 = vmatprep.subr.mxu1 %v13446_v18 }
 0x12b   :  { %v2302_v54 = vsub.f32 %v2167_v31, %v13691_v52  ;;  %11706 = vmatprep.mubr.f32.mxu0 %v2265_v36  ;;  %v2284_v37 = vsub.f32 %v2282_v23, %v2283_v58  ;;  %11738 = vmatpush3.msra.mxu0 %v13509_v41  ;;  %v2313_v43 = vand.u32 4294901760, %v13689_v13  ;;  %v79_v36 = vld [vmem:[%s16242_s27 + $0x20] sm:$0xff] }
 0x12c   :  { %11707 = vmatmul.mubr.f32.gmra.mxu0 %v2275_v20  ;;  %v2295_v38 = vand.u32 4294901760, %v2294_v56  ;;  %11739 = vmatprep.subr.mxu0 %v13524_v46  ;;  %v78_v20 = vld [vmem:[%s16242_s27 + $0x18] sm:$0xff] }
 0x12d   :  { %v2285_v29 = vand.u32 4294901760, %v2284_v37  ;;  %v2303_v48 = vand.u32 4294901760, %v2302_v54  ;;  %v2314_v5 = vsub.f32 %v13689_v13, %v2313_v43  ;;  %11732 = vmatprep.mubr.f32.mxu1 %v13691_v52  ;;  %11740 = vmatpush3.msra.mxu0 %v13524_v46  ;;  %v2965_v37 = vsel %vm1510_vm4, %v77_v45, 0 }
 0x12e   :  { %11733 = vmatmul.mubr.f32.gmra.mxu1 %v13680_v28  ;;  %11741 = vmatprep.subr.mxu0 %v13537_v10 }
 0x12f   :  { %11709 = vmatprep.mubr.f32.mxu0 %v2285_v29  ;;  %v2304_v41 = vsub.f32 %v2302_v54, %v2303_v48  ;;  %11742 = vmatpush3.msra.mxu0 %v13537_v10  ;;  %v2315_v0 = vand.u32 4294901760, %v2314_v5  ;;  %v2968_v29 = vsel %vm1510_vm4, %v78_v20, 0 }
 0x130   :  { %11710 = vmatmul.mubr.f32.gmra.mxu0 %v2295_v38  ;;  %11763 = vmatprep.mubr.f32.mxu1 %v2243_v60 }
 0x131   :  { %v2305_v42 = vand.u32 4294901760, %v2304_v41  ;;  %11775 = vmatprep.subr.mxu0 %v13494_v34 }
 0x132   :  { %11764 = vmatmul.mubr.f32.vlgmr.msra.gmra.mxu1 %v2253_v21 }
 0x133   :  { %11712 = vmatprep.mubr.f32.mxu0 %v2305_v42  ;;  %11766 = vmatprep.mubr.f32.mxu1 %v2263_v4 }
 0x134   :  { %11713 = vmatmul.mubr.f32.gmra.mxu0 %v2315_v0  ;;  %11796 = vmatpush3.msra.mxu1 %v13446_v18  ;;  %v75_v18 = vld [vmem:[%s16242_s27] sm:$0xff]  ;;  %v2971_v0 = vsel %vm1510_vm4, %v79_v36, 0 }
 0x135   :  { %11743 = vmatprep.mubr.f32.mxu0 %v13624_v49  ;;  %11797 = vmatprep.subr.mxu1 %v13479_v35 }
 0x136   :  { %11767 = vmatmul.mubr.f32.gmra.mxu1 %v2273_v51 }
 0x137   :  { %11769 = vmatprep.mubr.f32.mxu1 %v2283_v58  ;;  %11798 = vmatpush3.msra.mxu1 %v13479_v35  ;;  %v2959_v35 = vsel %vm1510_vm4, %v75_v18, 0 }
 0x138   :  { %11744 = vmatmul.mubr.f32.vlgmr.msra.gmra.mxu0 %v13612_v14  ;;  %11799 = vmatprep.subr.mxu1 %v13503_v55 }
 0x139   :  { %11746 = vmatprep.mubr.f32.mxu0 %v13650_v8  ;;  %11776 = vmatpush3.msra.mxu0 %v13494_v34  ;;  %v13753_v34 = vand.u32 4294901760, %v2959_v35 }
 0x13a   :  { %11770 = vmatmul.mubr.f32.gmra.mxu1 %v2293_v27  ;;  %11777 = vmatprep.subr.mxu0 %v13532_v2 }
 0x13b   :  { %11778 = vmatpush3.msra.mxu0 %v13532_v2  ;;  %11772 = vmatprep.mubr.f32.mxu1 %v2303_v48  ;;  %16243 = vst [vmem:[#allocation18_spill] sm:$0xff] %v13753_v34 }
 0x13c   :  { %11747 = vmatmul.mubr.f32.gmra.mxu0 %v13638_v63  ;;  %11779 = vmatprep.subr.mxu0 %v13551_v22  ;;  %v10640_v63 = vld [vmem:[%s16059_s10] ss:$0 sm:$0xff] }
 0x13d   :  { %11749 = vmatprep.mubr.f32.mxu0 %v2282_v23  ;;  %11780 = vmatpush3.msra.mxu0 %v13551_v22 }
 0x13e   :  { %11773 = vmatmul.mubr.f32.gmra.mxu1 %v2313_v43  ;;  %11781 = vmatprep.subr.mxu0 %v13562_v25 }
 0x13f   :  { %11782 = vmatpush3.msra.mxu0 %v13562_v25  ;;  %11800 = vmatpush3.msra.mxu1 %v13503_v55  ;;  %v13756_v55 = vsub.f32 %v2959_v35, %v13753_v34  ;;  %v13791_v35 = vand.u32 4294901760, %v2965_v37 }
 0x140   :  { %11750 = vmatmul.mubr.f32.gmra.mxu0 %v13667_v62  ;;  %11801 = vmatprep.subr.mxu1 %v13515_v3 }
 0x141   :  { %11752 = vmatprep.mubr.f32.mxu0 %v2302_v54  ;;  %11802 = vmatpush3.msra.mxu1 %v13515_v3  ;;  %16244 = vst [vmem:[#allocation19_spill] sm:$0xff] %v13756_v55  ;;  %v13760_v3 = vand.u32 4294901760, %v13756_v55  ;;  %16249 = vst [vmem:[#allocation24_spill] sm:$0xff] %v13791_v35  ;;  %v13815_v44 = vsub.f32 %v2965_v37, %v13791_v35 }
 0x142   :  { %11803 = vmatprep.mubr.f32.mxu1 %v13614_v26 }
 0x143   :  { %11804 = vmatmul.mubr.f32.vlgmr.msra.gmra.mxu1 %v13603_v57  ;;  %16245 = vst [vmem:[#allocation20_spill] sm:$0xff] %v13760_v3  ;;  %v3078_v46 = vsub.f32 %v13756_v55, %v13760_v3  ;;  %16255 = vst [vmem:[#allocation30_spill] sm:$0xff] %v13815_v44  ;;  %v13850_v36 = vand.u32 4294901760, %v13815_v44 }
 0x144   :  { %11753 = vmatmul.mubr.f32.gmra.mxu0 %v13689_v13  ;;  %11806 = vmatprep.mubr.f32.mxu1 %v13640_v30 }
 0x145   :  { %11783 = vmatprep.mubr.f32.mxu0 %v13614_v26  ;;  %v13764_v2 = vand.u32 4294901760, %v3078_v46  ;;  %v80_v46 = vld [vmem:[%s16242_s27 + $0x28] sm:$0xff]  ;;  %16261 = vst [vmem:[#allocation36_spill] sm:$0xff] %v13850_v36 }
 0x147   :  { %11807 = vmatmul.mubr.f32.gmra.mxu1 %v13626_v50  ;;  %16246 = vst [vmem:[#allocation21_spill] sm:$0xff] %v13764_v2 }
 0x148   :  { %11784 = vmatmul.mubr.f32.vlgmr.msra.gmra.mxu0 %v13603_v57  ;;  %11809 = vmatprep.mubr.f32.mxu1 %v13669_v1 }
 0x149   :  { %11786 = vmatprep.mubr.f32.mxu0 %v13640_v30 }
 0x14b   :  { %11810 = vmatmul.mubr.f32.gmra.mxu1 %v13652_v7 }
 0x14c   :  { %11787 = vmatmul.mubr.f32.gmra.mxu0 %v13626_v50  ;;  %11812 = vmatprep.mubr.f32.mxu1 %v13691_v52 }
 0x14d   :  { %11789 = vmatprep.mubr.f32.mxu0 %v13669_v1 }
 0x14f   :  { %11813 = vmatmul.mubr.f32.gmra.mxu1 %v13680_v28 }
 0x150   :  { %11790 = vmatmul.mubr.f32.gmra.mxu0 %v13652_v7  ;;  %11855 = vmatprep.mubr.f32.mxu1 %v13753_v34 }
 0x151   :  { %11792 = vmatprep.mubr.f32.mxu0 %v13691_v52  ;;  %v13780_v52 = vand.u32 4294901760, %v2962_v15 }
 0x153   :  { %16247 = vst [vmem:[#allocation22_spill] sm:$0xff] %v13780_v52  ;;  %v13789_v18 = vsub.f32 %v2962_v15, %v13780_v52 }
 0x154   :  { %11793 = vmatmul.mubr.f32.gmra.mxu0 %v13680_v28 }
 0x155   :  { %11823 = vmatprep.mubr.f32.mxu0 %v13764_v2  ;;  %16248 = vst [vmem:[#allocation23_spill] sm:$0xff] %v13789_v18  ;;  %v87_v2 = vld [vmem:[%s16242_s27 + $0x60] sm:$0xff] }
 0x156   :  { %v2995_v39 = vsel %vm1510_vm4, %v87_v2, 0  ;;  %v89_v2 = vld [vmem:[%s16242_s27 + $0x70] sm:$0xff] }
 0x1b8   :  { %v11635_v10 = vpop.f32.mrf.mxu1 }
 0x1ba   :  { %v1719_v22 = vpop.f32.mrf.mxu1 }
 0x1bc   :  { %v11638_v25 = vpop.f32.mrf.mxu1 }
 0x1be   :  { %v1731_v57 = vpop.f32.mrf.mxu1 }
 0x1c0   :  { %v11621_v14 = vpop.f32.mrf.mxu0  ;;  %v11663_v26 = vpop.f32.mrf.mxu1 }
 0x1c1   :  { %v1609_v8 = vadd.f32 %v11621_v14, %v10640_v63 }
 0x1c2   :  { %v1598_v21 = vpop.f32.mrf.mxu0  ;;  %v1915_v49 = vpop.f32.mrf.mxu1 }
 0x1c3   :  { %v1599_v7 = vadd.f32 %v10640_v63, %v1598_v21  ;;  %v1726_v62 = vadd.f32 %v11635_v10, %v1609_v8  ;;  %v13800_v21 = vand.u32 4294901760, %v2971_v0  ;;  %v2974_v8 = vsel %vm1510_vm4, %v80_v46, 0 }
 0x1c4   :  { %v13829_v15 = vand.u32 4294901760, %v2974_v8 }
 0x1c5   :  { %v11624_v50 = vpop.f32.mrf.mxu0  ;;  %v1720_v9 = vadd.f32 %v1719_v22, %v1599_v7  ;;  %16252 = vst [vmem:[#allocation27_spill] sm:$0xff] %v13800_v21  ;;  %v13837_v45 = vsub.f32 %v2971_v0, %v13800_v21 }
 0x1c6   :  { %v11666_v60 = vpop.f32.mrf.mxu1  ;;  %v1629_v51 = vadd.f32 %v11624_v50, %v10640_v63  ;;  %16258 = vst [vmem:[#allocation33_spill] sm:$0xff] %v13829_v15 }
 0x1c7   :  { %v1618_v30 = vpop.f32.mrf.mxu0  ;;  %16260 = vst [vmem:[#allocation35_spill] sm:$0xff] %v13837_v45  ;;  %v13887_v46 = vand.u32 4294901760, %v13837_v45 }
 0x1c8   :  { %v1931_v16 = vpop.f32.mrf.mxu1  ;;  %v1619_v11 = vadd.f32 %v10640_v63, %v1618_v30  ;;  %v1738_v31 = vadd.f32 %v11638_v25, %v1629_v51  ;;  %v82_v51 = vld [vmem:[%s16242_s27 + $0x38] sm:$0xff] }
 0x1c9   :  { %16266 = vst [vmem:[#allocation41_spill] sm:$0xff] %v13887_v46 }
 0x1ca   :  { %v1732_v56 = vadd.f32 %v1731_v57, %v1619_v11  ;;  %v13798_v57 = vand.u32 4294901760, %v2968_v29 }
 0x1cb   :  { %v11649_v12 = vpop.f32.mrf.mxu0 }
 0x1cc   :  { %v1825_v4 = vadd.f32 %v11649_v12, %v1726_v62  ;;  %v11691_v23 = vpop.f32.mrf.mxu1  ;;  %16251 = vst [vmem:[#allocation26_spill] sm:$0xff] %v13798_v57  ;;  %v13812_v12 = vand.u32 4294901760, %v13789_v18 }
 0x1cd   :  { %v1817_v1 = vpop.f32.mrf.mxu0 }
 0x1ce   :  { %v1818_v27 = vadd.f32 %v1817_v1, %v1720_v9  ;;  %v1924_v54 = vadd.f32 %v11663_v26, %v1825_v4  ;;  %v2115_v43 = vpop.f32.mrf.mxu1  ;;  %16254 = vst [vmem:[#allocation29_spill] sm:$0xff] %v13812_v12 }
 0x1d0   :  { %v11652_v28 = vpop.f32.mrf.mxu0  ;;  %v1916_v41 = vadd.f32 %v1915_v49, %v1818_v27  ;;  %v81_v49 = vld [vmem:[%s16242_s27 + $0x30] sm:$0xff]  ;;  %v2980_v27 = vsel %vm1510_vm4, %v82_v51, 0 }
 0x1d1   :  { %v1839_v58 = vadd.f32 %v11652_v28, %v1738_v31  ;;  %v11694_v14 = vpop.f32.mrf.mxu1  ;;  %v2977_v11 = vsel %vm1510_vm4, %v81_v49, 0  ;;  %v83_v31 = vld [vmem:[%s16242_s27 + $0x40] sm:$0xff] }
 0x1d2   :  { %v1831_v13 = vpop.f32.mrf.mxu0 }
 0x1d3   :  { %v1832_v48 = vadd.f32 %v1831_v13, %v1732_v56  ;;  %v1940_v25 = vadd.f32 %v11666_v60, %v1839_v58  ;;  %v2127_v4 = vpop.f32.mrf.mxu1  ;;  %v3088_v13 = vsub.f32 %v13789_v18, %v13812_v12  ;;  %v13852_v58 = vand.u32 4294901760, %v2977_v11  ;;  %v84_v56 = vld [vmem:[%s16242_s27 + $0x48] sm:$0xff] }
 0x1d4   :  { %v11677_v38 = vpop.f32.mrf.mxu0 }
 0x1d5   :  { %v2029_v5 = vadd.f32 %v11677_v38, %v1924_v54  ;;  %v1932_v30 = vadd.f32 %v1931_v16, %v1832_v48  ;;  %v13823_v16 = vsub.f32 %v2968_v29, %v13798_v57  ;;  %16262 = vst [vmem:[#allocation37_spill] sm:$0xff] %v13852_v58  ;;  %v13872_v29 = vsub.f32 %v2974_v8, %v13829_v15 }
 0x1d6   :  { %v2022_v42 = vpop.f32.mrf.mxu0  ;;  %v13874_v48 = vand.u32 4294901760, %v2980_v27 }
 0x1d7   :  { %v13796_v10 = vadd.f32 %v11691_v23, %v2029_v5  ;;  %v2023_v22 = vadd.f32 %v2022_v42, %v1916_v41  ;;  %16257 = vst [vmem:[#allocation32_spill] sm:$0xff] %v13823_v16  ;;  %16264 = vst [vmem:[#allocation39_spill] sm:$0xff] %v13872_v29  ;;  %v2983_v5 = vsel %vm1510_vm4, %v83_v31, 0  ;;  %v13939_v59 = vand.u32 4294901760, %v13872_v29 }
 0x1d8   :  { %v11680_v26 = vpop.f32.mrf.mxu0  ;;  %16265 = vst [vmem:[#allocation40_spill] sm:$0xff] %v13874_v48  ;;  %v13923_v31 = vsub.f32 %v2980_v27, %v13874_v48  ;;  %v3118_v27 = vsub.f32 %v13837_v45, %v13887_v46 }
 0x1d9   :  { %16250 = vst [vmem:[#allocation25_spill] sm:$0xff] %v13796_v10  ;;  %v13805_v50 = vadd.f32 %v2115_v43, %v2023_v22  ;;  %v2041_v63 = vadd.f32 %v11680_v26, %v1940_v25  ;;  %v13809_v7 = vand.u32 4294901760, %v13796_v10  ;;  %v13864_v43 = vand.u32 4294901760, %v13823_v16  ;;  %v85_v25 = vld [vmem:[%s16242_s27 + $0x50] sm:$0xff]  ;;  %16273 = vst [vmem:[#allocation48_spill] sm:$0xff] %v13939_v59 }
 0x1da   :  { %v2034_v60 = vpop.f32.mrf.mxu0  ;;  %v2986_v22 = vsel %vm1510_vm4, %v84_v56, 0  ;;  %v3098_v26 = vsub.f32 %v13815_v44, %v13850_v36  ;;  %16271 = vst [vmem:[#allocation46_spill] sm:$0xff] %v13923_v31  ;;  %v2989_v56 = vsel %vm1510_vm4, %v85_v25, 0 }
 0x1db   :  { %16253 = vst [vmem:[#allocation28_spill] sm:$0xff] %v13805_v50  ;;  %v13820_v62 = vadd.f32 %v11694_v14, %v2041_v63  ;;  %v2035_v1 = vadd.f32 %v2034_v60, %v1932_v30  ;;  %v13827_v9 = vand.u32 4294901760, %v13805_v50  ;;  %v13845_v20 = vsub.f32 %v13796_v10, %v13809_v7  ;;  %16263 = vst [vmem:[#allocation38_spill] sm:$0xff] %v13864_v43 }
 0x1dc   :  { %v13894_v14 = vand.u32 4294901760, %v3088_v13  ;;  %v13902_v63 = vsub.f32 %v2977_v11, %v13852_v58  ;;  %v3108_v51 = vsub.f32 %v13823_v16, %v13864_v43  ;;  %v13925_v13 = vand.u32 4294901760, %v2986_v22 }
 0x1dd   :  { %16256 = vst [vmem:[#allocation31_spill] sm:$0xff] %v13820_v62  ;;  %v13832_v23 = vand.u32 4294901760, %v13820_v62  ;;  %v13834_v28 = vadd.f32 %v2127_v4, %v2035_v1  ;;  %v13868_v38 = vsub.f32 %v13805_v50, %v13827_v9  ;;  %v13899_v49 = vand.u32 4294901760, %v13845_v20  ;;  %v86_v4 = vld [vmem:[%s16242_s27 + $0x58] sm:$0xff] }
 0x1de   :  { %16267 = vst [vmem:[#allocation42_spill] sm:$0xff] %v13894_v14  ;;  %16268 = vst [vmem:[#allocation43_spill] sm:$0xff] %v13902_v63  ;;  %v13913_v1 = vand.u32 4294901760, %v2983_v5  ;;  %v13942_v25 = vand.u32 4294901760, %v3098_v26  ;;  %v13947_v6 = vand.u32 4294901760, %v13902_v63  ;;  %v13961_v61 = vand.u32 4294901760, %v2989_v56 }
 0x1df   :  { %16259 = vst [vmem:[#allocation34_spill] sm:$0xff] %v13834_v28  ;;  %v3261_v54 = vsub.f32 %v13820_v62, %v13832_v23  ;;  %v13860_v37 = vand.u32 4294901760, %v13834_v28  ;;  %11815 = vmatprep.subr.mxu0 %v13832_v23  ;;  %v13920_v11 = vand.u32 4294901760, %v13868_v38  ;;  %16272 = vst [vmem:[#allocation47_spill] sm:$0xff] %v13925_v13  ;;  %v3277_v40 = vsub.f32 %v13845_v20, %v13899_v49 }
 0x1e0   :  { %11816 = vmatpush3.msra.mxu0 %v13832_v23  ;;  %v13877_v41 = vpop.f32.mrf.mxu1  ;;  %16270 = vst [vmem:[#allocation45_spill] sm:$0xff] %v13913_v1  ;;  %16274 = vst [vmem:[#allocation49_spill] sm:$0xff] %v13942_v25  ;;  %v13959_v53 = vsub.f32 %v2983_v5, %v13913_v1  ;;  %v13967_v19 = vand.u32 4294901760, %v3108_v51  ;;  %v13975_v5 = vsub.f32 %v2986_v22, %v13925_v13 }
 0x1e1   :  { %v13881_v0 = vsub.f32 %v13834_v28, %v13860_v37  ;;  %11817 = vmatprep.subr.mxu0 %v13860_v37  ;;  %v13884_v42 = vand.u32 4294901760, %v3261_v54  ;;  %16275 = vst [vmem:[#allocation50_spill] sm:$0xff] %v13947_v6  ;;  %16279 = vst [vmem:[#allocation54_spill] sm:$0xff] %v13961_v61  ;;  %v3128_v51 = vsub.f32 %v13872_v29, %v13939_v59  ;;  %v3278_v22 = vand.u32 4294901760, %v3277_v40 }
 0x1e2   :  { %11818 = vmatpush3.msra.mxu0 %v13860_v37  ;;  %v13904_v30 = vpop.f32.mrf.mxu1  ;;  %16278 = vst [vmem:[#allocation53_spill] sm:$0xff] %v13959_v53  ;;  %16280 = vst [vmem:[#allocation55_spill] sm:$0xff] %v13967_v19  ;;  %v3001_v40 = vsel %vm1510_vm4, %v89_v2, 0 }
 0x1e3   :  { %16269 = vst [vmem:[#allocation44_spill] sm:$0xff] %v13904_v30  ;;  %11819 = vmatprep.subr.mxu0 %v13809_v7  ;;  %v3263_v8 = vsub.f32 %v3261_v54, %v13884_v42  ;;  %v13909_v60 = vand.u32 4294901760, %v13881_v0  ;;  %16282 = vst [vmem:[#allocation57_spill] sm:$0xff] %v13975_v5  ;;  %v3138_v30 = vsub.f32 %v13902_v63, %v13947_v6  ;;  %v90_v6 = vld [vmem:[%s16242_s27 + $0x78] sm:$0xff]  ;;  %v14021_v2 = vand.u32 4294901760, %v3128_v51 }
 0x1e4   :  { %11820 = vmatpush3.msra.mxu0 %v13809_v7  ;;  %v13931_v17 = vpop.f32.mrf.mxu1 }
 0x1e5   :  { %11821 = vmatprep.subr.mxu0 %v13827_v9  ;;  %v3264_v24 = vand.u32 4294901760, %v3263_v8  ;;  %v3270_v32 = vsub.f32 %v13881_v0, %v13909_v60  ;;  %v2992_v8 = vsel %vm1510_vm4, %v86_v4, 0  ;;  %v88_v4 = vld [vmem:[%s16242_s27 + $0x68] sm:$0xff]  ;;  %16291 = vst [vmem:[#allocation66_spill] sm:$0xff] %v14021_v2  ;;  %s12979_s27 = smov 32  }
 0x1e6   :  { %11822 = vmatpush3.msra.mxu0 %v13827_v9  ;;  %v13955_v47 = vpop.f32.mrf.mxu1  ;;  %v13986_v50 = vand.u32 4294901760, %v2992_v8 }
 0x1e7   :  { %16277 = vst [vmem:[#allocation52_spill] sm:$0xff] %v13955_v47  ;;  %11824 = vmatmul.mubr.f32.vlgmr.msra.gmra.mxu0 %v13894_v14  ;;  %11847 = vmatprep.subr.mxu1 %v3264_v24  ;;  %v3271_v26 = vand.u32 4294901760, %v3270_v32  ;;  %v3284_v14 = vsub.f32 %v13868_v38, %v13920_v11  ;;  %v13972_v32 = vand.u32 4294901760, %v13923_v31  ;;  %v13993_v47 = vand.u32 4294901760, %v2995_v39 }
 0x1e8   :  { %11879 = vmatprep.subr.mxu0 %v3261_v54  ;;  %11848 = vmatpush3.msra.mxu1 %v3264_v24  ;;  %v11705_v62 = vpop.f32.mrf.mxu0  ;;  %v13980_v28 = vpop.f32.mrf.mxu1  ;;  %v13982_v24 = vand.u32 4294901760, %v3118_v27  ;;  %16284 = vst [vmem:[#allocation59_spill] sm:$0xff] %v13986_v50 }
 0x1e9   :  { %16281 = vst [vmem:[#allocation56_spill] sm:$0xff] %v13972_v32  ;;  %11880 = vmatpush3.msra.mxu0 %v3261_v54  ;;  %11849 = vmatprep.subr.mxu1 %v3271_v26  ;;  %v2258_v10 = vadd.f32 %v11705_v62, %v13953_v33  ;;  %16285 = vst [vmem:[#allocation60_spill] sm:$0xff] %v13993_v47  ;;  %v2998_v54 = vsel %vm1510_vm4, %v88_v4, 0  ;;  %v14002_v62 = vand.u32 4294901760, %v13959_v53 }
 0x1ea   :  { %16283 = vst [vmem:[#allocation58_spill] sm:$0xff] %v13982_v24  ;;  %11881 = vmatprep.subr.mxu0 %v13881_v0  ;;  %11826 = vmatprep.mubr.f32.mxu0 %v13942_v25  ;;  %v13996_v27 = vpop.f32.mrf.mxu0  ;;  %v13998_v34 = vpop.f32.mrf.mxu1  ;;  %v14005_v25 = vsub.f32 %v2989_v56, %v13961_v61 }
 0x1eb   :  { %16286 = vst [vmem:[#allocation61_spill] sm:$0xff] %v13996_v27  ;;  %16287 = vst [vmem:[#allocation62_spill] sm:$0xff] %v13998_v34  ;;  %11850 = vmatpush3.msra.mxu1 %v3271_v26  ;;  %11882 = vmatpush3.msra.mxu0 %v13881_v0  ;;  %v14012_v4 = vadd.f32 %v13877_v41, %v2258_v10  ;;  %v3285_v26 = vand.u32 4294901760, %v3284_v14  ;;  %v3148_v0 = vsub.f32 %v13923_v31, %v13972_v32 }
 0x1ec   :  { %16288 = vst [vmem:[#allocation63_spill] sm:$0xff] %v14002_v62  ;;  %16289 = vst [vmem:[#allocation64_spill] sm:$0xff] %v14005_v25  ;;  %11827 = vmatmul.mubr.f32.gmra.mxu0 %v13967_v19  ;;  %11851 = vmatprep.subr.mxu1 %v3278_v22  ;;  %v14018_v27 = vand.u32 4294901760, %v13975_v5  ;;  %v11708_v56 = vpop.f32.mrf.mxu0  ;;  %v14024_v34 = vsub.f32 %v2992_v8, %v13986_v50  ;;  %v14026_v10 = vand.u32 4294901760, %v2998_v54  ;;  %v14033_v19 = vand.u32 4294901760, %v3001_v40 }
 0x1ed   :  { %11883 = vmatprep.subr.mxu0 %v13845_v20  ;;  %11852 = vmatpush3.msra.mxu1 %v3278_v22  ;;  %v2278_v41 = vadd.f32 %v11708_v56, %v13953_v33  ;;  %v14031_v14 = vsub.f32 %v2995_v39, %v13993_v47  ;;  %v3004_v32 = vsel %vm1510_vm4, %v90_v6, 0  ;;  %v14040_v8 = vand.u32 4294901760, %v3138_v30 }
 0x1ee   :  { %16290 = vst [vmem:[#allocation65_spill] sm:$0xff] %v14018_v27  ;;  %16292 = vst [vmem:[#allocation67_spill] sm:$0xff] %v14024_v34  ;;  %11884 = vmatpush3.msra.mxu0 %v13845_v20  ;;  %11853 = vmatprep.subr.mxu1 %v3285_v26  ;;  %v14036_v22 = vpop.f32.mrf.mxu0  ;;  %v11734_v51 = vpop.f32.mrf.mxu1  ;;  %v3158_v20 = vsub.f32 %v13959_v53, %v14002_v62  ;;  %v14045_v56 = vand.u32 4294901760, %v14005_v25  ;;  %v14051_v6 = vand.u32 4294901760, %v3148_v0  ;;  %v14060_v62 = vand.u32 4294901760, %v14024_v34 }
 0x1ef   :  { %16293 = vst [vmem:[#allocation68_spill] sm:$0xff] %v14026_v10  ;;  %16294 = vst [vmem:[#allocation69_spill] sm:$0xff] %v14031_v14  ;;  %11885 = vmatprep.subr.mxu0 %v13868_v38  ;;  %11829 = vmatprep.mubr.f32.mxu0 %v13982_v24  ;;  %v14048_v39 = vadd.f32 %v13931_v17, %v2278_v41  ;;  %v14063_v17 = vsub.f32 %v2998_v54, %v14026_v10  ;;  %v14071_v0 = vand.u32 4294901760, %v14031_v14 }
 0x1f0   :  { %16295 = vst [vmem:[#allocation70_spill] sm:$0xff] %v14033_v19  ;;  %16296 = vst [vmem:[#allocation71_spill] sm:$0xff] %v14036_v22  ;;  %11854 = vmatpush3.msra.mxu1 %v3285_v26  ;;  %11886 = vmatpush3.msra.mxu0 %v13868_v38  ;;  %v3168_v22 = vsub.f32 %v13975_v5, %v14018_v27  ;;  %v11711_v24 = vpop.f32.mrf.mxu0  ;;  %v14055_v30 = vpop.f32.mrf.mxu1  ;;  %v14065_v26 = vand.u32 4294901760, %v3004_v32  ;;  %v14074_v41 = vsub.f32 %v3001_v40, %v14033_v19 }
 0x1f1   :  { %16297 = vst [vmem:[#allocation72_spill] sm:$0xff] %v14040_v8  ;;  %16298 = vst [vmem:[#allocation73_spill] sm:$0xff] %v14045_v56  ;;  %11830 = vmatmul.mubr.f32.gmra.mxu0 %v14021_v2  ;;  %11856 = vmatmul.mubr.f32.vlgmr.msra.gmra.mxu1 %v13780_v52  ;;  %v2298_v38 = vadd.f32 %v11711_v24, %v13953_v33  ;;  %v14080_v54 = vand.u32 4294901760, %v3158_v20  ;;  %v3178_v24 = vsub.f32 %v14005_v25, %v14045_v56 }
 0x1f2   :  { %16299 = vst [vmem:[#allocation74_spill] sm:$0xff] %v14051_v6  ;;  %16300 = vst [vmem:[#allocation75_spill] sm:$0xff] %v14055_v30  ;;  %11911 = vmatprep.subr.mxu1 %v13832_v23  ;;  %11943 = vmatprep.subr.mxu0 %v13884_v42  ;;  %v14076_v2 = vpop.f32.mrf.mxu0  ;;  %v11765_v30 = vpop.f32.mrf.mxu1  ;;  %v14087_v40 = vand.u32 4294901760, %v3168_v22  ;;  %v3188_v20 = vsub.f32 %v14024_v34, %v14060_v62  ;;  %v3198_v22 = vsub.f32 %v14031_v14, %v14071_v0 }
 0x1f3   :  { %16301 = vst [vmem:[#allocation76_spill] sm:$0xff] %v14060_v62  ;;  %16302 = vst [vmem:[#allocation77_spill] sm:$0xff] %v14063_v17  ;;  %11912 = vmatpush3.msra.mxu1 %v13832_v23  ;;  %11832 = vmatprep.mubr.f32.mxu0 %v14040_v8  ;;  %v2439_v52 = vadd.f32 %v13980_v28, %v2298_v38  ;;  %v14096_v8 = vand.u32 4294901760, %v14063_v17  ;;  %v14099_v28 = vsub.f32 %v3004_v32, %v14065_v26 }
 0x1f4   :  { %16303 = vst [vmem:[#allocation78_spill] sm:$0xff] %v14065_v26  ;;  %16304 = vst [vmem:[#allocation79_spill] sm:$0xff] %v14071_v0  ;;  %11913 = vmatprep.subr.mxu1 %v13860_v37  ;;  %11858 = vmatprep.mubr.f32.mxu1 %v13791_v35  ;;  %v11714_v27 = vpop.f32.mrf.mxu0  ;;  %v14113_v32 = vand.u32 4294901760, %v3178_v24 }
 0x1f5   :  { %16305 = vst [vmem:[#allocation80_spill] sm:$0xff] %v14074_v41  ;;  %16306 = vst [vmem:[#allocation81_spill] sm:$0xff] %v14076_v2  ;;  %v14089_v2 = vpop.f32.mrf.mxu1  ;;  %11914 = vmatpush3.msra.mxu1 %v13860_v37  ;;  %11833 = vmatmul.mubr.f32.gmra.mxu0 %v14051_v6  ;;  %v2318_v38 = vadd.f32 %v11714_v27, %v13953_v33  ;;  %v14107_v6 = vand.u32 4294901760, %v14074_v41  ;;  %v3208_v0 = vsub.f32 %v14063_v17, %v14096_v8 }
 0x1f6   :  { %16307 = vst [vmem:[#allocation82_spill] sm:$0xff] %v14080_v54  ;;  %16308 = vst [vmem:[#allocation83_spill] sm:$0xff] %v14087_v40  ;;  %11859 = vmatmul.mubr.f32.gmra.mxu1 %v13798_v57  ;;  %11915 = vmatprep.subr.mxu1 %v13809_v7  ;;  %v14126_v24 = vand.u32 4294901760, %v14099_v28 }
 0x1f7   :  { %16309 = vst [vmem:[#allocation84_spill] sm:$0xff] %v14089_v2  ;;  %16310 = vst [vmem:[#allocation85_spill] sm:$0xff] %v14096_v8  ;;  %v14109_v2 = vpop.f32.mrf.mxu0  ;;  %v11768_v35 = vpop.f32.mrf.mxu1  ;;  %11916 = vmatpush3.msra.mxu1 %v13809_v7  ;;  %11835 = vmatprep.mubr.f32.mxu0 %v14080_v54  ;;  %v2451_v27 = vadd.f32 %v11734_v51, %v2318_v38  ;;  %v14131_v38 = vand.u32 4294901760, %v3198_v22  ;;  %v3218_v54 = vsub.f32 %v14074_v41, %v14107_v6 }
 0x1f8   :  { %16311 = vst [vmem:[#allocation86_spill] sm:$0xff] %v14099_v28  ;;  %16312 = vst [vmem:[#allocation87_spill] sm:$0xff] %v14107_v6  ;;  %11917 = vmatprep.subr.mxu1 %v13827_v9  ;;  %11861 = vmatprep.mubr.f32.mxu1 %v13800_v21 }
 0x1f9   :  { %16313 = vst [vmem:[#allocation88_spill] sm:$0xff] %v14109_v2  ;;  %16314 = vst [vmem:[#allocation89_spill] sm:$0xff] %v14113_v32  ;;  %v11745_v33 = vpop.f32.mrf.mxu0  ;;  %v14117_v57 = vpop.f32.mrf.mxu1  ;;  %11918 = vmatpush3.msra.mxu1 %v13827_v9  ;;  %11836 = vmatmul.mubr.f32.gmra.mxu0 %v14087_v40  ;;  %v14121_v2 = vand.u32 4294901760, %v3188_v20 }
 0x1fa   :  { %16315 = vst [vmem:[#allocation90_spill] sm:$0xff] %v14117_v57  ;;  %16317 = vst [vmem:[#allocation92_spill] sm:$0xff] %v14126_v24  ;;  %v2538_v51 = vadd.f32 %v11745_v33, %v14012_v4  ;;  %11862 = vmatmul.mubr.f32.gmra.mxu1 %v13829_v15  ;;  %11975 = vmatprep.subr.mxu1 %v13832_v23  ;;  %v14142_v33 = vand.u32 4294901760, %v3208_v0  ;;  %v3228_v4 = vsub.f32 %v14099_v28, %v14126_v24 }
 0x1fb   :  { %16316 = vst [vmem:[#allocation91_spill] sm:$0xff] %v14121_v2  ;;  %16318 = vst [vmem:[#allocation93_spill] sm:$0xff] %v14131_v38  ;;  %v14135_v40 = vpop.f32.mrf.mxu0  ;;  %v11771_v20 = vpop.f32.mrf.mxu1  ;;  %11838 = vmatprep.mubr.f32.mxu0 %v14113_v32  ;;  %11864 = vmatprep.mubr.f32.mxu1 %v13852_v58  ;;  %v14149_v32 = vand.u32 4294901760, %v3218_v54 }
 0x1fc   :  { %16319 = vst [vmem:[#allocation94_spill] sm:$0xff] %v14135_v40  ;;  %v2665_v57 = vadd.f32 %v11765_v30, %v2538_v51  ;;  %16321 = vst [vmem:[#allocation96_spill] sm:$0xff] %v14142_v33 }
 0x1fd   :  { %v11748_v21 = vpop.f32.mrf.mxu0  ;;  %v14139_v8 = vpop.f32.mrf.mxu1  ;;  %11839 = vmatmul.mubr.f32.gmra.mxu0 %v14121_v2  ;;  %16322 = vst [vmem:[#allocation97_spill] sm:$0xff] %v14149_v32 }
 0x1fe   :  { %16320 = vst [vmem:[#allocation95_spill] sm:$0xff] %v14139_v8  ;;  %v2552_v22 = vadd.f32 %v11748_v21, %v14048_v39  ;;  %11865 = vmatmul.mubr.f32.gmra.mxu1 %v13874_v48  ;;  %11841 = vmatprep.mubr.f32.mxu0 %v14131_v38  ;;  %v14157_v8 = vand.u32 4294901760, %v3228_v4 }
 0x1ff   :  { %v14151_v40 = vpop.f32.mrf.mxu0  ;;  %v11774_v30 = vpop.f32.mrf.mxu1  ;;  %11867 = vmatprep.mubr.f32.mxu1 %v13913_v1 }
 0x200   :  { %16323 = vst [vmem:[#allocation98_spill] sm:$0xff] %v14151_v40  ;;  %v2681_v51 = vadd.f32 %v11768_v35, %v2552_v22  ;;  %16325 = vst [vmem:[#allocation100_spill] sm:$0xff] %v14157_v8 }
 0x201   :  { %v11751_v2 = vpop.f32.mrf.mxu0  ;;  %v14154_v0 = vpop.f32.mrf.mxu1  ;;  %11842 = vmatmul.mubr.f32.gmra.mxu0 %v14142_v33 }
 0x202   :  { %16324 = vst [vmem:[#allocation99_spill] sm:$0xff] %v14154_v0  ;;  %v2566_v21 = vadd.f32 %v11751_v2, %v2439_v52  ;;  %11868 = vmatmul.mubr.f32.gmra.mxu1 %v13925_v13  ;;  %11844 = vmatprep.mubr.f32.mxu0 %v14149_v32 }
 0x203   :  { %v14161_v39 = vpop.f32.mrf.mxu0  ;;  %11870 = vmatprep.mubr.f32.mxu1 %v13961_v61  ;;  %v11805_v38 = vpop.f32.mrf.mxu1 }
 0x204   :  { %16326 = vst [vmem:[#allocation101_spill] sm:$0xff] %v14161_v39  ;;  %v2697_v54 = vadd.f32 %v11771_v20, %v2566_v21 }
 0x205   :  { %v11754_v40 = vpop.f32.mrf.mxu0  ;;  %11845 = vmatmul.mubr.f32.gmra.mxu0 %v14157_v8  ;;  %v14165_v22 = vpop.f32.mrf.mxu1 }
 0x206   :  { %v2580_v35 = vadd.f32 %v11754_v40, %v2451_v27  ;;  %16327 = vst [vmem:[#allocation102_spill] sm:$0xff] %v14165_v22  ;;  %11871 = vmatmul.mubr.f32.gmra.mxu1 %v13986_v50  ;;  %11887 = vmatprep.mubr.f32.mxu0 %v13756_v55 }
 0x207   :  { %v14169_v52 = vpop.f32.mrf.mxu0  ;;  %11873 = vmatprep.mubr.f32.mxu1 %v13993_v47  ;;  %v11808_v4 = vpop.f32.mrf.mxu1 }
 0x208   :  { %16328 = vst [vmem:[#allocation103_spill] sm:$0xff] %v14169_v52  ;;  %v2713_v2 = vadd.f32 %v11774_v30, %v2580_v35 }
 0x209   :  { %v11785_v32 = vpop.f32.mrf.mxu0  ;;  %11888 = vmatmul.mubr.f32.vlgmr.msra.gmra.mxu0 %v13789_v18  ;;  %v14177_v27 = vpop.f32.mrf.mxu1 }
 0x20a   :  { %v2802_v20 = vadd.f32 %v11785_v32, %v2665_v57  ;;  %11874 = vmatmul.mubr.f32.gmra.mxu1 %v14026_v10  ;;  %11944 = vmatpush3.msra.mxu0 %v13884_v42  ;;  %16330 = vst [vmem:[#allocation105_spill] sm:$0xff] %v14177_v27 }
 0x20b   :  { %v14175_v40 = vpop.f32.mrf.mxu0  ;;  %11945 = vmatprep.subr.mxu0 %v13909_v60  ;;  %11876 = vmatprep.mubr.f32.mxu1 %v14033_v19  ;;  %v11811_v32 = vpop.f32.mrf.mxu1 }
 0x20c   :  { %16329 = vst [vmem:[#allocation104_spill] sm:$0xff] %v14175_v40  ;;  %v14181_v21 = vadd.f32 %v11805_v38, %v2802_v20  ;;  %11946 = vmatpush3.msra.mxu0 %v13909_v60  ;;  %11890 = vmatprep.mubr.f32.mxu0 %v13815_v44 }
 0x20d   :  { %v11788_v30 = vpop.f32.mrf.mxu0  ;;  %11947 = vmatprep.subr.mxu0 %v13899_v49  ;;  %11891 = vmatmul.mubr.f32.gmra.mxu0 %v13823_v16  ;;  %v14202_v35 = vpop.f32.mrf.mxu1 }
 0x20e   :  { %v2814_v57 = vadd.f32 %v11788_v30, %v2681_v51  ;;  %11877 = vmatmul.mubr.f32.gmra.mxu1 %v14065_v26  ;;  %11948 = vmatpush3.msra.mxu0 %v13899_v49  ;;  %16333 = vst [vmem:[#allocation108_spill] sm:$0xff] %v14202_v35  ;;  %v16337_v30 = vld [vmem:[#allocation65_spill] sm:$0xff] }
 0x20f   :  { %v14189_v42 = vpop.f32.mrf.mxu0  ;;  %11949 = vmatprep.subr.mxu0 %v13920_v11  ;;  %11893 = vmatprep.mubr.f32.mxu0 %v13837_v45  ;;  %v11814_v20 = vpop.f32.mrf.mxu1 }
 0x210   :  { %16331 = vst [vmem:[#allocation106_spill] sm:$0xff] %v14189_v42  ;;  %v14193_v60 = vadd.f32 %v11808_v4, %v2814_v57  ;;  %11950 = vmatpush3.msra.mxu0 %v13920_v11  ;;  %11919 = vmatprep.mubr.f32.mxu1 %v13760_v3  ;;  %v16339_v57 = vld [vmem:[#allocation79_spill] sm:$0xff] }
 0x211   :  { %v11791_v38 = vpop.f32.mrf.mxu0  ;;  %11894 = vmatmul.mubr.f32.gmra.mxu0 %v13872_v29 }
 0x212   :  { %v2826_v51 = vadd.f32 %v11791_v38, %v2697_v54  ;;  %11920 = vmatmul.mubr.f32.vlgmr.msra.gmra.mxu1 %v13812_v12  ;;  %11896 = vmatprep.mubr.f32.mxu0 %v13902_v63  ;;  %v16341_v38 = vld [vmem:[#allocation85_spill] sm:$0xff] }
 0x213   :  { %v14200_v49 = vpop.f32.mrf.mxu0  ;;  %11976 = vmatpush3.msra.mxu1 %v13832_v23  ;;  %11922 = vmatprep.mubr.f32.mxu1 %v13850_v36 }
 0x214   :  { %16332 = vst [vmem:[#allocation107_spill] sm:$0xff] %v14200_v49  ;;  %v14206_v4 = vadd.f32 %v11811_v32, %v2826_v51  ;;  %11977 = vmatprep.subr.mxu1 %v13860_v37  ;;  %v16340_v32 = vld [vmem:[#allocation22_spill] sm:$0xff]  ;;  %v16342_v51 = vld [vmem:[#allocation24_spill] sm:$0xff] }
 0x215   :  { %v11794_v11 = vpop.f32.mrf.mxu0  ;;  %11978 = vmatpush3.msra.mxu1 %v13860_v37  ;;  %11897 = vmatmul.mubr.f32.gmra.mxu0 %v13923_v31  ;;  %v16334_v37 = vld [vmem:[#allocation50_spill] sm:$0xff] }
 0x216   :  { %v2838_v54 = vadd.f32 %v11794_v11, %v2713_v2  ;;  %11979 = vmatprep.subr.mxu1 %v13809_v7  ;;  %11923 = vmatmul.mubr.f32.gmra.mxu1 %v13864_v43  ;;  %v16336_v2 = vld [vmem:[#allocation63_spill] sm:$0xff]  ;;  %v16343_v11 = vld [vmem:[#allocation26_spill] sm:$0xff] }
 0x217   :  { %11980 = vmatpush3.msra.mxu1 %v13809_v7  ;;  %11899 = vmatprep.mubr.f32.mxu0 %v13959_v53  ;;  %v16335_v7 = vld [vmem:[#allocation56_spill] sm:$0xff] }
 0x218   :  { %v14215_v23 = vadd.f32 %v11814_v20, %v2838_v54  ;;  %11981 = vmatprep.subr.mxu1 %v13827_v9  ;;  %11925 = vmatprep.mubr.f32.mxu1 %v13887_v46  ;;  %v16344_v54 = vld [vmem:[#allocation27_spill] sm:$0xff]  ;;  %v14270_v20 = vpop.f32.mrf.mxu0 }
 0x219   :  { %11982 = vmatpush3.msra.mxu1 %v13827_v9  ;;  %11900 = vmatmul.mubr.f32.gmra.mxu0 %v13975_v5  ;;  %v16338_v9 = vld [vmem:[#allocation18_spill] sm:$0xff]  ;;  %16345 = vst [vmem:[#allocation109_spill] sm:$0xff] %v14270_v20 }
 0x21a   :  { %11926 = vmatmul.mubr.f32.gmra.mxu1 %v13939_v59  ;;  %11902 = vmatprep.mubr.f32.mxu0 %v14005_v25 }
 0x21b   :  { %11928 = vmatprep.mubr.f32.mxu1 %v16334_v37 }
 0x21d   :  { %11903 = vmatmul.mubr.f32.gmra.mxu0 %v14024_v34 }
 0x21e   :  { %11929 = vmatmul.mubr.f32.gmra.mxu1 %v16335_v7  ;;  %11905 = vmatprep.mubr.f32.mxu0 %v14031_v14 }
 0x21f   :  { %11931 = vmatprep.mubr.f32.mxu1 %v16336_v2 }
 0x221   :  { %11906 = vmatmul.mubr.f32.gmra.mxu0 %v14063_v17 }
 0x222   :  { %11932 = vmatmul.mubr.f32.gmra.mxu1 %v16337_v30  ;;  %11908 = vmatprep.mubr.f32.mxu0 %v14074_v41 }
 0x223   :  { %11934 = vmatprep.mubr.f32.mxu1 %v14045_v56 }
 0x225   :  { %11909 = vmatmul.mubr.f32.gmra.mxu0 %v14099_v28 }
 0x226   :  { %11935 = vmatmul.mubr.f32.gmra.mxu1 %v14060_v62  ;;  %11951 = vmatprep.mubr.f32.mxu0 %v16338_v9  ;;  %v14276_v62 = vpop.f32.mrf.mxu1 }
 0x227   :  { %11937 = vmatprep.mubr.f32.mxu1 %v16339_v57  ;;  %16348 = vst [vmem:[#allocation112_spill] sm:$0xff] %v14276_v62 }
 0x229   :  { %11952 = vmatmul.mubr.f32.vlgmr.msra.gmra.mxu0 %v16340_v32 }
 0x22a   :  { %11938 = vmatmul.mubr.f32.gmra.mxu1 %v16341_v38  ;;  %11954 = vmatprep.mubr.f32.mxu0 %v16342_v51 }
 0x22b   :  { %11940 = vmatprep.mubr.f32.mxu1 %v14107_v6 }
 0x22d   :  { %11955 = vmatmul.mubr.f32.gmra.mxu0 %v16343_v11 }
 0x22e   :  { %11941 = vmatmul.mubr.f32.gmra.mxu1 %v14126_v24  ;;  %11957 = vmatprep.mubr.f32.mxu0 %v16344_v54 }
 0x22f   :  { %11983 = vmatprep.mubr.f32.mxu1 %v16338_v9 }
 0x231   :  { %11958 = vmatmul.mubr.f32.gmra.mxu0 %v13829_v15 }
 0x232   :  { %11984 = vmatmul.mubr.f32.vlgmr.msra.gmra.mxu1 %v16340_v32  ;;  %11960 = vmatprep.mubr.f32.mxu0 %v13852_v58 }
 0x233   :  { %11986 = vmatprep.mubr.f32.mxu1 %v16342_v51 }
 0x235   :  { %11961 = vmatmul.mubr.f32.gmra.mxu0 %v13874_v48 }
 0x236   :  { %11987 = vmatmul.mubr.f32.gmra.mxu1 %v16343_v11  ;;  %11963 = vmatprep.mubr.f32.mxu0 %v13913_v1 }
 0x237   :  { %11989 = vmatprep.mubr.f32.mxu1 %v16344_v54 }
 0x239   :  { %11964 = vmatmul.mubr.f32.gmra.mxu0 %v13925_v13 }
 0x23a   :  { %11990 = vmatmul.mubr.f32.gmra.mxu1 %v13829_v15  ;;  %11966 = vmatprep.mubr.f32.mxu0 %v13961_v61 }
 0x23b   :  { %11992 = vmatprep.mubr.f32.mxu1 %v13852_v58 }
 0x23d   :  { %11967 = vmatmul.mubr.f32.gmra.mxu0 %v13986_v50 }
 0x23e   :  { %11993 = vmatmul.mubr.f32.gmra.mxu1 %v13874_v48  ;;  %11969 = vmatprep.mubr.f32.mxu0 %v13993_v47 }
 0x23f   :  { %11995 = vmatprep.mubr.f32.mxu1 %v13913_v1 }
 0x241   :  { %11970 = vmatmul.mubr.f32.gmra.mxu0 %v14026_v10 }
 0x242   :  { %11996 = vmatmul.mubr.f32.gmra.mxu1 %v13925_v13  ;;  %11972 = vmatprep.mubr.f32.mxu0 %v14033_v19 }
 0x243   :  { %11998 = vmatprep.mubr.f32.mxu1 %v13961_v61 }
 0x245   :  { %11973 = vmatmul.mubr.f32.gmra.mxu0 %v14065_v26 }
 0x246   :  { %11999 = vmatmul.mubr.f32.gmra.mxu1 %v13986_v50 }
 0x247   :  { %12001 = vmatprep.mubr.f32.mxu1 %v13993_v47 }
 0x24a   :  { %12002 = vmatmul.mubr.f32.gmra.mxu1 %v14026_v10 }
 0x24b   :  { %12004 = vmatprep.mubr.f32.mxu1 %v14033_v19 }
 0x24e   :  { %12005 = vmatmul.mubr.f32.gmra.mxu1 %v14065_v26 }
 0x2a7   :  { %v11825_v24 = vpop.f32.mrf.mxu0 }
 0x2a9   :  { %v14272_v6 = vpop.f32.mrf.mxu0 }
 0x2aa   :  { %16346 = vst [vmem:[#allocation110_spill] sm:$0xff] %v14272_v6 }
 0x2ac   :  { %v11828_v38 = vpop.f32.mrf.mxu0 }
 0x2ae   :  { %v14274_v57 = vpop.f32.mrf.mxu0 }
 0x2af   :  { %16347 = vst [vmem:[#allocation111_spill] sm:$0xff] %v14274_v57 }
 0x2b1   :  { %v11831_v28 = vpop.f32.mrf.mxu0  ;;  %v11857_v56 = vpop.f32.mrf.mxu1 }
 0x2b2   :  { %v3329_v41 = vadd.f32 %v11857_v56, %v11825_v24 }
 0x2b3   :  { %v14278_v30 = vpop.f32.mrf.mxu0  ;;  %v14280_v17 = vpop.f32.mrf.mxu1 }
 0x2b4   :  { %16349 = vst [vmem:[#allocation113_spill] sm:$0xff] %v14280_v17 }
 0x2b5   :  { %v11834_v2 = vpop.f32.mrf.mxu0 }
 0x2b6   :  { %v11860_v14 = vpop.f32.mrf.mxu1 }
 0x2b7   :  { %v3341_v7 = vadd.f32 %v11860_v14, %v11828_v38  ;;  %v14282_v34 = vpop.f32.mrf.mxu0 }
 0x2b8   :  { %v14284_v37 = vpop.f32.mrf.mxu1 }
 0x2b9   :  { %16350 = vst [vmem:[#allocation114_spill] sm:$0xff] %v14284_v37  ;;  %v11837_v25 = vpop.f32.mrf.mxu0 }
 0x2ba   :  { %v11863_v59 = vpop.f32.mrf.mxu1 }
 0x2bb   :  { %v3353_v5 = vadd.f32 %v11863_v59, %v11831_v28  ;;  %v14286_v46 = vpop.f32.mrf.mxu0 }
 0x2bc   :  { %v14288_v53 = vpop.f32.mrf.mxu1 }
 0x2bd   :  { %v11840_v43 = vpop.f32.mrf.mxu0 }
 0x2be   :  { %v11866_v56 = vpop.f32.mrf.mxu1 }
 0x2bf   :  { %v14290_v24 = vadd.f32 %v11866_v56, %v11834_v2  ;;  %v14292_v31 = vpop.f32.mrf.mxu0 }
 0x2c0   :  { %v14294_v36 = vpop.f32.mrf.mxu1 }
 0x2c1   :  { %v14296_v14 = vpop.f32.mrf.mxu0 }
 0x2c2   :  { %v11869_v38 = vpop.f32.mrf.mxu1 }
 0x2c3   :  { %v14298_v63 = vadd.f32 %v11869_v38, %v11837_v25  ;;  %v14300_v12 = vpop.f32.mrf.mxu0 }
 0x2c4   :  { %v14302_v59 = vpop.f32.mrf.mxu1 }
 0x2c5   :  { %v14304_v28 = vpop.f32.mrf.mxu0 }
 0x2c6   :  { %v11872_v29 = vpop.f32.mrf.mxu1 }
 0x2c7   :  { %v14306_v3 = vadd.f32 %v11872_v29, %v11840_v43  ;;  %v14308_v2 = vpop.f32.mrf.mxu0 }
 0x2c8   :  { %v14310_v56 = vpop.f32.mrf.mxu1 }
 0x2c9   :  { %v11889_v45 = vpop.f32.mrf.mxu0 }
 0x2ca   :  { %v14312_v26 = vpop.f32.mrf.mxu1  ;;  %v3500_v16 = vadd.f32 %v11889_v45, %v3329_v41 }
 0x2cb   :  { %v14314_v44 = vpop.f32.mrf.mxu0 }
 0x2cc   :  { %16351 = vst [vmem:[#allocation115_spill] sm:$0xff] %v14314_v44  ;;  %v14316_v25 = vpop.f32.mrf.mxu1 }
 0x2cd   :  { %v11892_v38 = vpop.f32.mrf.mxu0 }
 0x2ce   :  { %v14318_v19 = vpop.f32.mrf.mxu1  ;;  %v3514_v10 = vadd.f32 %v11892_v38, %v3341_v7 }
 0x2cf   :  { %v14320_v18 = vpop.f32.mrf.mxu0 }
 0x2d0   :  { %16352 = vst [vmem:[#allocation116_spill] sm:$0xff] %v14320_v18  ;;  %v14322_v43 = vpop.f32.mrf.mxu1 }
 0x2d1   :  { %v11895_v29 = vpop.f32.mrf.mxu0 }
 0x2d2   :  { %v3528_v47 = vadd.f32 %v11895_v29, %v3353_v5  ;;  %v11921_v55 = vpop.f32.mrf.mxu1 }
 0x2d3   :  { %v3683_v50 = vadd.f32 %v11921_v55, %v3500_v16  ;;  %v14324_v8 = vpop.f32.mrf.mxu0 }
 0x2d4   :  { %v14326_v61 = vpop.f32.mrf.mxu1 }
 0x2d5   :  { %16353 = vst [vmem:[#allocation117_spill] sm:$0xff] %v14326_v61  ;;  %v11898_v45 = vpop.f32.mrf.mxu0 }
 0x2d6   :  { %v11924_v41 = vpop.f32.mrf.mxu1 }
 0x2d7   :  { %v3699_v13 = vadd.f32 %v11924_v41, %v3514_v10  ;;  %v14328_v33 = vpop.f32.mrf.mxu0 }
 0x2d8   :  { %v14330_v1 = vpop.f32.mrf.mxu1 }
 0x2d9   :  { %16354 = vst [vmem:[#allocation118_spill] sm:$0xff] %v14330_v1  ;;  %v14332_v7 = vpop.f32.mrf.mxu0 }
 0x2da   :  { %v11927_v38 = vpop.f32.mrf.mxu1 }
 0x2db   :  { %v3715_v48 = vadd.f32 %v11927_v38, %v3528_v47  ;;  %v14334_v58 = vpop.f32.mrf.mxu0 }
 0x2dc   :  { %v14336_v5 = vpop.f32.mrf.mxu1 }
 0x2dd   :  { %v14338_v55 = vpop.f32.mrf.mxu0 }
 0x2de   :  { %v11930_v16 = vpop.f32.mrf.mxu1 }
 0x2df   :  { %v14340_v29 = vpop.f32.mrf.mxu0 }
 0x2e0   :  { %v14342_v15 = vpop.f32.mrf.mxu1 }
 0x2e1   :  { %v11907_v10 = vpop.f32.mrf.mxu0 }
 0x2e2   :  { %v14344_v41 = vpop.f32.mrf.mxu1 }
 0x2e3   :  { %v3576_v54 = vpop.f32.mrf.mxu0 }
 0x2e4   :  { %v14346_v11 = vpop.f32.mrf.mxu1 }
 0x2e5   :  { %v11910_v51 = vpop.f32.mrf.mxu0 }
 0x2e6   :  { %v14348_v32 = vpop.f32.mrf.mxu1 }
 0x2e7   :  { %v14350_v47 = vpop.f32.mrf.mxu0 }
 0x2e8   :  { %v14352_v38 = vpop.f32.mrf.mxu1 }
 0x2e9   :  { %v11953_v9 = vpop.f32.mrf.mxu0 }
 0x2ea   :  { %v11939_v22 = vpop.f32.mrf.mxu1  ;;  %v3884_v0 = vadd.f32 %v11953_v9, %v3683_v50 }
 0x2eb   :  { %v14354_v62 = vpop.f32.mrf.mxu0 }
 0x2ec   :  { %16355 = vst [vmem:[#allocation119_spill] sm:$0xff] %v14354_v62  ;;  %v3770_v27 = vpop.f32.mrf.mxu1 }
 0x2ed   :  { %v11956_v40 = vpop.f32.mrf.mxu0 }
 0x2ee   :  { %v11942_v20 = vpop.f32.mrf.mxu1  ;;  %v3896_v17 = vadd.f32 %v11956_v40, %v3699_v13 }
 0x2ef   :  { %v14356_v35 = vpop.f32.mrf.mxu0 }
 0x2f0   :  { %16356 = vst [vmem:[#allocation120_spill] sm:$0xff] %v14356_v35  ;;  %v14358_v42 = vpop.f32.mrf.mxu1 }
 0x2f1   :  { %v11959_v49 = vpop.f32.mrf.mxu0 }
 0x2f2   :  { %v11985_v52 = vpop.f32.mrf.mxu1 }
 0x2f3   :  { %v14360_v39 = vadd.f32 %v11985_v52, %v3884_v0  ;;  %v14362_v61 = vpop.f32.mrf.mxu0  ;;  %v3542_v0 = vadd.f32 %v11898_v45, %v14290_v24  ;;  %v3908_v52 = vadd.f32 %v11959_v49, %v3715_v48 }
 0x2f4   :  { %v14364_v44 = vpop.f32.mrf.mxu1 }
 0x2f5   :  { %16357 = vst [vmem:[#allocation121_spill] sm:$0xff] %v14360_v39  ;;  %16358 = vst [vmem:[#allocation122_spill] sm:$0xff] %v14364_v44  ;;  %v11962_v6 = vpop.f32.mrf.mxu0  ;;  %v14368_v62 = vadd.f32 %v14360_v39, %v14181_v21  ;;  %v3731_v44 = vadd.f32 %v11930_v16, %v3542_v0 }
 0x2f6   :  { %v11988_v1 = vpop.f32.mrf.mxu1 }
 0x2f7   :  { %16359 = vst [vmem:[#allocation123_spill] sm:$0xff] %v14368_v62  ;;  %v14370_v18 = vadd.f32 %v11988_v1, %v3896_v17  ;;  %v14372_v35 = vpop.f32.mrf.mxu0  ;;  %v3920_v17 = vadd.f32 %v11962_v6, %v3731_v44  ;;  %v3401_v44 = vadd.f32 %v14312_v26, %v14296_v14  ;;  %v3407_v14 = vadd.f32 %v14322_v43, %v14308_v2 }
 0x2f8   :  { %v14374_v50 = vpop.f32.mrf.mxu1 }
 0x2f9   :  { %16360 = vst [vmem:[#allocation124_spill] sm:$0xff] %v14370_v18  ;;  %16361 = vst [vmem:[#allocation125_spill] sm:$0xff] %v14374_v50  ;;  %v14377_v9 = vpop.f32.mrf.mxu0  ;;  %v14381_v13 = vadd.f32 %v14370_v18, %v14193_v60 }
 0x2fa   :  { %v11991_v40 = vpop.f32.mrf.mxu1 }
 0x2fb   :  { %16362 = vst [vmem:[#allocation126_spill] sm:$0xff] %v14381_v13  ;;  %v14383_v21 = vadd.f32 %v11991_v40, %v3908_v52  ;;  %v3925_v62 = vpop.f32.mrf.mxu0  ;;  %v3584_v52 = vadd.f32 %v11907_v10, %v3401_v44 }
 0x2fc   :  { %v14385_v1 = vpop.f32.mrf.mxu1 }
 0x2fd   :  { %16363 = vst [vmem:[#allocation127_spill] sm:$0xff] %v14385_v1  ;;  %v11968_v39 = vpop.f32.mrf.mxu0  ;;  %v14389_v50 = vadd.f32 %v14383_v21, %v14206_v4  ;;  %v3779_v13 = vadd.f32 %v11939_v22, %v3584_v52  ;;  %v3383_v1 = vadd.f32 %v14310_v56, %v14292_v31  ;;  %v3371_v31 = vadd.f32 %v14302_v59, %v14286_v46 }
 0x2fe   :  { %v11994_v48 = vpop.f32.mrf.mxu1  ;;  %v3359_v46 = vadd.f32 %v14294_v36, %v14282_v34 }
 0x2ff   :  { %16364 = vst [vmem:[#allocation128_spill] sm:$0xff] %v14389_v50  ;;  %v14391_v49 = vadd.f32 %v11994_v48, %v3920_v17  ;;  %v3937_v24 = vpop.f32.mrf.mxu0  ;;  %v3395_v17 = vadd.f32 %v14316_v25, %v14300_v12  ;;  %v3413_v48 = vadd.f32 %v14318_v19, %v14304_v28  ;;  %v3563_v25 = vadd.f32 %v14340_v29, %v3383_v1 }
 0x300   :  { %v14393_v45 = vpop.f32.mrf.mxu1  ;;  %v3591_v19 = vadd.f32 %v14350_v47, %v3407_v14  ;;  %v3549_v56 = vadd.f32 %v14334_v58, %v3371_v31  ;;  %v3535_v58 = vadd.f32 %v14328_v33, %v3359_v46  ;;  %v16375_v52 = vld [vmem:[#allocation125_spill] sm:$0xff] }
 0x301   :  { %v14397_v60 = vadd.f32 %v14391_v49, %v14215_v23  ;;  %v11971_v16 = vpop.f32.mrf.mxu0  ;;  %v3577_v18 = vadd.f32 %v3576_v54, %v3395_v17  ;;  %v3598_v23 = vadd.f32 %v11910_v51, %v3413_v48  ;;  %v3755_v2 = vadd.f32 %v14352_v38, %v3563_v25  ;;  %v16377_v48 = vld [vmem:[#allocation117_spill] sm:$0xff] }
 0x302   :  { %v11997_v0 = vpop.f32.mrf.mxu1  ;;  %v3723_v1 = vadd.f32 %v14342_v15, %v3535_v58  ;;  %v16381_v25 = vld [vmem:[#allocation81_spill] sm:$0xff]  ;;  %v16392_v58 = vld [vmem:[#allocation95_spill] sm:$0xff] }
 0x303   :  { %16365 = vst [vmem:[#allocation129_spill] sm:$0xff] %v14397_v60  ;;  %v3949_v40 = vpop.f32.mrf.mxu0  ;;  %v3956_v60 = vadd.f32 %v11971_v16, %v3779_v13  ;;  %v3771_v10 = vadd.f32 %v3770_v27, %v3577_v18  ;;  %v3795_v44 = vadd.f32 %v11942_v20, %v3598_v23  ;;  %v3787_v18 = vadd.f32 %v14358_v42, %v3591_v19  ;;  %v16373_v16 = vld [vmem:[#allocation110_spill] sm:$0xff]  ;;  %v16382_v19 = vld [vmem:[#allocation51_spill] sm:$0xff] }
 0x304   :  { %v4090_v6 = vpop.f32.mrf.mxu1  ;;  %v3938_v29 = vadd.f32 %v3937_v24, %v3755_v2  ;;  %v16371_v24 = vld [vmem:[#allocation120_spill] sm:$0xff] }
 0x305   :  { %v11974_v37 = vpop.f32.mrf.mxu0  ;;  %v3950_v22 = vadd.f32 %v3949_v40, %v3771_v10  ;;  %v16379_v10 = vld [vmem:[#allocation121_spill] sm:$0xff]  ;;  %v16385_v2 = vld [vmem:[#allocation88_spill] sm:$0xff] }
 0x306   :  { %v12000_v4 = vpop.f32.mrf.mxu1  ;;  %v3968_v54 = vadd.f32 %v11974_v37, %v3795_v44  ;;  %v3570_v37 = vadd.f32 %v14338_v55, %v14306_v3  ;;  %v3556_v3 = vadd.f32 %v14332_v7, %v14298_v63  ;;  %v3347_v63 = vadd.f32 %v14288_v53, %v14278_v30  ;;  %v16366_v53 = vld [vmem:[#allocation111_spill] sm:$0xff]  ;;  %v16367_v30 = vld [vmem:[#allocation114_spill] sm:$0xff] }
 0x307   :  { %v3961_v51 = vpop.f32.mrf.mxu0  ;;  %v3335_v7 = vadd.f32 %v16367_v30, %v16366_v53  ;;  %v16380_v44 = vld [vmem:[#allocation122_spill] sm:$0xff] }
 0x308   :  { %v4102_v50 = vpop.f32.mrf.mxu1  ;;  %v3962_v47 = vadd.f32 %v3961_v51, %v3787_v18  ;;  %v3763_v42 = vadd.f32 %v14348_v32, %v3570_v37  ;;  %v3747_v34 = vadd.f32 %v14344_v41, %v3556_v3  ;;  %v3914_v32 = vadd.f32 %v14372_v35, %v3723_v1  ;;  %v16384_v51 = vld [vmem:[#allocation62_spill] sm:$0xff]  ;;  %v16388_v37 = vld [vmem:[#allocation101_spill] sm:$0xff] }
 0x309   :  { %v4103_v59 = vadd.f32 %v4102_v50, %v3938_v29  ;;  %v3521_v15 = vadd.f32 %v14324_v8, %v3347_v63  ;;  %v16368_v8 = vld [vmem:[#allocation127_spill] sm:$0xff]  ;;  %v2308_v18 = vadd.f32 %v16382_v19, %v16385_v2  ;;  %v16394_v1 = vld [vmem:[#allocation94_spill] sm:$0xff] }
 0x30a   :  { %v12003_v26 = vpop.f32.mrf.mxu1  ;;  %v3944_v13 = vadd.f32 %v11968_v39, %v3763_v42  ;;  %v3932_v50 = vadd.f32 %v14377_v9, %v3747_v34  ;;  %v16188_v9 = vmov 0.0   ;;  %v16397_v63 = vld [vmem:[#allocation99_spill] sm:$0xff]  ;;  %v16399_v53 = vld [vmem:[#allocation106_spill] sm:$0xff] }
 0x30b   :  { %v4121_v57 = vadd.f32 %v12003_v26, %v3956_v60  ;;  %v3707_v39 = vadd.f32 %v14336_v5, %v3521_v15  ;;  %100 = vst [vmem:[#allocation2 + $0x28] sm:$0xff] %v16188_v9  ;;  %95 = vst [vmem:[#allocation2] sm:$0xff] %v16188_v9  ;;  %v16372_v60 = vld [vmem:[#allocation124_spill] sm:$0xff]  ;;  %v16378_v26 = vld [vmem:[#allocation119_spill] sm:$0xff] }
 0x30c   :  { %v4114_v12 = vpop.f32.mrf.mxu1  ;;  %v4097_v33 = vadd.f32 %v11997_v0, %v3932_v50  ;;  %96 = vst [vmem:[#allocation2 + $0x8] sm:$0xff] %v16188_v9  ;;  %97 = vst [vmem:[#allocation2 + $0x10] sm:$0xff] %v16188_v9  ;;  %v16374_v0 = vld [vmem:[#allocation113_spill] sm:$0xff]  ;;  %v16398_v15 = vld [vmem:[#allocation84_spill] sm:$0xff] }
 0x30d   :  { %4162 = vrot.lane.b32.xlu1 %v4121_v57, %s12979_s27  ;;  %v4115_v27 = vadd.f32 %v4114_v12, %v3950_v22  ;;  %v3739_v57 = vadd.f32 %v14346_v11, %v3549_v56  ;;  %v4109_v11 = vadd.f32 %v12000_v4, %v3944_v13  ;;  %v3902_v35 = vadd.f32 %v14362_v61, %v3707_v39  ;;  %v16369_v61 = vld [vmem:[#allocation116_spill] sm:$0xff]  ;;  %v16376_v4 = vld [vmem:[#allocation115_spill] sm:$0xff] }
 0x30e   :  { %v12006_v28 = vpop.f32.mrf.mxu1  ;;  %98 = vst [vmem:[#allocation2 + $0x18] sm:$0xff] %v16188_v9  ;;  %99 = vst [vmem:[#allocation2 + $0x20] sm:$0xff] %v16188_v9  ;;  %v3507_v5 = vadd.f32 %v16369_v61, %v3335_v7  ;;  %v2288_v22 = vadd.f32 %v16382_v19, %v16381_v25  ;;  %v16387_v56 = vld [vmem:[#allocation52_spill] sm:$0xff] }
 0x30f   :  { %v4133_v20 = vadd.f32 %v12006_v28, %v3968_v54  ;;  %v3926_v55 = vadd.f32 %v3925_v62, %v3739_v57  ;;  %v14439_v62 = vadd.f32 %v14393_v45, %v3914_v32  ;;  %v4067_v41 = vadd.f32 %v16368_v8, %v3902_v35  ;;  %101 = vst [vmem:[#allocation2 + $0x30] sm:$0xff] %v16188_v9  ;;  %v16383_v54 = vld [vmem:[#allocation71_spill] sm:$0xff]  ;;  %v16390_v57 = vld [vmem:[#allocation44_spill] sm:$0xff] }
 0x310   :  { %v4126_v43 = vpop.f32.mrf.mxu1  ;;  %102 = vst [vmem:[#allocation2 + $0x38] sm:$0xff] %v16188_v9  ;;  %v2268_v31 = vadd.f32 %v16382_v19, %v16383_v54  ;;  %v2433_v28 = vadd.f32 %v16384_v51, %v2288_v22  ;;  %v16396_v32 = vld [vmem:[#allocation107_spill] sm:$0xff]  ;;  %v16400_v7 = vld [vmem:[#allocation108_spill] sm:$0xff]  ;;  %v16407_v54 = vld [vmem:[#allocation102_spill] sm:$0xff] }
 0x311   :  { %4166 = vrot.lane.b32.xlu0 %v4133_v20, %s12979_s27  ;;  %4160 = vrot.lane.b32.xlu1 %v4115_v27, %s12979_s27  ;;  %v4127_v38 = vadd.f32 %v4126_v43, %v3962_v47  ;;  %v4091_v36 = vadd.f32 %v4090_v6, %v3926_v55  ;;  %v3323_v6 = vadd.f32 %v16374_v0, %v16373_v16  ;;  %v16386_v27 = vld [vmem:[#allocation61_spill] sm:$0xff]  ;;  %v16389_v47 = vld [vmem:[#allocation75_spill] sm:$0xff]  ;;  %v16401_v61 = vld [vmem:[#allocation128_spill] sm:$0xff] }
 0x312   :  { %v2248_v20 = vadd.f32 %v16382_v19, %v16386_v27  ;;  %v2421_v43 = vadd.f32 %v16387_v56, %v2268_v31  ;;  %v2559_v29 = vadd.f32 %v16388_v37, %v2433_v28  ;;  %v2445_v46 = vadd.f32 %v16389_v47, %v2308_v18  ;;  %v16393_v55 = vld [vmem:[#allocation103_spill] sm:$0xff] }
 0x313   :  { %v3493_v17 = vadd.f32 %v16376_v4, %v3323_v6 }
 0x314   :  { %v2409_v42 = vadd.f32 %v16390_v57, %v2248_v20  ;;  %v2689_v3 = vadd.f32 %v16392_v58, %v2559_v29  ;;  %v2573_v13 = vadd.f32 %v16393_v55, %v2445_v46  ;;  %v16409_v57 = vld [vmem:[#allocation123_spill] sm:$0xff] }
 0x315   :  { %4156 = vrot.lane.b32.xlu1 %v4103_v59, %s12979_s27  ;;  %4164 = vrot.lane.b32.xlu0 %v4127_v38, %s12979_s27  ;;  %v3675_v23 = vadd.f32 %v16377_v48, %v3493_v17  ;;  %v16391_v59 = vld [vmem:[#allocation98_spill] sm:$0xff]  ;;  %v16405_v17 = vld [vmem:[#allocation129_spill] sm:$0xff] }
 0x316   :  { %v2545_v38 = vadd.f32 %v16391_v59, %v2421_v43  ;;  %v2531_v34 = vadd.f32 %v16394_v1, %v2409_v42  ;;  %v2820_v50 = vadd.f32 %v16396_v32, %v2689_v3 }
 0x317   :  { %v3878_v14 = vadd.f32 %v16378_v26, %v3675_v23  ;;  %v16406_v26 = vld [vmem:[#allocation112_spill] sm:$0xff] }
 0x318   :  { %v2657_v39 = vadd.f32 %v16398_v15, %v2531_v34  ;;  %v2937_v8 = vadd.f32 %v16400_v7, %v2820_v50 }
 0x319   :  { %4152 = vrot.lane.b32.xlu1 %v4091_v36, %s12979_s27  ;;  %4158 = vrot.lane.b32.xlu0 %v4109_v11, %s12979_s27  ;;  %v4043_v12 = vadd.f32 %v16380_v44, %v3878_v14  ;;  %v16395_v36 = vld [vmem:[#allocation90_spill] sm:$0xff] }
 0x31a   :  { %v2673_v11 = vadd.f32 %v16395_v36, %v2545_v38 }
 0x31c   :  { %v2808_v30 = vadd.f32 %v16399_v53, %v2673_v11 }
 0x31d   :  { %4252 = vrot.lane.b32.xlu1 %v14439_v62, %s12980_s0  ;;  %4154 = vrot.lane.b32.xlu0 %v4097_v33, %s12979_s27  ;;  %v2705_v33 = vadd.f32 %v16397_v63, %v2573_v13 }
 0x321   :  { %4250 = vrot.lane.b32.xlu1 %v14383_v21, %s12980_s0  ;;  %4254 = vrot.lane.b32.xlu0 %v14391_v49, %s12980_s0  ;;  %v16370_v21 = vld [vmem:[#allocation118_spill] sm:$0xff] }
 0x322   :  { %v3691_v49 = vadd.f32 %v16370_v21, %v3507_v5  ;;  %v16402_v21 = vld [vmem:[#allocation109_spill] sm:$0xff] }
 0x324   :  { %v3890_v45 = vadd.f32 %v16371_v24, %v3691_v49  ;;  %v2832_v49 = vadd.f32 %v16402_v21, %v2705_v33 }
 0x325   :  { %4248 = vrot.lane.b32.xlu1 %v4067_v41, %s12980_s0 }
 0x326   :  { %v4055_v40 = vadd.f32 %v16375_v52, %v3890_v45  ;;  %v4140_v45 = vadd.f32 %v4067_v41, %v2937_v8  ;;  %v16404_v52 = vld [vmem:[#allocation105_spill] sm:$0xff]  ;;  %v2949_v14 = vadd.f32 %v16406_v26, %v2832_v49 }
 0x327   :  { %v2925_v4 = vadd.f32 %v16404_v52, %v2808_v30 }
 0x328   :  { %v4142_v19 = vadd.f32 %v14439_v62, %v2949_v14  ;;  %v16408_v62 = vld [vmem:[#allocation126_spill] sm:$0xff] }
 0x329   :  { %4246 = vrot.lane.b32.xlu1 %v16372_v60, %s12980_s0  ;;  %v16403_v60 = vld [vmem:[#allocation104_spill] sm:$0xff]  ;;  %v4138_v25 = vadd.f32 %v4055_v40, %v2925_v4 }
 0x32a   :  { %v2796_v16 = vadd.f32 %v16403_v60, %v2657_v39 }
 0x32c   :  { %v2913_v31 = vadd.f32 %v16407_v54, %v2796_v16 }
 0x32d   :  { %4244 = vrot.lane.b32.xlu1 %v4055_v40, %s12980_s0 }
 0x32e   :  { %v4136_v18 = vadd.f32 %v4043_v12, %v2913_v31 }
 0x331   :  { %4242 = vrot.lane.b32.xlu1 %v16379_v10, %s12980_s0 }
 0x335   :  { %4240 = vrot.lane.b32.xlu1 %v4043_v12, %s12980_s0 }
 0x37f   :  { %v4163_v35 = vpop.permute.xlu1 %4162 }
 0x380   :  { %v14503_v5 = vadd.f32 %v4163_v35, %v16401_v61 }
 0x382   :  { %v10647_v24 = vmul.f32 -1.442695, %v14503_v5 }
 0x383   :  { %v4167_v0 = vpop.permute.xlu0 %4166  ;;  %v4161_v6 = vpop.permute.xlu1 %4160 }
 0x384   :  { %12877 = vpow2.f32 %v10647_v24  ;;  %v14510_v48 = vadd.f32 %v4167_v0, %v16405_v17  ;;  %v14512_v23 = vadd.f32 %v4161_v6, %v4140_v45 }
 0x386   :  { %v10649_v10 = vmul.f32 -1.442695, %v14510_v48  ;;  %v10646_v44 = vmul.f32 -1.442695, %v14512_v23 }
 0x387   :  { %v4157_v41 = vpop.permute.xlu1 %4156  ;;  %v4165_v22 = vpop.permute.xlu0 %4164 }
 0x388   :  { %12879 = vpow2.f32 %v10649_v10  ;;  %v14519_v51 = vadd.f32 %v4157_v41, %v4138_v25  ;;  %v14521_v28 = vadd.f32 %v4165_v22, %v4142_v19  ;;  %v91_v25 = vld [vmem:[%s16410_s24] sm:$0xff] }
 0x389   :  { %12881 = vpow2.f32 %v10646_v44  ;;  %v4331_v41 = vsel %vm4329_vm5, %v91_v25, 0 }
 0x38a   :  { %v10644_v2 = vmul.f32 -1.442695, %v14519_v51  ;;  %v10648_v27 = vmul.f32 -1.442695, %v14521_v28  ;;  %v14552_v22 = vand.u32 4294901760, %v4331_v41 }
 0x38b   :  { %v4153_v20 = vpop.permute.xlu1 %4152  ;;  %v4159_v56 = vpop.permute.xlu0 %4158 }
 0x38c   :  { %12883 = vpow2.f32 %v10644_v2  ;;  %v14525_v40 = vadd.f32 %v4153_v20, %v4136_v18  ;;  %v14528_v43 = vadd.f32 %v4159_v56, %v16408_v62  ;;  %16411 = vst [vmem:[#allocation111_spill] sm:$0xff] %v14552_v22  ;;  %v14556_v31 = vsub.f32 %v4331_v41, %v14552_v22  ;;  %12045 = vmatprep.mubr.f32.mxu1 %v14552_v22 }
 0x38d   :  { %12885 = vpow2.f32 %v10648_v27 }
 0x38e   :  { %v10642_v37 = vmul.f32 -1.442695, %v14525_v40  ;;  %v10645_v29 = vmul.f32 -1.442695, %v14528_v43  ;;  %16412 = vst [vmem:[#allocation114_spill] sm:$0xff] %v14556_v31  ;;  %v14561_v2 = vand.u32 4294901760, %v14556_v31 }
 0x38f   :  { %v4253_v47 = vpop.permute.xlu1 %4252  ;;  %v4155_v46 = vpop.permute.xlu0 %4154 }
 0x390   :  { %12887 = vpow2.f32 %v10642_v37  ;;  %v14533_v12 = vadd.f32 %v4155_v46, %v16409_v57  ;;  %16413 = vst [vmem:[#allocation127_spill] sm:$0xff] %v14561_v2  ;;  %v4418_v18 = vsub.f32 %v14556_v31, %v14561_v2  ;;  %v92_v57 = vld [vmem:[%s16410_s24 + $0x8] sm:$0xff] }
 0x391   :  { %v12878_v42 = vpop.eup %12877  ;;  %12889 = vpow2.f32 %v10645_v29 }
 0x392   :  { %v4213_v59 = vadd.f32 1.0, %v12878_v42  ;;  %v10643_v38 = vmul.f32 -1.442695, %v14533_v12  ;;  %v14566_v27 = vand.u32 4294901760, %v4418_v18  ;;  %v93_v42 = vld [vmem:[%s16410_s24 + $0x10] sm:$0xff] }
 0x393   :  { %v4251_v58 = vpop.permute.xlu1 %4250  ;;  %v4255_v49 = vpop.permute.xlu0 %4254 }
 0x394   :  { %12891 = vrcp.f32 %v4213_v59  ;;  %12023 = vmatprep.mubr.f32.mxu0 %v14566_v27 }
 0x395   :  { %v12880_v3 = vpop.eup %12879  ;;  %12893 = vpow2.f32 %v10643_v38 }
 0x396   :  { %v12882_v55 = vpop.eup %12881  ;;  %v4215_v13 = vadd.f32 1.0, %v12880_v3 }
 0x397   :  { %v4212_v1 = vadd.f32 1.0, %v12882_v55  ;;  %v4249_v34 = vpop.permute.xlu1 %4248 }
 0x398   :  { %12895 = vrcp.f32 %v4215_v13  ;;  %v4334_v13 = vsel %vm4329_vm5, %v92_v57, 0 }
 0x399   :  { %v12884_v36 = vpop.eup %12883  ;;  %12897 = vrcp.f32 %v4212_v1  ;;  %v4337_v1 = vsel %vm4329_vm5, %v93_v42, 0 }
 0x39a   :  { %v12886_v11 = vpop.eup %12885  ;;  %v4210_v32 = vadd.f32 1.0, %v12884_v36 }
 0x39b   :  { %v4214_v50 = vadd.f32 1.0, %v12886_v11  ;;  %v4247_v63 = vpop.permute.xlu1 %4246 }
 0x39c   :  { %12899 = vrcp.f32 %v4210_v32 }
 0x39d   :  { %v12888_v33 = vpop.eup %12887  ;;  %12901 = vrcp.f32 %v4214_v50  ;;  %v14598_v50 = vand.u32 4294901760, %v4334_v13 }
 0x39e   :  { %v12890_v15 = vpop.eup %12889  ;;  %v4208_v39 = vadd.f32 1.0, %v12888_v33 }
 0x39f   :  { %v4211_v35 = vadd.f32 1.0, %v12890_v15  ;;  %v4245_v30 = vpop.permute.xlu1 %4244  ;;  %16414 = vst [vmem:[#allocation116_spill] sm:$0xff] %v14598_v50 }
 0x3a0   :  { %12903 = vrcp.f32 %v4208_v39 }
 0x3a1   :  { %v12892_v53 = vpop.eup %12891  ;;  %12905 = vrcp.f32 %v4211_v35 }
 0x3a2   :  { %v12894_v7 = vpop.eup %12893  ;;  %v4269_v8 = vmul.f32 %v12892_v53, %v4251_v58  ;;  %4298 = vrot.lane.b32.xlu0 %v12892_v53, %s12979_s27 }
 0x3a3   :  { %v4209_v61 = vadd.f32 1.0, %v12894_v7  ;;  %v4243_v16 = vpop.permute.xlu1 %4242 }
 0x3a4   :  { %4277 = vst.msk [vmem:[#allocation2 + $0x28] sm:$0xff] %vm1510_vm4, %v4269_v8 }
 0x3a5   :  { %v12896_v21 = vpop.eup %12895  ;;  %12907 = vrcp.f32 %v4209_v61 }
 0x3a6   :  { %v12898_v24 = vpop.eup %12897  ;;  %v4271_v45 = vmul.f32 %v12896_v21, %v4255_v49 }
 0x3a7   :  { %v4268_v60 = vmul.f32 %v12898_v24, %v4249_v34  ;;  %4296 = vrot.lane.b32.xlu0 %v12898_v24, %s12979_s27  ;;  %v4241_v26 = vpop.permute.xlu1 %4240 }
 0x3a8   :  { %4279 = vst.msk [vmem:[#allocation2 + $0x38] sm:$0xff] %vm1510_vm4, %v4271_v45 }
 0x3a9   :  { %v12900_v0 = vpop.eup %12899  ;;  %4276 = vst.msk [vmem:[#allocation2 + $0x20] sm:$0xff] %vm1510_vm4, %v4268_v60 }
 0x3aa   :  { %v12902_v6 = vpop.eup %12901  ;;  %v4266_v52 = vmul.f32 %v12900_v0, %v4245_v30 }
 0x3ab   :  { %v4270_v4 = vmul.f32 %v12902_v6, %v4253_v47  ;;  %4302 = vrot.lane.b32.xlu0 %v12896_v21, %s12979_s27  ;;  %v14622_v21 = vsub.f32 %v4334_v13, %v14598_v50 }
 0x3ac   :  { %4274 = vst.msk [vmem:[#allocation2 + $0x10] sm:$0xff] %vm1510_vm4, %v4266_v52 }
 0x3ad   :  { %v12904_v17 = vpop.eup %12903  ;;  %4278 = vst.msk [vmem:[#allocation2 + $0x30] sm:$0xff] %vm1510_vm4, %v4270_v4  ;;  %16416 = vst [vmem:[#allocation120_spill] sm:$0xff] %v14622_v21 }
 0x3ae   :  { %v12906_v14 = vpop.eup %12905  ;;  %v4264_v10 = vmul.f32 %v12904_v17, %v4241_v26  ;;  %4288 = vrot.lane.b32.xlu1 %v12904_v17, %s12979_s27 }
 0x3af   :  { %v4267_v44 = vmul.f32 %v12906_v14, %v4247_v63  ;;  %4300 = vrot.lane.b32.xlu0 %v12902_v6, %s12979_s27  ;;  %v14600_v63 = vand.u32 4294901760, %v4337_v1 }
 0x3b0   :  { %4272 = vst.msk [vmem:[#allocation2] sm:$0xff] %vm1510_vm4, %v4264_v10 }
 0x3b1   :  { %4275 = vst.msk [vmem:[#allocation2 + $0x18] sm:$0xff] %vm1510_vm4, %v4267_v44  ;;  %16415 = vst [vmem:[#allocation118_spill] sm:$0xff] %v14600_v63  ;;  %v14625_v49 = vsub.f32 %v4337_v1, %v14600_v63 }
 0x3b2   :  { %v12908_v19 = vpop.eup %12907 }
 0x3b3   :  { %v4265_v54 = vmul.f32 %v12908_v19, %v4243_v16  ;;  %4294 = vrot.lane.b32.xlu0 %v12906_v14, %s12979_s27  ;;  %16417 = vst [vmem:[#allocation124_spill] sm:$0xff] %v14625_v49  ;;  %v14653_v14 = vand.u32 4294901760, %v14622_v21  ;;  %v14656_v10 = vand.u32 4294901760, %v14625_v49 }
 0x3b5   :  { %4273 = vst.msk [vmem:[#allocation2 + $0x8] sm:$0xff] %vm1510_vm4, %v4265_v54  ;;  %16418 = vst [vmem:[#allocation110_spill] sm:$0xff] %v14653_v14 }
 0x3b6   :  { %16419 = vst [vmem:[#allocation113_spill] sm:$0xff] %v14656_v10 }
 0x3b7   :  { %4292 = vrot.lane.b32.xlu0 %v12900_v0, %s12979_s27  ;;  %v94_v0 = vld [vmem:[%s16410_s24 + $0x18] sm:$0xff] }
 0x3b8   :  { %v4340_v44 = vsel %vm4329_vm5, %v94_v0, 0 }
 0x3bb   :  { %4290 = vrot.lane.b32.xlu0 %v12908_v19, %s12979_s27 }
 0x414   :  { %v4299_v20 = vpop.permute.xlu0 %4298 }
 0x415   :  { %4318 = vst.msk [vmem:[#allocation2 + $0x28] sm:$0xff] %vm4312_vm6, %v4299_v20 }
 0x419   :  { %v4297_v56 = vpop.permute.xlu0 %4296 }
 0x41a   :  { %4317 = vst.msk [vmem:[#allocation2 + $0x20] sm:$0xff] %vm4312_vm6, %v4297_v56 }
 0x41c   :  { %v4326_v47 = vld [vmem:[#allocation2 + $0x28] sm:$0xff] }
 0x41d   :  { %v4303_v62 = vpop.permute.xlu0 %4302  ;;  %v14581_v59 = vand.u32 4294901760, %v4326_v47 }
 0x41e   :  { %4320 = vst.msk [vmem:[#allocation2 + $0x38] sm:$0xff] %vm4312_vm6, %v4303_v62 }
 0x41f   :  { %v14595_v36 = vsub.f32 %v4326_v47, %v14581_v59  ;;  %v14678_v47 = vand.u32 4294901760, %v4340_v44 }
 0x420   :  { %v4289_v37 = vpop.permute.xlu1 %4288 }
 0x421   :  { %4313 = vst.msk [vmem:[#allocation2] sm:$0xff] %vm4312_vm6, %v4289_v37  ;;  %v4301_v29 = vpop.permute.xlu0 %4300  ;;  %v4325_v46 = vld [vmem:[#allocation2 + $0x20] sm:$0xff]  ;;  %v14618_v30 = vand.u32 4294901760, %v14595_v36  ;;  %16420 = vst [vmem:[#allocation125_spill] sm:$0xff] %v14678_v47 }
 0x422   :  { %4319 = vst.msk [vmem:[#allocation2 + $0x30] sm:$0xff] %vm4312_vm6, %v4301_v29  ;;  %v14586_v55 = vand.u32 4294901760, %v4325_v46  ;;  %v4428_v29 = vsub.f32 %v14622_v21, %v14653_v14 }
 0x423   :  { %v4489_v52 = vsub.f32 %v14595_v36, %v14618_v30 }
 0x424   :  { %v14609_v39 = vsub.f32 %v4325_v46, %v14586_v55 }
 0x425   :  { %v4295_v38 = vpop.permute.xlu0 %4294  ;;  %v4328_v58 = vld [vmem:[#allocation2 + $0x38] sm:$0xff]  ;;  %v4490_v18 = vand.u32 4294901760, %v4489_v52 }
 0x426   :  { %4316 = vst.msk [vmem:[#allocation2 + $0x18] sm:$0xff] %vm4312_vm6, %v4295_v38  ;;  %v14584_v3 = vand.u32 4294901760, %v4328_v58  ;;  %v14635_v16 = vand.u32 4294901760, %v14609_v39  ;;  %v4438_v38 = vsub.f32 %v14625_v49, %v14656_v10 }
 0x428   :  { %12007 = vmatprep.subr.mxu0 %v14584_v3  ;;  %v14592_v34 = vsub.f32 %v4328_v58, %v14584_v3  ;;  %v4321_v61 = vld [vmem:[#allocation2] sm:$0xff]  ;;  %v4496_v19 = vsub.f32 %v14609_v39, %v14635_v16 }
 0x429   :  { %12008 = vmatpush3.msra.mxu0 %v14584_v3  ;;  %v4293_v11 = vpop.permute.xlu0 %4292  ;;  %v4327_v32 = vld [vmem:[#allocation2 + $0x30] sm:$0xff]  ;;  %v14646_v4 = vand.u32 4294901760, %v4321_v61 }
 0x42a   :  { %4315 = vst.msk [vmem:[#allocation2 + $0x10] sm:$0xff] %vm4312_vm6, %v4293_v11  ;;  %v14603_v33 = vand.u32 4294901760, %v4327_v32  ;;  %v14606_v15 = vand.u32 4294901760, %v14592_v34  ;;  %v4497_v57 = vand.u32 4294901760, %v4496_v19 }
 0x42b   :  { %v14673_v62 = vsub.f32 %v4321_v61, %v14646_v4  ;;  %v14701_v61 = vand.u32 4294901760, %v4438_v38 }
 0x42c   :  { %12009 = vmatprep.subr.mxu0 %v14603_v33  ;;  %v4475_v35 = vsub.f32 %v14592_v34, %v14606_v15  ;;  %v14615_v53 = vsub.f32 %v4327_v32, %v14603_v33  ;;  %v14693_v32 = vand.u32 4294901760, %v4428_v29 }
 0x42d   :  { %12010 = vmatpush3.msra.mxu0 %v14603_v33  ;;  %v4291_v7 = vpop.permute.xlu0 %4290  ;;  %v4324_v8 = vld [vmem:[#allocation2 + $0x18] sm:$0xff]  ;;  %v14690_v11 = vand.u32 4294901760, %v14673_v62  ;;  %16423 = vst [vmem:[#allocation119_spill] sm:$0xff] %v14701_v61 }
 0x42e   :  { %4314 = vst.msk [vmem:[#allocation2 + $0x8] sm:$0xff] %vm4312_vm6, %v4291_v7  ;;  %12011 = vmatprep.subr.mxu0 %v14581_v59  ;;  %v4476_v24 = vand.u32 4294901760, %v4475_v35  ;;  %v14629_v45 = vand.u32 4294901760, %v4324_v8  ;;  %v14632_v60 = vand.u32 4294901760, %v14615_v53  ;;  %16421 = vst [vmem:[#allocation115_spill] sm:$0xff] %v14693_v32  ;;  %v14696_v35 = vsub.f32 %v4340_v44, %v14678_v47 }
 0x42f   :  { %12012 = vmatpush3.msra.mxu0 %v14581_v59  ;;  %v4524_v0 = vsub.f32 %v14673_v62, %v14690_v11 }
 0x430   :  { %12013 = vmatprep.subr.mxu0 %v14586_v55  ;;  %12029 = vmatprep.subr.mxu1 %v4476_v24  ;;  %v4482_v6 = vsub.f32 %v14615_v53, %v14632_v60  ;;  %v14649_v17 = vsub.f32 %v4324_v8, %v14629_v45  ;;  %16422 = vst [vmem:[#allocation117_spill] sm:$0xff] %v14696_v35 }
 0x431   :  { %12014 = vmatpush3.msra.mxu0 %v14586_v55  ;;  %12030 = vmatpush3.msra.mxu1 %v4476_v24  ;;  %v4323_v26 = vld [vmem:[#allocation2 + $0x10] sm:$0xff] }
 0x432   :  { %12015 = vmatprep.subr.mxu0 %v14629_v45  ;;  %v14660_v25 = vand.u32 4294901760, %v4323_v26  ;;  %v4483_v41 = vand.u32 4294901760, %v4482_v6  ;;  %v14665_v54 = vand.u32 4294901760, %v14649_v17  ;;  %v14710_v6 = vand.u32 4294901760, %v14696_v35 }
 0x433   :  { %12016 = vmatpush3.msra.mxu0 %v14629_v45 }
 0x434   :  { %12017 = vmatprep.subr.mxu0 %v14660_v25  ;;  %12031 = vmatprep.subr.mxu1 %v4483_v41  ;;  %v4503_v20 = vsub.f32 %v14649_v17, %v14665_v54  ;;  %v4508_v56 = vsub.f32 %v4323_v26, %v14660_v25  ;;  %16424 = vst [vmem:[#allocation121_spill] sm:$0xff] %v14710_v6  ;;  %v4525_v26 = vand.u32 4294901760, %v4524_v0 }
 0x435   :  { %12018 = vmatpush3.msra.mxu0 %v14660_v25  ;;  %12032 = vmatpush3.msra.mxu1 %v4483_v41  ;;  %v4322_v37 = vld [vmem:[#allocation2 + $0x8] sm:$0xff]  ;;  %v4448_v44 = vsub.f32 %v14696_v35, %v14710_v6 }
 0x436   :  { %12033 = vmatprep.subr.mxu1 %v4490_v18  ;;  %v14680_v46 = vand.u32 4294901760, %v4322_v37  ;;  %v14682_v42 = vand.u32 4294901760, %v4508_v56  ;;  %v4504_v58 = vand.u32 4294901760, %v4503_v20 }
 0x437   :  { %12034 = vmatpush3.msra.mxu1 %v4490_v18 }
 0x438   :  { %12019 = vmatprep.subr.mxu0 %v14680_v46  ;;  %12035 = vmatprep.subr.mxu1 %v4497_v57  ;;  %v4510_v13 = vsub.f32 %v4508_v56, %v14682_v42  ;;  %v4515_v1 = vsub.f32 %v4322_v37, %v14680_v46 }
 0x439   :  { %12020 = vmatpush3.msra.mxu0 %v14680_v46  ;;  %12036 = vmatpush3.msra.mxu1 %v4497_v57 }
 0x43a   :  { %12021 = vmatprep.subr.mxu0 %v14646_v4  ;;  %12037 = vmatprep.subr.mxu1 %v4504_v58  ;;  %v4511_v7 = vand.u32 4294901760, %v4510_v13  ;;  %v14699_v8 = vand.u32 4294901760, %v4515_v1 }
 0x43b   :  { %12022 = vmatpush3.msra.mxu0 %v14646_v4  ;;  %12038 = vmatpush3.msra.mxu1 %v4504_v58 }
 0x43c   :  { %12039 = vmatprep.subr.mxu1 %v4511_v7  ;;  %12051 = vmatprep.subr.mxu0 %v14592_v34  ;;  %v4517_v24 = vsub.f32 %v4515_v1, %v14699_v8 }
 0x43d   :  { %12024 = vmatmul.mubr.f32.vlgmr.msra.gmra.mxu0 %v14693_v32  ;;  %12040 = vmatpush3.msra.mxu1 %v4511_v7 }
 0x43e   :  { %12052 = vmatpush3.msra.mxu0 %v14592_v34  ;;  %v4518_v52 = vand.u32 4294901760, %v4517_v24  ;;  %12026 = vmatprep.mubr.f32.mxu0 %v14701_v61  ;;  %v14725_v34 = vand.u32 4294901760, %v4448_v44 }
 0x43f   :  { %12053 = vmatprep.subr.mxu0 %v14615_v53 }
 0x440   :  { %12054 = vmatpush3.msra.mxu0 %v14615_v53  ;;  %12041 = vmatprep.subr.mxu1 %v4518_v52  ;;  %16425 = vst [vmem:[#allocation122_spill] sm:$0xff] %v14725_v34 }
 0x441   :  { %12055 = vmatprep.subr.mxu0 %v14595_v36  ;;  %12042 = vmatpush3.msra.mxu1 %v4518_v52 }
 0x442   :  { %12056 = vmatpush3.msra.mxu0 %v14595_v36  ;;  %12043 = vmatprep.subr.mxu1 %v4525_v26 }
 0x443   :  { %12057 = vmatprep.subr.mxu0 %v14609_v39  ;;  %12044 = vmatpush3.msra.mxu1 %v4525_v26 }
 0x444   :  { %12058 = vmatpush3.msra.mxu0 %v14609_v39  ;;  %12046 = vmatmul.mubr.f32.vlgmr.msra.gmra.mxu1 %v14598_v50 }
 0x445   :  { %12059 = vmatprep.subr.mxu0 %v14649_v17  ;;  %12073 = vmatprep.subr.mxu1 %v14584_v3 }
 0x446   :  { %12060 = vmatpush3.msra.mxu0 %v14649_v17  ;;  %12074 = vmatpush3.msra.mxu1 %v14584_v3 }
 0x447   :  { %12061 = vmatprep.subr.mxu0 %v4508_v56  ;;  %12075 = vmatprep.subr.mxu1 %v14603_v33 }
 0x448   :  { %12062 = vmatpush3.msra.mxu0 %v4508_v56  ;;  %12076 = vmatpush3.msra.mxu1 %v14603_v33 }
 0x449   :  { %12027 = vmatmul.mubr.f32.gmra.mxu0 %v14725_v34  ;;  %12063 = vmatprep.subr.mxu0 %v4515_v1 }
 0x44a   :  { %12077 = vmatprep.subr.mxu1 %v14581_v59  ;;  %12064 = vmatpush3.msra.mxu0 %v4515_v1 }
 0x44b   :  { %12078 = vmatpush3.msra.mxu1 %v14581_v59  ;;  %12065 = vmatprep.subr.mxu0 %v14673_v62 }
 0x44c   :  { %12079 = vmatprep.subr.mxu1 %v14586_v55  ;;  %12066 = vmatpush3.msra.mxu0 %v14673_v62 }
 0x44d   :  { %12067 = vmatprep.mubr.f32.mxu0 %v14556_v31  ;;  %12080 = vmatpush3.msra.mxu1 %v14586_v55 }
 0x44e   :  { %12048 = vmatprep.mubr.f32.mxu1 %v14600_v63  ;;  %12068 = vmatmul.mubr.f32.vlgmr.msra.gmra.mxu0 %v14622_v21 }
 0x44f   :  { %12081 = vmatprep.subr.mxu1 %v14629_v45  ;;  %12095 = vmatprep.subr.mxu0 %v14606_v15 }
 0x450   :  { %12049 = vmatmul.mubr.f32.gmra.mxu1 %v14678_v47  ;;  %12096 = vmatpush3.msra.mxu0 %v14606_v15 }
 0x451   :  { %12082 = vmatpush3.msra.mxu1 %v14629_v45  ;;  %12097 = vmatprep.subr.mxu0 %v14632_v60 }
 0x452   :  { %12083 = vmatprep.subr.mxu1 %v14660_v25  ;;  %12070 = vmatprep.mubr.f32.mxu0 %v14625_v49 }
 0x453   :  { %12084 = vmatpush3.msra.mxu1 %v14660_v25  ;;  %12098 = vmatpush3.msra.mxu0 %v14632_v60 }
 0x454   :  { %12071 = vmatmul.mubr.f32.gmra.mxu0 %v14696_v35  ;;  %12085 = vmatprep.subr.mxu1 %v14680_v46 }
 0x455   :  { %12099 = vmatprep.subr.mxu0 %v14618_v30  ;;  %12086 = vmatpush3.msra.mxu1 %v14680_v46 }
 0x456   :  { %12100 = vmatpush3.msra.mxu0 %v14618_v30  ;;  %12087 = vmatprep.subr.mxu1 %v14646_v4 }
 0x457   :  { %12101 = vmatprep.subr.mxu0 %v14635_v16  ;;  %12088 = vmatpush3.msra.mxu1 %v14646_v4 }
 0x458   :  { %12089 = vmatprep.mubr.f32.mxu1 %v14561_v2  ;;  %12102 = vmatpush3.msra.mxu0 %v14635_v16 }
 0x459   :  { %12090 = vmatmul.mubr.f32.vlgmr.msra.gmra.mxu1 %v14653_v14  ;;  %12103 = vmatprep.subr.mxu0 %v14665_v54 }
 0x45a   :  { %12117 = vmatprep.subr.mxu1 %v14584_v3  ;;  %12104 = vmatpush3.msra.mxu0 %v14665_v54 }
 0x45b   :  { %12118 = vmatpush3.msra.mxu1 %v14584_v3  ;;  %12105 = vmatprep.subr.mxu0 %v14682_v42 }
 0x45c   :  { %12119 = vmatprep.subr.mxu1 %v14603_v33  ;;  %12092 = vmatprep.mubr.f32.mxu1 %v14656_v10 }
 0x45d   :  { %12106 = vmatpush3.msra.mxu0 %v14682_v42  ;;  %12120 = vmatpush3.msra.mxu1 %v14603_v33 }
 0x45e   :  { %12093 = vmatmul.mubr.f32.gmra.mxu1 %v14710_v6  ;;  %12107 = vmatprep.subr.mxu0 %v14699_v8 }
 0x45f   :  { %12121 = vmatprep.subr.mxu1 %v14581_v59  ;;  %12108 = vmatpush3.msra.mxu0 %v14699_v8 }
 0x460   :  { %12122 = vmatpush3.msra.mxu1 %v14581_v59  ;;  %12109 = vmatprep.subr.mxu0 %v14690_v11 }
 0x461   :  { %12123 = vmatprep.subr.mxu1 %v14586_v55  ;;  %12110 = vmatpush3.msra.mxu0 %v14690_v11 }
 0x462   :  { %12111 = vmatprep.mubr.f32.mxu0 %v14552_v22  ;;  %12124 = vmatpush3.msra.mxu1 %v14586_v55 }
 0x463   :  { %12112 = vmatmul.mubr.f32.vlgmr.msra.gmra.mxu0 %v14598_v50  ;;  %12125 = vmatprep.subr.mxu1 %v14629_v45 }
 0x464   :  { %12126 = vmatpush3.msra.mxu1 %v14629_v45  ;;  %12114 = vmatprep.mubr.f32.mxu0 %v14600_v63 }
 0x465   :  { %12127 = vmatprep.subr.mxu1 %v14660_v25  ;;  %12133 = vmatprep.mubr.f32.mxu1 %v14552_v22 }
 0x466   :  { %12128 = vmatpush3.msra.mxu1 %v14660_v25 }
 0x467   :  { %12115 = vmatmul.mubr.f32.gmra.mxu0 %v14678_v47  ;;  %12129 = vmatprep.subr.mxu1 %v14680_v46 }
 0x468   :  { %12130 = vmatpush3.msra.mxu1 %v14680_v46 }
 0x469   :  { %12131 = vmatprep.subr.mxu1 %v14646_v4 }
 0x46a   :  { %12132 = vmatpush3.msra.mxu1 %v14646_v4 }
 0x46b   :  { %12134 = vmatmul.mubr.f32.vlgmr.msra.gmra.mxu1 %v14598_v50 }
 0x46c   :  { %12136 = vmatprep.mubr.f32.mxu1 %v14600_v63 }
 0x46f   :  { %12137 = vmatmul.mubr.f32.gmra.mxu1 %v14678_v47 }
 0x4fd   :  { %v12025_v59 = vpop.f32.mrf.mxu0 }
 0x4ff   :  { %v4421_v3 = vpop.f32.mrf.mxu0 }
 0x504   :  { %v12047_v36 = vpop.f32.mrf.mxu1 }
 0x505   :  { %v4569_v41 = vadd.f32 %v12047_v36, %v12025_v59 }
 0x506   :  { %v4562_v15 = vpop.f32.mrf.mxu1 }
 0x507   :  { %v4563_v18 = vadd.f32 %v4562_v15, %v4421_v3 }
 0x509   :  { %v12028_v55 = vpop.f32.mrf.mxu0 }
 0x50b   :  { %v4441_v33 = vpop.f32.mrf.mxu0 }
 0x50e   :  { %v12069_v39 = vpop.f32.mrf.mxu0 }
 0x50f   :  { %v4676_v20 = vadd.f32 %v12069_v39, %v4569_v41 }
 0x510   :  { %v12050_v53 = vpop.f32.mrf.mxu1  ;;  %v4668_v30 = vpop.f32.mrf.mxu0 }
 0x511   :  { %v4581_v56 = vadd.f32 %v12050_v53, %v12028_v55  ;;  %v4669_v62 = vadd.f32 %v4668_v30, %v4563_v18 }
 0x512   :  { %v4574_v45 = vpop.f32.mrf.mxu1 }
 0x513   :  { %v4575_v37 = vadd.f32 %v4574_v45, %v4441_v33  ;;  %v10650_v45 = vld [vmem:[%s16062_s13] ss:$0 sm:$0xff] }
 0x514   :  { %v12072_v60 = vpop.f32.mrf.mxu0 }
 0x515   :  { %v4690_v42 = vadd.f32 %v12072_v60, %v4581_v56 }
 0x516   :  { %v4682_v17 = vpop.f32.mrf.mxu0 }
 0x517   :  { %v4683_v1 = vadd.f32 %v4682_v17, %v4575_v37  ;;  %v10657_v37 = vld [vmem:[%s16058_s9 + $0x38] sm:$0xff] }
 0x519   :  { %v12091_v16 = vpop.f32.mrf.mxu1 }
 0x51a   :  { %v4779_v29 = vadd.f32 %v12091_v16, %v4676_v20  ;;  %v10651_v20 = vld [vmem:[%s16063_s14] ss:$0 sm:$0xff] }
 0x51b   :  { %v4770_v4 = vpop.f32.mrf.mxu1 }
 0x51c   :  { %v4771_v38 = vadd.f32 %v4770_v4, %v4669_v62 }
 0x51e   :  { %v12094_v19 = vpop.f32.mrf.mxu1 }
 0x51f   :  { %v4795_v11 = vadd.f32 %v12094_v19, %v4690_v42 }
 0x520   :  { %v4786_v46 = vpop.f32.mrf.mxu1 }
 0x521   :  { %v4787_v52 = vadd.f32 %v4786_v46, %v4683_v1 }
 0x523   :  { %v12113_v25 = vpop.f32.mrf.mxu0 }
 0x524   :  { %v4896_v58 = vadd.f32 %v12113_v25, %v4779_v29  ;;  %v14814_v29 = vand.u32 4294901760, %v10657_v37 }
 0x525   :  { %v4889_v54 = vpop.f32.mrf.mxu0 }
 0x526   :  { %v4890_v7 = vadd.f32 %v4889_v54, %v4771_v38  ;;  %12139 = vmatprep.subr.mxu0 %v14814_v29 }
 0x527   :  { %v12116_v57 = vpop.f32.mrf.mxu0  ;;  %12140 = vmatpush3.msra.mxu0 %v14814_v29 }
 0x528   :  { %v4908_v26 = vadd.f32 %v12116_v57, %v4795_v11  ;;  %v14817_v57 = vsub.f32 %v10657_v37, %v14814_v29  ;;  %v10655_v11 = vld [vmem:[%s16058_s9 + $0x28] sm:$0xff] }
 0x529   :  { %v4901_v24 = vpop.f32.mrf.mxu0 }
 0x52a   :  { %v4902_v55 = vadd.f32 %v4901_v24, %v4787_v52  ;;  %v14823_v42 = vand.u32 4294901760, %v14817_v57  ;;  %v10654_v24 = vld [vmem:[%s16058_s9 + $0x20] sm:$0xff] }
 0x52b   :  { %v12135_v13 = vpop.f32.mrf.mxu1 }
 0x52c   :  { %v4993_v8 = vadd.f32 %v12135_v13, %v4896_v58  ;;  %v5314_v38 = vsub.f32 %v14817_v57, %v14823_v42  ;;  %v10656_v13 = vld [vmem:[%s16058_s9 + $0x30] sm:$0xff] }
 0x52d   :  { %v4986_v0 = vpop.f32.mrf.mxu1  ;;  %v14830_v1 = vand.u32 4294901760, %v10656_v13 }
 0x52e   :  { %v5009_v44 = vadd.f32 1e-06, %v4993_v8  ;;  %v4987_v59 = vadd.f32 %v4986_v0, %v4890_v7  ;;  %v5315_v58 = vand.u32 4294901760, %v5314_v38 }
 0x52f   :  { %v12138_v3 = vpop.f32.mrf.mxu1  ;;  %v14836_v7 = vsub.f32 %v10656_v13, %v14830_v1  ;;  %12141 = vmatprep.subr.mxu0 %v14830_v1 }
 0x530   :  { %v5008_v36 = vadd.f32 1e-06, %v4987_v59  ;;  %v5005_v33 = vadd.f32 %v12138_v3, %v4908_v26  ;;  %5018 = vrot.lane.b32.xlu1 %v5009_v44, %s12980_s0  ;;  %12153 = vmatprep.subr.mxu1 %v5315_v58  ;;  %v14851_v26 = vand.u32 4294901760, %v10654_v24 }
 0x531   :  { %v4998_v15 = vpop.f32.mrf.mxu1  ;;  %12154 = vmatpush3.msra.mxu1 %v5315_v58  ;;  %12142 = vmatpush3.msra.mxu0 %v14830_v1  ;;  %v14846_v0 = vand.u32 4294901760, %v14836_v7 }
 0x532   :  { %v5011_v39 = vadd.f32 1e-06, %v5005_v33  ;;  %v4999_v53 = vadd.f32 %v4998_v15, %v4902_v55  ;;  %5016 = vrot.lane.b32.xlu0 %v5008_v36, %s12980_s0  ;;  %v14861_v3 = vsub.f32 %v10654_v24, %v14851_v26 }
 0x533   :  { %v5321_v44 = vsub.f32 %v14836_v7, %v14846_v0 }
 0x534   :  { %v5010_v30 = vadd.f32 1e-06, %v4999_v53  ;;  %5022 = vrot.lane.b32.xlu1 %v5011_v39, %s12980_s0  ;;  %v14868_v15 = vand.u32 4294901760, %v14861_v3 }
 0x535   :  { %v5322_v36 = vand.u32 4294901760, %v5321_v44 }
 0x536   :  { %5020 = vrot.lane.b32.xlu0 %v5010_v30, %s12980_s0 }
 0x537   :  { %12155 = vmatprep.subr.mxu1 %v5322_v36 }
 0x538   :  { %12156 = vmatpush3.msra.mxu1 %v5322_v36 }
 0x53a   :  { %5062 = vrot.lane.b32.xlu0 %v10650_v45, %s12982_s28 }
 0x5a2   :  { %v5019_v60 = vpop.permute.xlu1 %5018 }
 0x5a3   :  { %12909 = vrcp.f32 %v5019_v60  ;;  %v16426_v60 = vld [vmem:[#allocation25_spill] sm:$0xff] }
 0x5a4   :  { %v5017_v16 = vpop.permute.xlu0 %5016 }
 0x5a5   :  { %12911 = vrcp.f32 %v5017_v16 }
 0x5a6   :  { %v5023_v17 = vpop.permute.xlu1 %5022 }
 0x5a8   :  { %v5021_v4 = vpop.permute.xlu0 %5020 }
 0x5a9   :  { %12913 = vrcp.f32 %v5021_v4  ;;  %v16427_v4 = vld [vmem:[#allocation28_spill] sm:$0xff] }
 0x5aa   :  { %12915 = vrcp.f32 %v5023_v17 }
 0x5ac   :  { %v5063_v55 = vpop.permute.xlu0 %5062 }
 0x5b0   :  { %v12910_v25 = vpop.eup %12909 }
 0x5b1   :  { %v5031_v41 = vmul.f32 %v12910_v25, %v4993_v8  ;;  %v14838_v8 = vand.u32 4294901760, %v10655_v11 }
 0x5b2   :  { %v12912_v19 = vpop.eup %12911 }
 0x5b3   :  { %5042 = vrot.lane.b32.xlu1 %v5031_v41, %s12982_s28  ;;  %v5029_v54 = vmul.f32 %v12912_v19, %v4987_v59  ;;  %v14849_v52 = vsub.f32 %v10655_v11, %v14838_v8  ;;  %12143 = vmatprep.subr.mxu0 %v14838_v8  ;;  %v16429_v11 = vld [vmem:[#allocation31_spill] sm:$0xff] }
 0x5b4   :  { %12144 = vmatpush3.msra.mxu0 %v14838_v8 }
 0x5b5   :  { %5040 = vrot.lane.b32.xlu0 %v5029_v54, %s12982_s28  ;;  %v14858_v59 = vand.u32 4294901760, %v14849_v52  ;;  %12145 = vmatprep.subr.mxu0 %v14851_v26 }
 0x5b6   :  { %v12914_v18 = vpop.eup %12913  ;;  %12146 = vmatpush3.msra.mxu0 %v14851_v26 }
 0x5b7   :  { %v5033_v56 = vmul.f32 %v12914_v18, %v4999_v53  ;;  %v12916_v62 = vpop.eup %12915  ;;  %12167 = vmatprep.subr.mxu0 %v14817_v57  ;;  %v5335_v53 = vsub.f32 %v14861_v3, %v14868_v15 }
 0x5b8   :  { %v5035_v46 = vmul.f32 %v12916_v62, %v5005_v33  ;;  %v5328_v33 = vsub.f32 %v14849_v52, %v14858_v59 }
 0x5b9   :  { %5075 = vrot.lane.b32.xlu0 %v10651_v20, %s12982_s28  ;;  %5044 = vrot.lane.b32.xlu1 %v5033_v56, %s12982_s28  ;;  %v5336_v45 = vand.u32 4294901760, %v5335_v53  ;;  %v16428_v20 = vld [vmem:[#allocation34_spill] sm:$0xff] }
 0x5ba   :  { %v5329_v39 = vand.u32 4294901760, %v5328_v33 }
 0x5bc   :  { %12157 = vmatprep.subr.mxu1 %v5329_v39 }
 0x5bd   :  { %5046 = vrot.lane.b32.xlu1 %v5035_v46, %s12982_s28  ;;  %12158 = vmatpush3.msra.mxu1 %v5329_v39 }
 0x5be   :  { %12159 = vmatprep.subr.mxu1 %v5336_v45 }
 0x5bf   :  { %12160 = vmatpush3.msra.mxu1 %v5336_v45 }
 0x5c0   :  { %12181 = vmatprep.subr.mxu1 %v14814_v29 }
 0x625   :  { %v5043_v30 = vpop.permute.xlu1 %5042 }
 0x626   :  { %v5053_v16 = vadd.f32 %v5043_v30, %v16426_v60  ;;  %v16430_v60 = vld [vmem:[#allocation6_spill] sm:$0xff] }
 0x627   :  { %v5041_v17 = vpop.permute.xlu0 %5040 }
 0x628   :  { %v5052_v25 = vadd.f32 %v5041_v17, %v16427_v4  ;;  %v5066_v41 = vmul.f32 %v5063_v55, %v5053_v16  ;;  %v16432_v17 = vld [vmem:[#allocation7_spill] sm:$0xff] }
 0x62a   :  { %v5065_v19 = vmul.f32 %v5063_v55, %v5052_v25 }
 0x62b   :  { %v5045_v54 = vpop.permute.xlu1 %5044  ;;  %v5076_v18 = vpop.permute.xlu0 %5075 }
 0x62c   :  { %v5054_v56 = vadd.f32 %v5045_v54, %v16428_v20  ;;  %v5079_v62 = vadd.f32 %v5076_v18, %v5066_v41  ;;  %v5078_v37 = vadd.f32 %v5076_v18, %v5065_v19 }
 0x62e   :  { %v5067_v46 = vmul.f32 %v5063_v55, %v5054_v56  ;;  %v5083_v38 = vmax.f32 %v5079_v62, 0.0  ;;  %v5082_v58 = vmax.f32 %v5078_v37, 0.0  ;;  %v10663_v37 = vld [vmem:[%s16060_s11 + $0x38] sm:$0xff] }
 0x62f   :  { %v5047_v13 = vpop.permute.xlu1 %5046 }
 0x630   :  { %v5055_v24 = vadd.f32 %v5047_v13, %v16429_v11  ;;  %5092 = vrot.lane.b32.xlu1 %v5083_v38, %s12982_s28  ;;  %5090 = vrot.lane.b32.xlu0 %v5082_v58, %s12982_s28  ;;  %v5080_v44 = vadd.f32 %v5076_v18, %v5067_v46  ;;  %v14915_v38 = vld [vmem:[%s16064_s15] ss:$0 sm:$0xff] }
 0x632   :  { %v5068_v36 = vmul.f32 %v5063_v55, %v5055_v24  ;;  %v5084_v33 = vmax.f32 %v5080_v44, 0.0  ;;  %v10662_v44 = vld [vmem:[%s16060_s11 + $0x30] sm:$0xff] }
 0x634   :  { %5094 = vrot.lane.b32.xlu0 %v5084_v33, %s12982_s28  ;;  %v5081_v39 = vadd.f32 %v5076_v18, %v5068_v36  ;;  %v16434_v18 = vld [vmem:[#allocation9_spill] sm:$0xff]  ;;  %v5113_v36 = vmul.f32 %v14915_v38, %v14525_v40  ;;  %v16436_v33 = vld [vmem:[#allocation8_spill] sm:$0xff] }
 0x635   :  { %v14943_v40 = vld [vmem:[%s16065_s16] ss:$0 sm:$0xff] }
 0x636   :  { %v5085_v53 = vmax.f32 %v5081_v39, 0.0  ;;  %v5128_v9 = vadd.f32 %v14943_v40, %v5113_v36 }
 0x638   :  { %5096 = vrot.lane.b32.xlu1 %v5085_v53, %s12982_s28  ;;  %v14931_v53 = vand.u32 4294901760, %v10663_v37 }
 0x6a2   :  { %v5093_v30 = vpop.permute.xlu1 %5092  ;;  %v5091_v45 = vpop.permute.xlu0 %5090 }
 0x6a3   :  { %v14883_v16 = vadd.f32 %v5093_v30, %v16430_v60  ;;  %v14886_v4 = vadd.f32 %v5091_v45, %v16432_v17  ;;  %v5114_v17 = vmul.f32 %v14915_v38, %v14533_v12  ;;  %v5115_v12 = vmul.f32 %v14915_v38, %v14519_v51 }
 0x6a4   :  { %v5116_v51 = vmul.f32 %v14915_v38, %v14528_v43 }
 0x6a5   :  { %16431 = vst [vmem:[#allocation81_spill] sm:$0xff] %v14883_v16  ;;  %16433 = vst [vmem:[#allocation51_spill] sm:$0xff] %v14886_v4  ;;  %v5169_v25 = vsel %vm1510_vm4, %v14883_v16, 0  ;;  %v5166_v55 = vsel %vm1510_vm4, %v14886_v4, 0  ;;  %v5130_v43 = vadd.f32 %v14943_v40, %v5115_v12 }
 0x6a6   :  { %v14892_v41 = vand.u32 4294901760, %v5169_v25  ;;  %v14894_v19 = vand.u32 4294901760, %v5166_v55  ;;  %v5095_v54 = vpop.permute.xlu0 %5094  ;;  %v5131_v12 = vadd.f32 %v14943_v40, %v5116_v51 }
 0x6a7   :  { %v14897_v20 = vadd.f32 %v5095_v54, %v16434_v18 }
 0x6a8   :  { %v14900_v56 = vsub.f32 %v5169_v25, %v14892_v41  ;;  %v14903_v62 = vsub.f32 %v5166_v55, %v14894_v19  ;;  %12161 = vmatprep.mubr.f32.mxu1 %v14894_v19  ;;  %v14950_v55 = vand.u32 4294901760, %v10662_v44 }
 0x6a9   :  { %16435 = vst [vmem:[#allocation71_spill] sm:$0xff] %v14897_v20  ;;  %v5172_v46 = vsel %vm1510_vm4, %v14897_v20, 0  ;;  %12162 = vmatmul.mubr.f32.vlgmr.msra.gmra.mxu1 %v14892_v41  ;;  %v5117_v20 = vmul.f32 %v14915_v38, %v14512_v23 }
 0x6aa   :  { %v5258_v58 = vand.u32 4294901760, %v14900_v56  ;;  %v14918_v13 = vand.u32 4294901760, %v5172_v46  ;;  %v5097_v11 = vpop.permute.xlu1 %5096  ;;  %12182 = vmatpush3.msra.mxu1 %v14814_v29  ;;  %v5248_v24 = vand.u32 4294901760, %v14903_v62  ;;  %v14985_v23 = vsub.f32 %v10662_v44, %v14950_v55 }
 0x6ab   :  { %v14928_v39 = vadd.f32 %v5097_v11, %v16436_v33  ;;  %12183 = vmatprep.subr.mxu1 %v14830_v1  ;;  %v10661_v33 = vld [vmem:[%s16060_s11 + $0x28] sm:$0xff]  ;;  %v5132_v44 = vadd.f32 %v14943_v40, %v5117_v20  ;;  %v5119_v20 = vmul.f32 %v14915_v38, %v14521_v28 }
 0x6ac   :  { %v5259_v30 = vsub.f32 %v14900_v56, %v5258_v58  ;;  %v14935_v45 = vsub.f32 %v5172_v46, %v14918_v13  ;;  %12164 = vmatprep.mubr.f32.mxu1 %v14918_v13  ;;  %12184 = vmatpush3.msra.mxu1 %v14830_v1  ;;  %v5249_v60 = vsub.f32 %v14903_v62, %v5248_v24  ;;  %v14975_v36 = vand.u32 4294901760, %v10661_v33 }
 0x6ad   :  { %16437 = vst [vmem:[#allocation62_spill] sm:$0xff] %v14928_v39  ;;  %v5175_v25 = vsel %vm1510_vm4, %v14928_v39, 0  ;;  %12185 = vmatprep.subr.mxu1 %v14838_v8 }
 0x6ae   :  { %v5260_v54 = vand.u32 4294901760, %v5259_v30  ;;  %v14952_v18 = vand.u32 4294901760, %v5175_v25  ;;  %v5250_v46 = vand.u32 4294901760, %v5249_v60  ;;  %12186 = vmatpush3.msra.mxu1 %v14838_v8  ;;  %v5268_v11 = vand.u32 4294901760, %v14935_v45 }
 0x6af   :  { %12187 = vmatprep.subr.mxu1 %v14851_v26  ;;  %v14964_v30 = vsub.f32 %v10663_v37, %v14931_v53  ;;  %v10660_v37 = vld [vmem:[%s16060_s11 + $0x20] sm:$0xff] }
 0x6b0   :  { %v14967_v60 = vsub.f32 %v5175_v25, %v14952_v18  ;;  %12147 = vmatprep.mubr.f32.mxu0 %v5250_v46  ;;  %12165 = vmatmul.mubr.f32.gmra.mxu1 %v14952_v18  ;;  %v5269_v4 = vsub.f32 %v14935_v45, %v5268_v11  ;;  %v5129_v25 = vadd.f32 %v14943_v40, %v5114_v17 }
 0x6b1   :  { %12148 = vmatmul.mubr.f32.vlgmr.msra.gmra.mxu0 %v5260_v54  ;;  %12189 = vmatprep.mubr.f32.mxu1 %v5248_v24  ;;  %v5136_v24 = vmax.f32 %v5128_v9, 0.0  ;;  %v14991_v54 = vand.u32 4294901760, %v14964_v30  ;;  %v15001_v9 = vsub.f32 %v10661_v33, %v14975_v36 }
 0x6b2   :  { %v5278_v46 = vand.u32 4294901760, %v14967_v60  ;;  %12188 = vmatpush3.msra.mxu1 %v14851_v26  ;;  %v5270_v16 = vand.u32 4294901760, %v5269_v4  ;;  %12168 = vmatpush3.msra.mxu0 %v14817_v57  ;;  %v14994_v4 = vand.u32 4294901760, %v10660_v37  ;;  %v5118_v57 = vmul.f32 %v14915_v38, %v14503_v5 }
 0x6b3   :  { %12209 = vmatprep.subr.mxu1 %v14814_v29  ;;  %12169 = vmatprep.subr.mxu0 %v14836_v7  ;;  %v5137_v39 = vmax.f32 %v5129_v25, 0.0  ;;  %v5138_v5 = vmax.f32 %v5130_v43, 0.0  ;;  %v6005_v33 = vsub.f32 %v14964_v30, %v14991_v54  ;;  %v5120_v25 = vmul.f32 %v14915_v38, %v14510_v48 }
 0x6b4   :  { %12150 = vmatprep.mubr.f32.mxu0 %v5270_v16  ;;  %12190 = vmatmul.mubr.f32.vlgmr.msra.gmra.mxu1 %v5258_v58  ;;  %v5279_v17 = vsub.f32 %v14967_v60, %v5278_v46  ;;  %v15007_v58 = vand.u32 4294901760, %v14985_v23  ;;  %v5133_v51 = vadd.f32 %v14943_v40, %v5118_v57  ;;  %v15025_v28 = vand.u32 4294901760, %v15001_v9 }
 0x6b5   :  { %12192 = vmatprep.mubr.f32.mxu1 %v5268_v11  ;;  %12210 = vmatpush3.msra.mxu1 %v14814_v29  ;;  %v16438_v11 = vld [vmem:[#allocation11_spill] sm:$0xff]  ;;  %v5139_v43 = vmax.f32 %v5131_v12, 0.0  ;;  %v5134_v38 = vadd.f32 %v14943_v40, %v5119_v20  ;;  %v16441_v12 = vld [vmem:[#allocation12_spill] sm:$0xff] }
 0x6b6   :  { %12211 = vmatprep.subr.mxu1 %v14830_v1  ;;  %12170 = vmatpush3.msra.mxu0 %v14836_v7  ;;  %v5280_v16 = vand.u32 4294901760, %v5279_v17  ;;  %v5144_v29 = vadd.f32 %v5136_v24, %v16438_v11  ;;  %v15017_v7 = vsub.f32 %v10660_v37, %v14994_v4  ;;  %v16439_v24 = vld [vmem:[#allocation10_spill] sm:$0xff]  ;;  %v6012_v37 = vsub.f32 %v14985_v23, %v15007_v58  ;;  %v16442_v11 = vld [vmem:[#allocation15_spill] sm:$0xff] }
 0x6b7   :  { %12212 = vmatpush3.msra.mxu1 %v14830_v1  ;;  %12171 = vmatprep.subr.mxu0 %v14849_v52  ;;  %v5140_v1 = vmax.f32 %v5132_v44, 0.0  ;;  %v5145_v17 = vadd.f32 %v5137_v39, %v16439_v24  ;;  %v5135_v39 = vadd.f32 %v14943_v40, %v5120_v25  ;;  %v6019_v44 = vsub.f32 %v15001_v9, %v15025_v28 }
 0x6b8   :  { %12151 = vmatmul.mubr.f32.gmra.mxu0 %v5280_v16  ;;  %12193 = vmatmul.mubr.f32.gmra.mxu1 %v5278_v46  ;;  %v16440_v46 = vld [vmem:[#allocation13_spill] sm:$0xff]  ;;  %v5805_v57 = vsel %vm1510_vm4, %v5144_v29, 0  ;;  %v5147_v16 = vadd.f32 %v5139_v43, %v16441_v12  ;;  %v5142_v29 = vmax.f32 %v5134_v38, 0.0 }
 0x6b9   :  { %12213 = vmatprep.subr.mxu1 %v14838_v8  ;;  %12172 = vmatpush3.msra.mxu0 %v14849_v52  ;;  %v5146_v48 = vadd.f32 %v5138_v5, %v16440_v46  ;;  %v6006_v52 = vand.u32 4294901760, %v6005_v33  ;;  %v5808_v5 = vsel %vm1510_vm4, %v5145_v17, 0  ;;  %v15051_v20 = vand.u32 4294901760, %v5805_v57  ;;  %v16444_v17 = vld [vmem:[#allocation17_spill] sm:$0xff] }
 0x6ba   :  { %12175 = vmatprep.mubr.f32.mxu0 %v14903_v62  ;;  %12214 = vmatpush3.msra.mxu1 %v14838_v8  ;;  %v15040_v8 = vand.u32 4294901760, %v15017_v7  ;;  %v5141_v62 = vmax.f32 %v5133_v51, 0.0  ;;  %v5148_v40 = vadd.f32 %v5140_v1, %v16442_v11  ;;  %v5143_v33 = vmax.f32 %v5135_v39, 0.0  ;;  %v16443_v1 = vld [vmem:[#allocation14_spill] sm:$0xff] }
 0x6bb   :  { %12217 = vmatprep.mubr.f32.mxu1 %v14894_v19  ;;  %12173 = vmatprep.subr.mxu0 %v14861_v3  ;;  %v15060_v51 = vand.u32 4294901760, %v5808_v5  ;;  %v6020_v25 = vand.u32 4294901760, %v6019_v44  ;;  %v15069_v24 = vsub.f32 %v5805_v57, %v15051_v20 }
 0x6bc   :  { %12215 = vmatprep.subr.mxu1 %v14851_v26  ;;  %12174 = vmatpush3.msra.mxu0 %v14861_v3  ;;  %v6013_v3 = vand.u32 4294901760, %v6012_v37  ;;  %v5149_v43 = vadd.f32 %v5141_v62, %v16443_v1  ;;  %v5150_v37 = vadd.f32 %v5142_v29, %v16444_v17  ;;  %v5817_v46 = vsel %vm1510_vm4, %v5148_v40, 0 }
 0x6bd   :  { %12216 = vmatpush3.msra.mxu1 %v14851_v26  ;;  %12176 = vmatmul.mubr.f32.vlgmr.msra.gmra.mxu0 %v14900_v56  ;;  %v5811_v26 = vsel %vm1510_vm4, %v5146_v48, 0  ;;  %v6026_v56 = vsub.f32 %v15017_v7, %v15040_v8  ;;  %v15085_v62 = vand.u32 4294901760, %v5817_v46 }
 0x6be   :  { %12195 = vmatprep.subr.mxu0 %v14823_v42  ;;  %12218 = vmatmul.mubr.f32.vlgmr.msra.gmra.mxu1 %v14892_v41  ;;  %v5820_v39 = vsel %vm1510_vm4, %v5149_v43, 0 }
 0x6bf   :  { %12243 = vmatprep.subr.mxu1 %v6006_v52  ;;  %12178 = vmatprep.mubr.f32.mxu0 %v14935_v45  ;;  %v15065_v45 = vand.u32 4294901760, %v5811_v26  ;;  %v6027_v48 = vand.u32 4294901760, %v6026_v56 }
 0x6c0   :  { %12196 = vmatpush3.msra.mxu0 %v14823_v42  ;;  %12220 = vmatprep.mubr.f32.mxu1 %v14918_v13  ;;  %v5814_v42 = vsel %vm1510_vm4, %v5147_v16, 0  ;;  %v15100_v16 = vand.u32 4294901760, %v5820_v39 }
 0x6c1   :  { %12244 = vmatpush3.msra.mxu1 %v6006_v52  ;;  %12197 = vmatprep.subr.mxu0 %v14846_v0  ;;  %v15078_v52 = vsub.f32 %v5808_v5, %v15060_v51  ;;  %v15081_v57 = vand.u32 4294901760, %v5814_v42  ;;  %v15089_v44 = vsub.f32 %v5811_v26, %v15065_v45 }
 0x6c2   :  { %12245 = vmatprep.subr.mxu1 %v6013_v3  ;;  %12198 = vmatpush3.msra.mxu0 %v14846_v0  ;;  %v16445_v0 = vld [vmem:[#allocation16_spill] sm:$0xff]  ;;  %v15123_v29 = vsub.f32 %v5820_v39, %v15100_v16 }
 0x6c3   :  { %12246 = vmatpush3.msra.mxu1 %v6013_v3  ;;  %12179 = vmatmul.mubr.f32.gmra.mxu0 %v14967_v60  ;;  %v5151_v38 = vadd.f32 %v5143_v33, %v16445_v0  ;;  %v5899_v60 = vand.u32 4294901760, %v15069_v24  ;;  %v15098_v12 = vsub.f32 %v5814_v42, %v15081_v57  ;;  %v5919_v3 = vand.u32 4294901760, %v15089_v44 }
 0x6c4   :  { %12199 = vmatprep.subr.mxu0 %v14858_v59  ;;  %12221 = vmatmul.mubr.f32.gmra.mxu1 %v14952_v18  ;;  %v5949_v17 = vand.u32 4294901760, %v15123_v29 }
 0x6c5   :  { %12247 = vmatprep.subr.mxu1 %v6020_v25  ;;  %12200 = vmatpush3.msra.mxu0 %v14858_v59  ;;  %v5823_v59 = vsel %vm1510_vm4, %v5150_v37, 0  ;;  %v5826_v5 = vsel %vm1510_vm4, %v5151_v38, 0  ;;  %v5929_v26 = vand.u32 4294901760, %v15098_v12  ;;  %v5920_v33 = vsub.f32 %v15089_v44, %v5919_v3 }
 0x6c6   :  { %12203 = vmatprep.mubr.f32.mxu0 %v14894_v19  ;;  %12248 = vmatpush3.msra.mxu1 %v6020_v25  ;;  %v5909_v19 = vand.u32 4294901760, %v15078_v52  ;;  %v15109_v11 = vand.u32 4294901760, %v5823_v59  ;;  %v5950_v38 = vsub.f32 %v15123_v29, %v5949_v17 }
 0x6c7   :  { %12251 = vmatprep.mubr.f32.mxu1 %v15051_v20  ;;  %12201 = vmatprep.subr.mxu0 %v14868_v15  ;;  %v5921_v37 = vand.u32 4294901760, %v5920_v33 }
 0x6c8   :  { %12249 = vmatprep.subr.mxu1 %v6027_v48  ;;  %12202 = vmatpush3.msra.mxu0 %v14868_v15  ;;  %v5900_v15 = vsub.f32 %v15069_v24, %v5899_v60  ;;  %v5910_v40 = vsub.f32 %v15078_v52, %v5909_v19  ;;  %v15134_v1 = vsub.f32 %v5823_v59, %v15109_v11 }
 0x6c9   :  { %12250 = vmatpush3.msra.mxu1 %v6027_v48  ;;  %12204 = vmatmul.mubr.f32.vlgmr.msra.gmra.mxu0 %v14892_v41  ;;  %v15112_v41 = vsub.f32 %v5817_v46, %v15085_v62 }
 0x6ca   :  { %12223 = vmatprep.subr.mxu0 %v14931_v53  ;;  %12252 = vmatmul.mubr.f32.vlgmr.msra.gmra.mxu1 %v15060_v51  ;;  %v5901_v56 = vand.u32 4294901760, %v5900_v15  ;;  %v5911_v43 = vand.u32 4294901760, %v5910_v40  ;;  %v5959_v48 = vand.u32 4294901760, %v15134_v1  ;;  %v5951_v15 = vand.u32 4294901760, %v5950_v38 }
 0x6cb   :  { %12206 = vmatprep.mubr.f32.mxu0 %v14918_v13  ;;  %12224 = vmatpush3.msra.mxu0 %v14931_v53  ;;  %v15127_v13 = vand.u32 4294901760, %v5826_v5  ;;  %v5939_v25 = vand.u32 4294901760, %v15112_v41 }
 0x6cc   :  { %12254 = vmatprep.mubr.f32.mxu1 %v15065_v45  ;;  %12225 = vmatprep.subr.mxu0 %v14950_v55 }
 0x6cd   :  { %12226 = vmatpush3.msra.mxu0 %v14950_v55  ;;  %12283 = vmatprep.subr.mxu1 %v14931_v53  ;;  %v15143_v42 = vsub.f32 %v5826_v5, %v15127_v13  ;;  %v5940_v46 = vsub.f32 %v15112_v41, %v5939_v25  ;;  %v5960_v5 = vsub.f32 %v15134_v1, %v5959_v48 }
 0x6ce   :  { %12207 = vmatmul.mubr.f32.gmra.mxu0 %v14952_v18  ;;  %12227 = vmatprep.subr.mxu0 %v14975_v36  ;;  %v5930_v18 = vsub.f32 %v15098_v12, %v5929_v26 }
 0x6cf   :  { %12255 = vmatmul.mubr.f32.gmra.mxu1 %v15081_v57  ;;  %12228 = vmatpush3.msra.mxu0 %v14975_v36  ;;  %v5969_v39 = vand.u32 4294901760, %v15143_v42  ;;  %v5941_v59 = vand.u32 4294901760, %v5940_v46 }
 0x6d0   :  { %12231 = vmatprep.mubr.f32.mxu0 %v5901_v56  ;;  %12257 = vmatprep.mubr.f32.mxu1 %v15085_v62  ;;  %v5931_v0 = vand.u32 4294901760, %v5930_v18  ;;  %v5961_v56 = vand.u32 4294901760, %v5960_v5 }
 0x6d1   :  { %12229 = vmatprep.subr.mxu0 %v14994_v4  ;;  %12284 = vmatpush3.msra.mxu1 %v14931_v53  ;;  %v5970_v40 = vsub.f32 %v15143_v42, %v5969_v39 }
 0x6d2   :  { %12230 = vmatpush3.msra.mxu0 %v14994_v4  ;;  %12285 = vmatprep.subr.mxu1 %v14950_v55 }
 0x6d3   :  { %12232 = vmatmul.mubr.f32.vlgmr.msra.gmra.mxu0 %v5911_v43  ;;  %12258 = vmatmul.mubr.f32.gmra.mxu1 %v15100_v16 }
 0x6d4   :  { %12234 = vmatprep.mubr.f32.mxu0 %v5921_v37  ;;  %12260 = vmatprep.mubr.f32.mxu1 %v15109_v11 }
 0x6d5   :  { %12286 = vmatpush3.msra.mxu1 %v14950_v55  ;;  %12263 = vmatprep.subr.mxu0 %v14964_v30 }
 0x6d6   :  { %12287 = vmatprep.subr.mxu1 %v14975_v36  ;;  %12264 = vmatpush3.msra.mxu0 %v14964_v30  ;;  %v5971_v30 = vand.u32 4294901760, %v5970_v40 }
 0x6d7   :  { %12235 = vmatmul.mubr.f32.gmra.mxu0 %v5931_v0  ;;  %12261 = vmatmul.mubr.f32.gmra.mxu1 %v15127_v13 }
 0x6d8   :  { %12237 = vmatprep.mubr.f32.mxu0 %v5941_v59  ;;  %12288 = vmatpush3.msra.mxu1 %v14975_v36 }
 0x6d9   :  { %12291 = vmatprep.mubr.f32.mxu1 %v5899_v60  ;;  %12289 = vmatprep.subr.mxu1 %v14994_v4 }
 0x6da   :  { %12290 = vmatpush3.msra.mxu1 %v14994_v4  ;;  %12265 = vmatprep.subr.mxu0 %v14985_v23 }
 0x6db   :  { %12238 = vmatmul.mubr.f32.gmra.mxu0 %v5951_v15  ;;  %12292 = vmatmul.mubr.f32.vlgmr.msra.gmra.mxu1 %v5909_v19 }
 0x6dc   :  { %12240 = vmatprep.mubr.f32.mxu0 %v5961_v56  ;;  %12294 = vmatprep.mubr.f32.mxu1 %v5919_v3 }
 0x6dd   :  { %12266 = vmatpush3.msra.mxu0 %v14985_v23  ;;  %12323 = vmatprep.subr.mxu1 %v14931_v53 }
 0x6de   :  { %12267 = vmatprep.subr.mxu0 %v15001_v9  ;;  %12324 = vmatpush3.msra.mxu1 %v14931_v53  ;;  %v16446_v53 = vld [vmem:[#allocation18_spill] sm:$0xff] }
 0x6df   :  { %12241 = vmatmul.mubr.f32.gmra.mxu0 %v5971_v30  ;;  %12295 = vmatmul.mubr.f32.gmra.mxu1 %v5929_v26 }
 0x6e0   :  { %12268 = vmatpush3.msra.mxu0 %v15001_v9  ;;  %12271 = vmatprep.mubr.f32.mxu0 %v15069_v24  ;;  %v10659_v24 = vld [vmem:[%s16059_s10 + $0x1] ss:$0 sm:$0xff]  ;;  %s12984_s10 = smov [#allocation3]  }
 0x6e1   :  { %12297 = vmatprep.mubr.f32.mxu1 %v5939_v25  ;;  %12269 = vmatprep.subr.mxu0 %v15017_v7  ;;  %s10630_s1 = sshll.u32 %s12984_s10, 4  ;;  %s10631_s1 = int_to_ptr.vmem [resolvable:$true] %s10630_s1 }
 0x6e2   :  { %12270 = vmatpush3.msra.mxu0 %v15017_v7  ;;  %12325 = vmatprep.subr.mxu1 %v14950_v55  ;;  %p12962_p1 = scmp.lt.s32.totalorder %s10631_s1, %s10631_s1 }
 0x6e3   :  { %12272 = vmatmul.mubr.f32.vlgmr.msra.gmra.mxu0 %v15078_v52  ;;  %12298 = vmatmul.mubr.f32.gmra.mxu1 %v5949_v17 }
 0x6e4   :  { %12274 = vmatprep.mubr.f32.mxu0 %v15089_v44  ;;  %12300 = vmatprep.mubr.f32.mxu1 %v5959_v48 }
 0x6e5   :  { %12326 = vmatpush3.msra.mxu1 %v14950_v55  ;;  %12303 = vmatprep.subr.mxu0 %v14991_v54  ;;  %v16447_v55 = vld [vmem:[#allocation21_spill] sm:$0xff] }
 0x6e6   :  { %12327 = vmatprep.subr.mxu1 %v14975_v36  ;;  %12304 = vmatpush3.msra.mxu0 %v14991_v54 }
 0x6e7   :  { %12275 = vmatmul.mubr.f32.gmra.mxu0 %v15098_v12  ;;  %12301 = vmatmul.mubr.f32.gmra.mxu1 %v5969_v39 }
 0x6e8   :  { %12277 = vmatprep.mubr.f32.mxu0 %v15112_v41  ;;  %12328 = vmatpush3.msra.mxu1 %v14975_v36 }
 0x6e9   :  { %12331 = vmatprep.mubr.f32.mxu1 %v15051_v20  ;;  %12329 = vmatprep.subr.mxu1 %v14994_v4 }
 0x6ea   :  { %12330 = vmatpush3.msra.mxu1 %v14994_v4  ;;  %12305 = vmatprep.subr.mxu0 %v15007_v58 }
 0x6eb   :  { %12278 = vmatmul.mubr.f32.gmra.mxu0 %v15123_v29  ;;  %12332 = vmatmul.mubr.f32.vlgmr.msra.gmra.mxu1 %v15060_v51 }
 0x6ec   :  { %12280 = vmatprep.mubr.f32.mxu0 %v15134_v1  ;;  %12334 = vmatprep.mubr.f32.mxu1 %v15065_v45 }
 0x6ed   :  { %12306 = vmatpush3.msra.mxu0 %v15007_v58 }
 0x6ee   :  { %12307 = vmatprep.subr.mxu0 %v15025_v28 }
 0x6ef   :  { %12281 = vmatmul.mubr.f32.gmra.mxu0 %v15143_v42  ;;  %12335 = vmatmul.mubr.f32.gmra.mxu1 %v15081_v57 }
 0x6f0   :  { %12308 = vmatpush3.msra.mxu0 %v15025_v28  ;;  %12311 = vmatprep.mubr.f32.mxu0 %v15051_v20 }
 0x6f1   :  { %12337 = vmatprep.mubr.f32.mxu1 %v15085_v62  ;;  %12309 = vmatprep.subr.mxu0 %v15040_v8 }
 0x6f2   :  { %12310 = vmatpush3.msra.mxu0 %v15040_v8 }
 0x6f3   :  { %12312 = vmatmul.mubr.f32.vlgmr.msra.gmra.mxu0 %v15060_v51  ;;  %12338 = vmatmul.mubr.f32.gmra.mxu1 %v15100_v16 }
 0x6f4   :  { %12314 = vmatprep.mubr.f32.mxu0 %v15065_v45  ;;  %12340 = vmatprep.mubr.f32.mxu1 %v15109_v11 }
 0x6f7   :  { %12315 = vmatmul.mubr.f32.gmra.mxu0 %v15081_v57  ;;  %12341 = vmatmul.mubr.f32.gmra.mxu1 %v15127_v13 }
 0x6f8   :  { %12317 = vmatprep.mubr.f32.mxu0 %v15085_v62  ;;  %12383 = vmatprep.mubr.f32.mxu1 %v16446_v53 }
 0x6fb   :  { %12318 = vmatmul.mubr.f32.gmra.mxu0 %v15100_v16 }
 0x6fc   :  { %12320 = vmatprep.mubr.f32.mxu0 %v15109_v11 }
 0x6ff   :  { %12321 = vmatmul.mubr.f32.gmra.mxu0 %v15127_v13 }
 0x700   :  { %12351 = vmatprep.mubr.f32.mxu0 %v16447_v55 }
 0x769   :  { %v12163_v36 = vpop.f32.mrf.mxu1 }
 0x76b   :  { %v5373_v23 = vpop.f32.mrf.mxu1 }
 0x770   :  { %v12166_v54 = vpop.f32.mrf.mxu1 }
 0x771   :  { %v12149_v4 = vpop.f32.mrf.mxu0 }
 0x772   :  { %v5385_v9 = vpop.f32.mrf.mxu1  ;;  %v5263_v57 = vadd.f32 %v12149_v4, %v10659_v24 }
 0x773   :  { %v5252_v7 = vpop.f32.mrf.mxu0 }
 0x774   :  { %v12191_v58 = vpop.f32.mrf.mxu1  ;;  %v5253_v44 = vadd.f32 %v10659_v24, %v5252_v7  ;;  %v5380_v12 = vadd.f32 %v12163_v36, %v5263_v57  ;;  %v15231_v7 = vld [vmem:[%s16061_s12 + $0x1] ss:$0 sm:$0xff] }
 0x776   :  { %v5569_v28 = vpop.f32.mrf.mxu1  ;;  %v5374_v41 = vadd.f32 %v5373_v23, %v5253_v44 }
 0x778   :  { %v12152_v8 = vpop.f32.mrf.mxu0  ;;  %v12194_v20 = vpop.f32.mrf.mxu1 }
 0x779   :  { %v5283_v16 = vadd.f32 %v12152_v8, %v10659_v24 }
 0x77a   :  { %v5272_v51 = vpop.f32.mrf.mxu0  ;;  %v5585_v45 = vpop.f32.mrf.mxu1 }
 0x77b   :  { %v5273_v26 = vadd.f32 %v10659_v24, %v5272_v51  ;;  %v5392_v1 = vadd.f32 %v12166_v54, %v5283_v16 }
 0x77d   :  { %v12177_v52 = vpop.f32.mrf.mxu0  ;;  %v5386_v42 = vadd.f32 %v5385_v9, %v5273_v26 }
 0x77e   :  { %v12219_v60 = vpop.f32.mrf.mxu1  ;;  %v5479_v11 = vadd.f32 %v12177_v52, %v5380_v12 }
 0x77f   :  { %v5471_v62 = vpop.f32.mrf.mxu0 }
 0x780   :  { %v5769_v19 = vpop.f32.mrf.mxu1  ;;  %v5472_v33 = vadd.f32 %v5471_v62, %v5374_v41  ;;  %v5578_v43 = vadd.f32 %v12191_v58, %v5479_v11 }
 0x782   :  { %v5570_v48 = vadd.f32 %v5569_v28, %v5472_v33 }
 0x783   :  { %v12180_v3 = vpop.f32.mrf.mxu0 }
 0x784   :  { %v12222_v29 = vpop.f32.mrf.mxu1  ;;  %v5493_v18 = vadd.f32 %v12180_v3, %v5392_v1 }
 0x785   :  { %v5485_v13 = vpop.f32.mrf.mxu0 }
 0x786   :  { %v5781_v25 = vpop.f32.mrf.mxu1  ;;  %v5486_v0 = vadd.f32 %v5485_v13, %v5386_v42  ;;  %v5594_v15 = vadd.f32 %v12194_v20, %v5493_v18 }
 0x788   :  { %v5586_v36 = vadd.f32 %v5585_v45, %v5486_v0 }
 0x789   :  { %v12205_v17 = vpop.f32.mrf.mxu0 }
 0x78a   :  { %v5683_v37 = vadd.f32 %v12205_v17, %v5578_v43  ;;  %v12253_v46 = vpop.f32.mrf.mxu1 }
 0x78b   :  { %v5676_v38 = vpop.f32.mrf.mxu0 }
 0x78c   :  { %v15219_v39 = vadd.f32 %v12219_v60, %v5683_v37  ;;  %v5677_v59 = vadd.f32 %v5676_v38, %v5570_v48  ;;  %v6064_v5 = vpop.f32.mrf.mxu1 }
 0x78e   :  { %16448 = vst [vmem:[#allocation88_spill] sm:$0xff] %v15219_v39  ;;  %v15221_v40 = vadd.f32 %v5769_v19, %v5677_v59  ;;  %v12208_v56 = vpop.f32.mrf.mxu0  ;;  %v15224_v23 = vand.u32 4294901760, %v15219_v39 }
 0x78f   :  { %v5695_v30 = vadd.f32 %v12208_v56, %v5594_v15  ;;  %v12256_v55 = vpop.f32.mrf.mxu1 }
 0x790   :  { %16449 = vst [vmem:[#allocation61_spill] sm:$0xff] %v15221_v40  ;;  %v5688_v54 = vpop.f32.mrf.mxu0  ;;  %v15234_v28 = vand.u32 4294901760, %v15221_v40  ;;  %v15243_v24 = vsub.f32 %v15219_v39, %v15224_v23 }
 0x791   :  { %v15226_v4 = vadd.f32 %v12222_v29, %v5695_v30  ;;  %v5689_v9 = vadd.f32 %v5688_v54, %v5586_v36  ;;  %v6076_v58 = vpop.f32.mrf.mxu1  ;;  %v16452_v36 = vld [vmem:[#allocation42_spill] sm:$0xff] }
 0x792   :  { %v15254_v19 = vsub.f32 %v15221_v40, %v15234_v28  ;;  %v15266_v13 = vand.u32 4294901760, %v15243_v24 }
 0x793   :  { %16450 = vst [vmem:[#allocation52_spill] sm:$0xff] %v15226_v4  ;;  %v15237_v8 = vand.u32 4294901760, %v15226_v4  ;;  %v15239_v20 = vadd.f32 %v5781_v25, %v5689_v9  ;;  %v12233_v51 = vpop.f32.mrf.mxu0  ;;  %v12259_v45 = vpop.f32.mrf.mxu1 }
 0x794   :  { %v5914_v52 = vadd.f32 %v12233_v51, %v15231_v7  ;;  %v15275_v17 = vand.u32 4294901760, %v15254_v19 }
 0x795   :  { %16451 = vst [vmem:[#allocation101_spill] sm:$0xff] %v15239_v20  ;;  %v6869_v57 = vsub.f32 %v15226_v4, %v15237_v8  ;;  %v15249_v60 = vand.u32 4294901760, %v15239_v20  ;;  %v5903_v62 = vpop.f32.mrf.mxu0  ;;  %v6088_v44 = vpop.f32.mrf.mxu1  ;;  %12343 = vmatprep.subr.mxu0 %v15237_v8 }
 0x796   :  { %v5904_v12 = vadd.f32 %v15231_v7, %v5903_v62  ;;  %12344 = vmatpush3.msra.mxu0 %v15237_v8  ;;  %v6071_v16 = vadd.f32 %v12253_v46, %v5914_v52  ;;  %v6892_v9 = vsub.f32 %v15254_v19, %v15275_v17 }
 0x797   :  { %v6876_v3 = vsub.f32 %v15239_v20, %v15249_v60  ;;  %v12236_v11 = vpop.f32.mrf.mxu0  ;;  %v12262_v41 = vpop.f32.mrf.mxu1  ;;  %12345 = vmatprep.subr.mxu0 %v15249_v60  ;;  %v15261_v29 = vand.u32 4294901760, %v6869_v57 }
 0x798   :  { %v5934_v26 = vadd.f32 %v12236_v11, %v15231_v7  ;;  %12346 = vmatpush3.msra.mxu0 %v15249_v60  ;;  %v6065_v33 = vadd.f32 %v6064_v5, %v5904_v12  ;;  %v6885_v5 = vsub.f32 %v15243_v24, %v15266_v13  ;;  %v16453_v12 = vld [vmem:[#allocation49_spill] sm:$0xff] }
 0x799   :  { %v5923_v25 = vpop.f32.mrf.mxu0  ;;  %v6100_v1 = vpop.f32.mrf.mxu1  ;;  %12347 = vmatprep.subr.mxu0 %v15224_v23  ;;  %v6871_v43 = vsub.f32 %v6869_v57, %v15261_v29  ;;  %v15270_v18 = vand.u32 4294901760, %v6876_v3 }
 0x79a   :  { %v5924_v42 = vadd.f32 %v15231_v7, %v5923_v25  ;;  %12348 = vmatpush3.msra.mxu0 %v15224_v23  ;;  %v6083_v37 = vadd.f32 %v12256_v55, %v5934_v26  ;;  %v6886_v11 = vand.u32 4294901760, %v6885_v5 }
 0x79b   :  { %v12239_v46 = vpop.f32.mrf.mxu0  ;;  %v12293_v48 = vpop.f32.mrf.mxu1  ;;  %12349 = vmatprep.subr.mxu0 %v15234_v28  ;;  %v6872_v0 = vand.u32 4294901760, %v6871_v43  ;;  %v6878_v38 = vsub.f32 %v6876_v3, %v15270_v18 }
 0x79c   :  { %v5954_v59 = vadd.f32 %v12239_v46, %v15231_v7  ;;  %12350 = vmatpush3.msra.mxu0 %v15234_v28  ;;  %v6077_v15 = vadd.f32 %v6076_v58, %v5924_v42  ;;  %v16454_v46 = vld [vmem:[#allocation55_spill] sm:$0xff] }
 0x79d   :  { %v5943_v56 = vpop.f32.mrf.mxu0  ;;  %v6312_v30 = vpop.f32.mrf.mxu1  ;;  %12352 = vmatmul.mubr.f32.vlgmr.msra.gmra.mxu0 %v16452_v36  ;;  %12375 = vmatprep.subr.mxu1 %v6872_v0  ;;  %v6879_v55 = vand.u32 4294901760, %v6878_v38  ;;  %v16456_v36 = vld [vmem:[#allocation66_spill] sm:$0xff] }
 0x79e   :  { %v5944_v54 = vadd.f32 %v15231_v7, %v5943_v56  ;;  %12407 = vmatprep.subr.mxu0 %v6869_v57  ;;  %12376 = vmatpush3.msra.mxu1 %v6872_v0  ;;  %v6095_v51 = vadd.f32 %v12259_v45, %v5954_v59  ;;  %v6893_v45 = vand.u32 4294901760, %v6892_v9 }
 0x79f   :  { %v12242_v52 = vpop.f32.mrf.mxu0  ;;  %v12296_v62 = vpop.f32.mrf.mxu1  ;;  %12408 = vmatpush3.msra.mxu0 %v6869_v57  ;;  %12377 = vmatprep.subr.mxu1 %v6879_v55 }
 0x7a0   :  { %v5974_v58 = vadd.f32 %v12242_v52, %v15231_v7  ;;  %12409 = vmatprep.subr.mxu0 %v6876_v3  ;;  %12354 = vmatprep.mubr.f32.mxu0 %v16453_v12  ;;  %v6089_v26 = vadd.f32 %v6088_v44, %v5944_v54  ;;  %v16458_v52 = vld [vmem:[#allocation72_spill] sm:$0xff]  ;;  %v16460_v12 = vld [vmem:[#allocation74_spill] sm:$0xff] }
 0x7a1   :  { %v5963_v25 = vpop.f32.mrf.mxu0  ;;  %v6328_v43 = vpop.f32.mrf.mxu1  ;;  %12378 = vmatpush3.msra.mxu1 %v6879_v55  ;;  %12410 = vmatpush3.msra.mxu0 %v6876_v3  ;;  %v16457_v55 = vld [vmem:[#allocation22_spill] sm:$0xff] }
 0x7a2   :  { %v5964_v42 = vadd.f32 %v15231_v7, %v5963_v25  ;;  %12355 = vmatmul.mubr.f32.gmra.mxu0 %v16454_v46  ;;  %12379 = vmatprep.subr.mxu1 %v6886_v11  ;;  %v6107_v0 = vadd.f32 %v12262_v41, %v5974_v58  ;;  %v16455_v7 = vld [vmem:[#allocation58_spill] sm:$0xff] }
 0x7a3   :  { %12411 = vmatprep.subr.mxu0 %v15243_v24  ;;  %v12273_v57 = vpop.f32.mrf.mxu0  ;;  %v12299_v38 = vpop.f32.mrf.mxu1  ;;  %12380 = vmatpush3.msra.mxu1 %v6886_v11 }
 0x7a4   :  { %v6194_v59 = vadd.f32 %v12273_v57, %v6071_v16  ;;  %12412 = vmatpush3.msra.mxu0 %v15243_v24  ;;  %12381 = vmatprep.subr.mxu1 %v6893_v45  ;;  %v6101_v44 = vadd.f32 %v6100_v1, %v5964_v42  ;;  %v16463_v57 = vld [vmem:[#allocation27_spill] sm:$0xff] }
 0x7a5   :  { %12413 = vmatprep.subr.mxu0 %v15254_v19  ;;  %v6186_v3 = vpop.f32.mrf.mxu0  ;;  %v6344_v5 = vpop.f32.mrf.mxu1  ;;  %12357 = vmatprep.mubr.f32.mxu0 %v16455_v7 }
 0x7a6   :  { %v6187_v56 = vadd.f32 %v6186_v3, %v6065_v33  ;;  %12382 = vmatpush3.msra.mxu1 %v6893_v45  ;;  %12414 = vmatpush3.msra.mxu0 %v15254_v19  ;;  %v6321_v41 = vadd.f32 %v12293_v48, %v6194_v59  ;;  %v16459_v48 = vld [vmem:[#allocation24_spill] sm:$0xff]  ;;  %v16464_v3 = vld [vmem:[#allocation83_spill] sm:$0xff] }
 0x7a7   :  { %12358 = vmatmul.mubr.f32.gmra.mxu0 %v16456_v36  ;;  %12384 = vmatmul.mubr.f32.vlgmr.msra.gmra.mxu1 %v16457_v55  ;;  %v12276_v16 = vpop.f32.mrf.mxu0  ;;  %v12302_v54 = vpop.f32.mrf.mxu1 }
 0x7a8   :  { %12439 = vmatprep.subr.mxu1 %v15237_v8  ;;  %12471 = vmatprep.subr.mxu0 %v15261_v29  ;;  %v6208_v24 = vadd.f32 %v12276_v16, %v6083_v37  ;;  %v6313_v1 = vadd.f32 %v6312_v30, %v6187_v56  ;;  %v16461_v37 = vld [vmem:[#allocation26_spill] sm:$0xff]  ;;  %v16465_v56 = vld [vmem:[#allocation33_spill] sm:$0xff] }
 0x7a9   :  { %12440 = vmatpush3.msra.mxu1 %v15237_v8  ;;  %v6200_v9 = vpop.f32.mrf.mxu0  ;;  %v6360_v33 = vpop.f32.mrf.mxu1  ;;  %12360 = vmatprep.mubr.f32.mxu0 %v16458_v52 }
 0x7aa   :  { %12441 = vmatprep.subr.mxu1 %v15249_v60  ;;  %v6201_v19 = vadd.f32 %v6200_v9, %v6077_v15  ;;  %12386 = vmatprep.mubr.f32.mxu1 %v16459_v48  ;;  %v6337_v58 = vadd.f32 %v12296_v62, %v6208_v24  ;;  %v16462_v15 = vld [vmem:[#allocation82_spill] sm:$0xff]  ;;  %v16466_v24 = vld [vmem:[#allocation89_spill] sm:$0xff] }
 0x7ab   :  { %12442 = vmatpush3.msra.mxu1 %v15249_v60  ;;  %12361 = vmatmul.mubr.f32.gmra.mxu0 %v16460_v12  ;;  %v12279_v11 = vpop.f32.mrf.mxu0  ;;  %v12333_v25 = vpop.f32.mrf.mxu1  ;;  %v16467_v9 = vld [vmem:[#allocation37_spill] sm:$0xff]  ;;  %v16469_v12 = vld [vmem:[#allocation40_spill] sm:$0xff] }
 0x7ac   :  { %12387 = vmatmul.mubr.f32.gmra.mxu1 %v16461_v37  ;;  %12443 = vmatprep.subr.mxu1 %v15224_v23  ;;  %v6222_v30 = vadd.f32 %v12279_v11, %v6095_v51  ;;  %v6329_v42 = vadd.f32 %v6328_v43, %v6201_v19 }
 0x7ad   :  { %12444 = vmatpush3.msra.mxu1 %v15224_v23  ;;  %v6214_v46 = vpop.f32.mrf.mxu0  ;;  %v6568_v45 = vpop.f32.mrf.mxu1  ;;  %12363 = vmatprep.mubr.f32.mxu0 %v16462_v15  ;;  %v16471_v15 = vld [vmem:[#allocation45_spill] sm:$0xff] }
 0x7ae   :  { %12445 = vmatprep.subr.mxu1 %v15234_v28  ;;  %v6215_v62 = vadd.f32 %v6214_v46, %v6089_v26  ;;  %12389 = vmatprep.mubr.f32.mxu1 %v16463_v57  ;;  %v6353_v59 = vadd.f32 %v12299_v38, %v6222_v30  ;;  %v16468_v38 = vld [vmem:[#allocation91_spill] sm:$0xff]  ;;  %v16470_v30 = vld [vmem:[#allocation93_spill] sm:$0xff] }
 0x7af   :  { %12446 = vmatpush3.msra.mxu1 %v15234_v28  ;;  %12364 = vmatmul.mubr.f32.gmra.mxu0 %v16464_v3  ;;  %v12282_v7 = vpop.f32.mrf.mxu0  ;;  %v12336_v36 = vpop.f32.mrf.mxu1 }
 0x7b0   :  { %12390 = vmatmul.mubr.f32.gmra.mxu1 %v16465_v56  ;;  %12503 = vmatprep.subr.mxu1 %v15237_v8  ;;  %v6236_v51 = vadd.f32 %v12282_v7, %v6107_v0  ;;  %v6345_v43 = vadd.f32 %v6344_v5, %v6215_v62  ;;  %v16473_v7 = vld [vmem:[#allocation96_spill] sm:$0xff] }
 0x7b1   :  { %v6228_v16 = vpop.f32.mrf.mxu0  ;;  %12366 = vmatprep.mubr.f32.mxu0 %v16466_v24  ;;  %12392 = vmatprep.mubr.f32.mxu1 %v16467_v9  ;;  %v6580_v0 = vpop.f32.mrf.mxu1 }
 0x7b2   :  { %v6229_v26 = vadd.f32 %v6228_v16, %v6101_v44  ;;  %v6369_v52 = vadd.f32 %v12302_v54, %v6236_v51  ;;  %v16475_v51 = vld [vmem:[#allocation47_spill] sm:$0xff] }
 0x7b3   :  { %12367 = vmatmul.mubr.f32.gmra.mxu0 %v16468_v38  ;;  %v12313_v19 = vpop.f32.mrf.mxu0  ;;  %v12339_v24 = vpop.f32.mrf.mxu1 }
 0x7b4   :  { %12393 = vmatmul.mubr.f32.gmra.mxu1 %v16469_v12  ;;  %v6458_v11 = vadd.f32 %v12313_v19, %v6321_v41  ;;  %12369 = vmatprep.mubr.f32.mxu0 %v16470_v30  ;;  %v15321_v46 = vadd.f32 %v6360_v33, %v6229_v26  ;;  %v16476_v41 = vld [vmem:[#allocation97_spill] sm:$0xff]  ;;  %v16477_v26 = vld [vmem:[#allocation54_spill] sm:$0xff]  ;;  %v16479_v30 = vld [vmem:[#allocation59_spill] sm:$0xff] }
 0x7b5   :  { %v6451_v5 = vpop.f32.mrf.mxu0  ;;  %12395 = vmatprep.mubr.f32.mxu1 %v16471_v15 }
 0x7b6   :  { %v15324_v62 = vadd.f32 %v12333_v25, %v6458_v11  ;;  %v6452_v3 = vadd.f32 %v6451_v5, %v6313_v1  ;;  %v16478_v25 = vld [vmem:[#allocation100_spill] sm:$0xff]  ;;  %v16480_v5 = vld [vmem:[#allocation19_spill] sm:$0xff] }
 0x7b7   :  { %12370 = vmatmul.mubr.f32.gmra.mxu0 %v16473_v7  ;;  %v12316_v44 = vpop.f32.mrf.mxu0  ;;  %v16481_v7 = vld [vmem:[#allocation60_spill] sm:$0xff] }
 0x7b8   :  { %16472 = vst [vmem:[#allocation75_spill] sm:$0xff] %v15324_v62  ;;  %v15327_v54 = vadd.f32 %v6568_v45, %v6452_v3  ;;  %12396 = vmatmul.mubr.f32.gmra.mxu1 %v16475_v51  ;;  %v6470_v16 = vadd.f32 %v12316_v44, %v6337_v58  ;;  %12372 = vmatprep.mubr.f32.mxu0 %v16476_v41  ;;  %v6592_v58 = vpop.f32.mrf.mxu1 }
 0x7b9   :  { %v6463_v33 = vpop.f32.mrf.mxu0  ;;  %12398 = vmatprep.mubr.f32.mxu1 %v16477_v26 }
 0x7ba   :  { %16474 = vst [vmem:[#allocation44_spill] sm:$0xff] %v15327_v54  ;;  %v15332_v38 = vadd.f32 %v12336_v36, %v6470_v16  ;;  %v6464_v19 = vadd.f32 %v6463_v33, %v6329_v42  ;;  %v16482_v36 = vld [vmem:[#allocation23_spill] sm:$0xff]  ;;  %v16483_v33 = vld [vmem:[#allocation68_spill] sm:$0xff] }
 0x7bb   :  { %12373 = vmatmul.mubr.f32.gmra.mxu0 %v16478_v25  ;;  %v12319_v1 = vpop.f32.mrf.mxu0 }
 0x7bc   :  { %v15335_v11 = vadd.f32 %v6580_v0, %v6464_v19  ;;  %12399 = vmatmul.mubr.f32.gmra.mxu1 %v16479_v30  ;;  %v6482_v45 = vadd.f32 %v12319_v1, %v6353_v59  ;;  %12415 = vmatprep.mubr.f32.mxu0 %v16480_v5  ;;  %v12342_v59 = vpop.f32.mrf.mxu1  ;;  %v16484_v19 = vld [vmem:[#allocation70_spill] sm:$0xff]  ;;  %v16492_v5 = vld [vmem:[#allocation43_spill] sm:$0xff] }
 0x7bd   :  { %v6475_v3 = vpop.f32.mrf.mxu0  ;;  %12401 = vmatprep.mubr.f32.mxu1 %v16481_v7  ;;  %v16487_v1 = vld [vmem:[#allocation78_spill] sm:$0xff] }
 0x7be   :  { %v15340_v44 = vadd.f32 %v12339_v24, %v6482_v45  ;;  %v6476_v41 = vadd.f32 %v6475_v3, %v6345_v43  ;;  %v16485_v43 = vld [vmem:[#allocation30_spill] sm:$0xff]  ;;  %v16486_v24 = vld [vmem:[#allocation32_spill] sm:$0xff]  ;;  %v16490_v45 = vld [vmem:[#allocation39_spill] sm:$0xff] }
 0x7bf   :  { %12416 = vmatmul.mubr.f32.vlgmr.msra.gmra.mxu0 %v16482_v36  ;;  %v12322_v42 = vpop.f32.mrf.mxu0  ;;  %v16496_v3 = vld [vmem:[#allocation53_spill] sm:$0xff]  ;;  %v16499_v36 = vld [vmem:[#allocation48_spill] sm:$0xff] }
 0x7c0   :  { %v15343_v16 = vadd.f32 %v6592_v58, %v6476_v41  ;;  %12402 = vmatmul.mubr.f32.gmra.mxu1 %v16483_v33  ;;  %12472 = vmatpush3.msra.mxu0 %v15261_v29  ;;  %v6494_v0 = vadd.f32 %v12322_v42, %v6369_v52  ;;  %v16488_v29 = vld [vmem:[#allocation35_spill] sm:$0xff]  ;;  %v16489_v52 = vld [vmem:[#allocation20_spill] sm:$0xff]  ;;  %v16497_v41 = vld [vmem:[#allocation41_spill] sm:$0xff] }
 0x7c1   :  { %12473 = vmatprep.subr.mxu0 %v15270_v18  ;;  %12404 = vmatprep.mubr.f32.mxu1 %v16484_v19  ;;  %v16493_v58 = vld [vmem:[#allocation36_spill] sm:$0xff]  ;;  %v16501_v42 = vld [vmem:[#allocation50_spill] sm:$0xff] }
 0x7c2   :  { %v15349_v25 = vadd.f32 %v12342_v59, %v6494_v0  ;;  %12474 = vmatpush3.msra.mxu0 %v15270_v18  ;;  %12418 = vmatprep.mubr.f32.mxu0 %v16485_v43  ;;  %v16491_v18 = vld [vmem:[#allocation29_spill] sm:$0xff]  ;;  %v16502_v0 = vld [vmem:[#allocation67_spill] sm:$0xff]  ;;  %v16503_v59 = vld [vmem:[#allocation56_spill] sm:$0xff] }
 0x7c3   :  { %12475 = vmatprep.subr.mxu0 %v15266_v13  ;;  %12419 = vmatmul.mubr.f32.gmra.mxu0 %v16486_v24  ;;  %v16505_v43 = vld [vmem:[#allocation63_spill] sm:$0xff]  ;;  %v16506_v24 = vld [vmem:[#allocation77_spill] sm:$0xff] }
 0x7c4   :  { %12405 = vmatmul.mubr.f32.gmra.mxu1 %v16487_v1  ;;  %12476 = vmatpush3.msra.mxu0 %v15266_v13  ;;  %v16494_v13 = vld [vmem:[#allocation46_spill] sm:$0xff] }
 0x7c5   :  { %12477 = vmatprep.subr.mxu0 %v15275_v17  ;;  %12421 = vmatprep.mubr.f32.mxu0 %v16488_v29  ;;  %v16507_v29 = vld [vmem:[#allocation65_spill] sm:$0xff] }
 0x7c6   :  { %12478 = vmatpush3.msra.mxu0 %v15275_v17  ;;  %12447 = vmatprep.mubr.f32.mxu1 %v16489_v52  ;;  %v16495_v17 = vld [vmem:[#allocation38_spill] sm:$0xff]  ;;  %v16509_v52 = vld [vmem:[#allocation73_spill] sm:$0xff] }
 0x7c7   :  { %12422 = vmatmul.mubr.f32.gmra.mxu0 %v16490_v45  ;;  %v16510_v45 = vld [vmem:[#allocation86_spill] sm:$0xff] }
 0x7c8   :  { %12448 = vmatmul.mubr.f32.vlgmr.msra.gmra.mxu1 %v16491_v18  ;;  %12424 = vmatprep.mubr.f32.mxu0 %v16492_v5  ;;  %v16511_v18 = vld [vmem:[#allocation76_spill] sm:$0xff]  ;;  %v16512_v5 = vld [vmem:[#allocation79_spill] sm:$0xff] }
 0x7c9   :  { %12504 = vmatpush3.msra.mxu1 %v15237_v8  ;;  %12450 = vmatprep.mubr.f32.mxu1 %v16493_v58  ;;  %v16498_v8 = vld [vmem:[#allocation57_spill] sm:$0xff] }
 0x7ca   :  { %12505 = vmatprep.subr.mxu1 %v15249_v60  ;;  %v16513_v58 = vld [vmem:[#allocation85_spill] sm:$0xff] }
 0x7cb   :  { %12506 = vmatpush3.msra.mxu1 %v15249_v60  ;;  %12425 = vmatmul.mubr.f32.gmra.mxu0 %v16494_v13  ;;  %v16500_v60 = vld [vmem:[#allocation64_spill] sm:$0xff]  ;;  %v16514_v13 = vld [vmem:[#allocation87_spill] sm:$0xff] }
 0x7cc   :  { %12507 = vmatprep.subr.mxu1 %v15224_v23  ;;  %12451 = vmatmul.mubr.f32.gmra.mxu1 %v16495_v17  ;;  %v16515_v17 = vld [vmem:[#allocation92_spill] sm:$0xff] }
 0x7cd   :  { %12508 = vmatpush3.msra.mxu1 %v15224_v23  ;;  %12427 = vmatprep.mubr.f32.mxu0 %v16496_v3  ;;  %v16504_v23 = vld [vmem:[#allocation69_spill] sm:$0xff] }
 0x7ce   :  { %12509 = vmatprep.subr.mxu1 %v15234_v28  ;;  %12453 = vmatprep.mubr.f32.mxu1 %v16497_v41 }
 0x7cf   :  { %12510 = vmatpush3.msra.mxu1 %v15234_v28  ;;  %12428 = vmatmul.mubr.f32.gmra.mxu0 %v16498_v8  ;;  %v16508_v28 = vld [vmem:[#allocation80_spill] sm:$0xff] }
 0x7d0   :  { %12454 = vmatmul.mubr.f32.gmra.mxu1 %v16499_v36  ;;  %12430 = vmatprep.mubr.f32.mxu0 %v16500_v60 }
 0x7d1   :  { %12456 = vmatprep.mubr.f32.mxu1 %v16501_v42 }
 0x7d3   :  { %12431 = vmatmul.mubr.f32.gmra.mxu0 %v16502_v0 }
 0x7d4   :  { %12457 = vmatmul.mubr.f32.gmra.mxu1 %v16503_v59  ;;  %12433 = vmatprep.mubr.f32.mxu0 %v16504_v23 }
 0x7d5   :  { %12459 = vmatprep.mubr.f32.mxu1 %v16505_v43 }
 0x7d7   :  { %12434 = vmatmul.mubr.f32.gmra.mxu0 %v16506_v24 }
 0x7d8   :  { %12460 = vmatmul.mubr.f32.gmra.mxu1 %v16507_v29  ;;  %12436 = vmatprep.mubr.f32.mxu0 %v16508_v28 }
 0x7d9   :  { %12462 = vmatprep.mubr.f32.mxu1 %v16509_v52 }
 0x7db   :  { %12437 = vmatmul.mubr.f32.gmra.mxu0 %v16510_v45 }
 0x7dc   :  { %12463 = vmatmul.mubr.f32.gmra.mxu1 %v16511_v18  ;;  %12479 = vmatprep.mubr.f32.mxu0 %v16446_v53 }
 0x7dd   :  { %12465 = vmatprep.mubr.f32.mxu1 %v16512_v5 }
 0x7df   :  { %12480 = vmatmul.mubr.f32.vlgmr.msra.gmra.mxu0 %v16457_v55 }
 0x7e0   :  { %12466 = vmatmul.mubr.f32.gmra.mxu1 %v16513_v58  ;;  %12482 = vmatprep.mubr.f32.mxu0 %v16459_v48 }
 0x7e1   :  { %12468 = vmatprep.mubr.f32.mxu1 %v16514_v13 }
 0x7e3   :  { %12483 = vmatmul.mubr.f32.gmra.mxu0 %v16461_v37 }
 0x7e4   :  { %12469 = vmatmul.mubr.f32.gmra.mxu1 %v16515_v17  ;;  %12485 = vmatprep.mubr.f32.mxu0 %v16463_v57 }
 0x7e5   :  { %12511 = vmatprep.mubr.f32.mxu1 %v16446_v53  ;;  %v15428_v53 = vpop.f32.mrf.mxu0 }
 0x7e7   :  { %12486 = vmatmul.mubr.f32.gmra.mxu0 %v16465_v56 }
 0x7e8   :  { %12512 = vmatmul.mubr.f32.vlgmr.msra.gmra.mxu1 %v16457_v55  ;;  %12488 = vmatprep.mubr.f32.mxu0 %v16467_v9 }
 0x7e9   :  { %12514 = vmatprep.mubr.f32.mxu1 %v16459_v48 }
 0x7eb   :  { %12489 = vmatmul.mubr.f32.gmra.mxu0 %v16469_v12 }
 0x7ec   :  { %12515 = vmatmul.mubr.f32.gmra.mxu1 %v16461_v37  ;;  %12491 = vmatprep.mubr.f32.mxu0 %v16471_v15 }
 0x7ed   :  { %12517 = vmatprep.mubr.f32.mxu1 %v16463_v57 }
 0x7ef   :  { %12492 = vmatmul.mubr.f32.gmra.mxu0 %v16475_v51 }
 0x7f0   :  { %12518 = vmatmul.mubr.f32.gmra.mxu1 %v16465_v56  ;;  %12494 = vmatprep.mubr.f32.mxu0 %v16477_v26  ;;  %v15430_v56 = vpop.f32.mrf.mxu1 }
 0x7f1   :  { %12520 = vmatprep.mubr.f32.mxu1 %v16467_v9 }
 0x7f3   :  { %12495 = vmatmul.mubr.f32.gmra.mxu0 %v16479_v30 }
 0x7f4   :  { %12521 = vmatmul.mubr.f32.gmra.mxu1 %v16469_v12  ;;  %12497 = vmatprep.mubr.f32.mxu0 %v16481_v7 }
 0x7f5   :  { %12523 = vmatprep.mubr.f32.mxu1 %v16471_v15 }
 0x7f7   :  { %12498 = vmatmul.mubr.f32.gmra.mxu0 %v16483_v33 }
 0x7f8   :  { %12524 = vmatmul.mubr.f32.gmra.mxu1 %v16475_v51  ;;  %12500 = vmatprep.mubr.f32.mxu0 %v16484_v19 }
 0x7f9   :  { %12526 = vmatprep.mubr.f32.mxu1 %v16477_v26 }
 0x7fb   :  { %12501 = vmatmul.mubr.f32.gmra.mxu0 %v16487_v1 }
 0x7fc   :  { %12527 = vmatmul.mubr.f32.gmra.mxu1 %v16479_v30  ;;  %12551 = vmatprep.mubr.f32.mxu0 %v14566_v27 }
 0x7fd   :  { %12529 = vmatprep.mubr.f32.mxu1 %v16481_v7 }
 0x800   :  { %12530 = vmatmul.mubr.f32.gmra.mxu1 %v16483_v33 }
 0x801   :  { %12532 = vmatprep.mubr.f32.mxu1 %v16484_v19 }
 0x804   :  { %12533 = vmatmul.mubr.f32.gmra.mxu1 %v16487_v1 }
 0x805   :  { %12573 = vmatprep.mubr.f32.mxu1 %v14552_v22 }
 0x85d   :  { %v12353_v55 = vpop.f32.mrf.mxu0 }
 0x85f   :  { %v6689_v48 = vpop.f32.mrf.mxu0 }
 0x862   :  { %v12356_v37 = vpop.f32.mrf.mxu0 }
 0x864   :  { %v6709_v57 = vpop.f32.mrf.mxu0 }
 0x867   :  { %v12359_v9 = vpop.f32.mrf.mxu0  ;;  %v12385_v27 = vpop.f32.mrf.mxu1 }
 0x868   :  { %v6937_v12 = vadd.f32 %v12385_v27, %v12353_v55 }
 0x869   :  { %v6729_v15 = vpop.f32.mrf.mxu0  ;;  %v6930_v51 = vpop.f32.mrf.mxu1 }
 0x86a   :  { %v6931_v26 = vadd.f32 %v6930_v51, %v6689_v48 }
 0x86b   :  { %v12362_v30 = vpop.f32.mrf.mxu0 }
 0x86c   :  { %v12388_v7 = vpop.f32.mrf.mxu1 }
 0x86d   :  { %v6949_v33 = vadd.f32 %v12388_v7, %v12356_v37  ;;  %v6749_v19 = vpop.f32.mrf.mxu0 }
 0x86e   :  { %v6942_v1 = vpop.f32.mrf.mxu1 }
 0x86f   :  { %v6943_v3 = vadd.f32 %v6942_v1, %v6709_v57  ;;  %v12365_v41 = vpop.f32.mrf.mxu0 }
 0x870   :  { %v12391_v8 = vpop.f32.mrf.mxu1 }
 0x871   :  { %v6961_v36 = vadd.f32 %v12391_v8, %v12359_v9  ;;  %v6769_v60 = vpop.f32.mrf.mxu0 }
 0x872   :  { %v6954_v42 = vpop.f32.mrf.mxu1 }
 0x873   :  { %v6955_v0 = vadd.f32 %v6954_v42, %v6729_v15  ;;  %v12368_v59 = vpop.f32.mrf.mxu0 }
 0x874   :  { %v12394_v23 = vpop.f32.mrf.mxu1 }
 0x875   :  { %v15432_v43 = vadd.f32 %v12394_v23, %v12362_v30  ;;  %v6789_v24 = vpop.f32.mrf.mxu0 }
 0x876   :  { %v6966_v29 = vpop.f32.mrf.mxu1 }
 0x877   :  { %v15434_v28 = vadd.f32 %v6966_v29, %v6749_v19  ;;  %v12371_v52 = vpop.f32.mrf.mxu0 }
 0x878   :  { %v12397_v45 = vpop.f32.mrf.mxu1 }
 0x879   :  { %v15436_v18 = vadd.f32 %v12397_v45, %v12365_v41  ;;  %v6809_v5 = vpop.f32.mrf.mxu0 }
 0x87a   :  { %v6978_v58 = vpop.f32.mrf.mxu1 }
 0x87b   :  { %v15438_v13 = vadd.f32 %v6978_v58, %v6769_v60  ;;  %v15440_v17 = vpop.f32.mrf.mxu0 }
 0x87c   :  { %v12400_v55 = vpop.f32.mrf.mxu1 }
 0x87d   :  { %v15442_v48 = vadd.f32 %v12400_v55, %v12368_v59  ;;  %v15444_v37 = vpop.f32.mrf.mxu0 }
 0x87e   :  { %v6990_v57 = vpop.f32.mrf.mxu1 }
 0x87f   :  { %v15446_v9 = vadd.f32 %v6990_v57, %v6789_v24  ;;  %v12417_v27 = vpop.f32.mrf.mxu0 }
 0x880   :  { %v12403_v15 = vpop.f32.mrf.mxu1  ;;  %v7108_v51 = vadd.f32 %v12417_v27, %v6937_v12 }
 0x881   :  { %v15448_v30 = vadd.f32 %v12403_v15, %v12371_v52  ;;  %v7100_v7 = vpop.f32.mrf.mxu0 }
 0x882   :  { %v7002_v19 = vpop.f32.mrf.mxu1  ;;  %v7101_v1 = vadd.f32 %v7100_v7, %v6931_v26 }
 0x883   :  { %v15450_v41 = vadd.f32 %v7002_v19, %v6809_v5  ;;  %v12420_v8 = vpop.f32.mrf.mxu0 }
 0x884   :  { %v15452_v60 = vpop.f32.mrf.mxu1  ;;  %v7122_v42 = vadd.f32 %v12420_v8, %v6949_v33 }
 0x885   :  { %v7114_v59 = vpop.f32.mrf.mxu0 }
 0x886   :  { %v15454_v23 = vpop.f32.mrf.mxu1  ;;  %v7115_v29 = vadd.f32 %v7114_v59, %v6943_v3 }
 0x887   :  { %v12423_v24 = vpop.f32.mrf.mxu0 }
 0x888   :  { %v7136_v45 = vadd.f32 %v12423_v24, %v6961_v36  ;;  %v12449_v58 = vpop.f32.mrf.mxu1 }
 0x889   :  { %v7291_v55 = vadd.f32 %v12449_v58, %v7108_v51  ;;  %v7128_v12 = vpop.f32.mrf.mxu0 }
 0x88a   :  { %v7129_v52 = vadd.f32 %v7128_v12, %v6955_v0  ;;  %v7282_v57 = vpop.f32.mrf.mxu1 }
 0x88b   :  { %v7283_v27 = vadd.f32 %v7282_v57, %v7101_v1  ;;  %v12426_v15 = vpop.f32.mrf.mxu0 }
 0x88c   :  { %v12452_v26 = vpop.f32.mrf.mxu1 }
 0x88d   :  { %v7307_v5 = vadd.f32 %v12452_v26, %v7122_v42  ;;  %v7142_v7 = vpop.f32.mrf.mxu0 }
 0x88e   :  { %v7298_v19 = vpop.f32.mrf.mxu1 }
 0x88f   :  { %v7299_v40 = vadd.f32 %v7298_v19, %v7115_v29  ;;  %v15456_v20 = vpop.f32.mrf.mxu0 }
 0x890   :  { %v12455_v33 = vpop.f32.mrf.mxu1 }
 0x891   :  { %v7323_v8 = vadd.f32 %v12455_v33, %v7136_v45  ;;  %v15458_v39 = vpop.f32.mrf.mxu0 }
 0x892   :  { %v7314_v3 = vpop.f32.mrf.mxu1 }
 0x893   :  { %v7315_v36 = vadd.f32 %v7314_v3, %v7129_v52  ;;  %v15460_v59 = vpop.f32.mrf.mxu0 }
 0x894   :  { %v12458_v51 = vpop.f32.mrf.mxu1 }
 0x895   :  { %v15462_v0 = vpop.f32.mrf.mxu0 }
 0x896   :  { %v7330_v1 = vpop.f32.mrf.mxu1 }
 0x897   :  { %v15464_v24 = vpop.f32.mrf.mxu0 }
 0x898   :  { %v15466_v42 = vpop.f32.mrf.mxu1 }
 0x899   :  { %v15468_v58 = vpop.f32.mrf.mxu0 }
 0x89a   :  { %v15470_v29 = vpop.f32.mrf.mxu1 }
 0x89b   :  { %16516 = vst [vmem:[#allocation98_spill] sm:$0xff] %v15470_v29  ;;  %v15472_v12 = vpop.f32.mrf.mxu0 }
 0x89c   :  { %v15474_v45 = vpop.f32.mrf.mxu1 }
 0x89d   :  { %v15476_v57 = vpop.f32.mrf.mxu0 }
 0x89e   :  { %v15478_v52 = vpop.f32.mrf.mxu1 }
 0x89f   :  { %v12481_v26 = vpop.f32.mrf.mxu0 }
 0x8a0   :  { %v15480_v19 = vpop.f32.mrf.mxu1  ;;  %v7492_v33 = vadd.f32 %v12481_v26, %v7291_v55 }
 0x8a1   :  { %v7485_v3 = vpop.f32.mrf.mxu0 }
 0x8a2   :  { %v15482_v4 = vpop.f32.mrf.mxu1  ;;  %v7486_v6 = vadd.f32 %v7485_v3, %v7283_v27  ;;  %v7150_v3 = vadd.f32 %v12426_v15, %v15432_v43 }
 0x8a3   :  { %v12484_v10 = vpop.f32.mrf.mxu0 }
 0x8a4   :  { %v12470_v22 = vpop.f32.mrf.mxu1  ;;  %v7504_v31 = vadd.f32 %v12484_v10, %v7307_v5 }
 0x8a5   :  { %v7497_v35 = vpop.f32.mrf.mxu0 }
 0x8a6   :  { %v7394_v49 = vpop.f32.mrf.mxu1  ;;  %v7498_v55 = vadd.f32 %v7497_v35, %v7299_v40  ;;  %v6488_v40 = vadd.f32 %v15428_v53, %v15321_v46 }
 0x8a7   :  { %v12487_v14 = vpop.f32.mrf.mxu0 }
 0x8a8   :  { %v12513_v2 = vpop.f32.mrf.mxu1  ;;  %v7516_v54 = vadd.f32 %v12487_v14, %v7323_v8  ;;  %v6605_v46 = vadd.f32 %v15430_v56, %v6488_v40 }
 0x8a9   :  { %v15484_v47 = vadd.f32 %v12513_v2, %v7492_v33  ;;  %v7509_v63 = vpop.f32.mrf.mxu0 }
 0x8aa   :  { %v7650_v21 = vpop.f32.mrf.mxu1  ;;  %v7510_v35 = vadd.f32 %v7509_v63, %v7315_v36 }
 0x8ab   :  { %v15486_v34 = vadd.f32 %v7650_v21, %v7486_v6  ;;  %v12490_v50 = vpop.f32.mrf.mxu0  ;;  %v7143_v21 = vadd.f32 %v7142_v7, %v15434_v28  ;;  %v7339_v6 = vadd.f32 %v12458_v51, %v7150_v3  ;;  %v7021_v3 = vadd.f32 %v15452_v60, %v15440_v17 }
 0x8ac   :  { %v12516_v61 = vpop.f32.mrf.mxu1  ;;  %v7185_v17 = vadd.f32 %v15468_v58, %v15450_v41  ;;  %v7164_v58 = vadd.f32 %v15456_v20, %v15436_v18 }
 0x8ad   :  { %v15488_v26 = vadd.f32 %v12516_v61, %v7504_v31  ;;  %v7521_v32 = vpop.f32.mrf.mxu0  ;;  %v7331_v15 = vadd.f32 %v7330_v1, %v7143_v21  ;;  %v7206_v56 = vadd.f32 %v15472_v12, %v7021_v3 }
 0x8ae   :  { %v7662_v27 = vpop.f32.mrf.mxu1 }
 0x8af   :  { %v15491_v62 = vadd.f32 %v7662_v27, %v7498_v55  ;;  %v15493_v29 = vpop.f32.mrf.mxu0  ;;  %v15497_v2 = vadd.f32 %v15488_v26, %v15332_v38  ;;  %v7528_v38 = vadd.f32 %v12490_v50, %v7339_v6  ;;  %v7522_v7 = vadd.f32 %v7521_v32, %v7331_v15 }
 0x8b0   :  { %v12519_v10 = vpop.f32.mrf.mxu1  ;;  %v7192_v15 = vadd.f32 %v15464_v24, %v15448_v30 }
 0x8b1   :  { %v15500_v31 = vadd.f32 %v12519_v10, %v7516_v54  ;;  %v15502_v61 = vpop.f32.mrf.mxu0  ;;  %v15506_v14 = vadd.f32 %v15491_v62, %v15335_v11  ;;  %v7015_v10 = vadd.f32 %v15454_v23, %v15444_v37 }
 0x8b2   :  { %v7674_v43 = vpop.f32.mrf.mxu1  ;;  %v7387_v60 = vadd.f32 %v15480_v19, %v7192_v15  ;;  %v7157_v19 = vadd.f32 %v15458_v39, %v15438_v13 }
 0x8b3   :  { %v15510_v5 = vadd.f32 %v7674_v43, %v7510_v35  ;;  %v12496_v28 = vpop.f32.mrf.mxu0  ;;  %v15514_v63 = vadd.f32 %v15500_v31, %v15340_v44  ;;  %v7403_v35 = vadd.f32 %v12470_v22, %v7206_v56  ;;  %v7379_v22 = vadd.f32 %v15482_v4, %v7185_v17 }
 0x8b4   :  { %v12522_v54 = vpop.f32.mrf.mxu1 }
 0x8b5   :  { %v7693_v8 = vadd.f32 %v12522_v54, %v7528_v38  ;;  %v7545_v36 = vpop.f32.mrf.mxu0  ;;  %v15518_v11 = vadd.f32 %v15510_v5, %v15343_v16 }
 0x8b6   :  { %v7686_v51 = vpop.f32.mrf.mxu1 }
 0x8b7   :  { %v7687_v53 = vadd.f32 %v7686_v51, %v7522_v7  ;;  %v12499_v50 = vpop.f32.mrf.mxu0  ;;  %v15522_v1 = vadd.f32 %v7693_v8, %v15349_v25  ;;  %v7199_v25 = vadd.f32 %v15476_v57, %v7015_v10  ;;  %v7178_v57 = vadd.f32 %v15460_v59, %v15442_v48 }
 0x8b8   :  { %v12525_v33 = vpop.f32.mrf.mxu1  ;;  %v7564_v51 = vadd.f32 %v12499_v50, %v7387_v60  ;;  %v16517_v50 = vld [vmem:[#allocation98_spill] sm:$0xff] }
 0x8b9   :  { %v15524_v55 = vadd.f32 %v7687_v53, %v6605_v46  ;;  %v7557_v44 = vpop.f32.mrf.mxu0  ;;  %v7395_v38 = vadd.f32 %v7394_v49, %v7199_v25  ;;  %v7171_v49 = vadd.f32 %v15462_v0, %v15446_v9  ;;  %v7371_v30 = vadd.f32 %v15474_v45, %v7178_v57 }
 0x8ba   :  { %v7698_v27 = vpop.f32.mrf.mxu1  ;;  %v7558_v41 = vadd.f32 %v7557_v44, %v7379_v22  ;;  %v7355_v9 = vadd.f32 %v15466_v42, %v7164_v58  ;;  %v7347_v44 = vadd.f32 %v16517_v50, %v7157_v19 }
 0x8bb   :  { %v12502_v21 = vpop.f32.mrf.mxu0  ;;  %v7363_v48 = vadd.f32 %v15478_v52, %v7171_v49  ;;  %v7552_v59 = vadd.f32 %v12496_v28, %v7371_v30 }
 0x8bc   :  { %v12528_v32 = vpop.f32.mrf.mxu1  ;;  %v7576_v54 = vadd.f32 %v12502_v21, %v7403_v35  ;;  %v7540_v3 = vadd.f32 %v15493_v29, %v7355_v9  ;;  %v7534_v18 = vadd.f32 %v15502_v61, %v7347_v44  ;;  %v16518_v21 = vld [vmem:[#allocation75_spill] sm:$0xff] }
 0x8bd   :  { %v7569_v40 = vpop.f32.mrf.mxu0  ;;  %v7546_v0 = vadd.f32 %v7545_v36, %v7363_v48  ;;  %v7717_v45 = vadd.f32 %v12528_v32, %v7552_v59 }
 0x8be   :  { %v7710_v16 = vpop.f32.mrf.mxu1  ;;  %v7570_v37 = vadd.f32 %v7569_v40, %v7395_v38  ;;  %v7705_v52 = vadd.f32 %v12525_v33, %v7540_v3  ;;  %v7699_v28 = vadd.f32 %v7698_v27, %v7534_v18 }
 0x8bf   :  { %v7711_v20 = vadd.f32 %v7710_v16, %v7546_v0  ;;  %v7745_v16 = vadd.f32 %v15484_v47, %v16518_v21 }
 0x8c0   :  { %v12531_v6 = vpop.f32.mrf.mxu1 }
 0x8c1   :  { %v7729_v24 = vadd.f32 %v12531_v6, %v7564_v51  ;;  %v16519_v6 = vld [vmem:[#allocation44_spill] sm:$0xff] }
 0x8c2   :  { %v7722_v43 = vpop.f32.mrf.mxu1 }
 0x8c3   :  { %v7723_v4 = vadd.f32 %v7722_v43, %v7558_v41 }
 0x8c4   :  { %v12534_v7 = vpop.f32.mrf.mxu1 }
 0x8c5   :  { %v7741_v23 = vadd.f32 %v12534_v7, %v7576_v54 }
 0x8c6   :  { %v7734_v12 = vpop.f32.mrf.mxu1 }
 0x8c7   :  { %v7735_v46 = vadd.f32 %v7734_v12, %v7570_v37  ;;  %7774 = vrot.lane.b32.xlu0 %v7741_v23, %s12979_s27 }
 0x8c9   :  { %7772 = vrot.lane.b32.xlu1 %v7735_v46, %s12979_s27 }
 0x8cb   :  { %7770 = vrot.lane.b32.xlu0 %v7729_v24, %s12979_s27 }
 0x8cd   :  { %7768 = vrot.lane.b32.xlu1 %v7723_v4, %s12979_s27 }
 0x8cf   :  { %7766 = vrot.lane.b32.xlu0 %v7717_v45, %s12979_s27 }
 0x8d1   :  { %7764 = vrot.lane.b32.xlu1 %v7711_v20, %s12979_s27 }
 0x8d3   :  { %7762 = vrot.lane.b32.xlu0 %v7705_v52, %s12979_s27 }
 0x8d5   :  { %7760 = vrot.lane.b32.xlu1 %v7699_v28, %s12979_s27 }
 0x8d7   :  { %7862 = vrot.lane.b32.xlu0 %v7693_v8, %s12980_s0 }
 0x8d9   :  { %7860 = vrot.lane.b32.xlu1 %v7687_v53, %s12980_s0 }
 0x8dd   :  { %7858 = vrot.lane.b32.xlu1 %v15500_v31, %s12980_s0 }
 0x8e1   :  { %7856 = vrot.lane.b32.xlu1 %v15510_v5, %s12980_s0 }
 0x8e5   :  { %7854 = vrot.lane.b32.xlu1 %v15488_v26, %s12980_s0 }
 0x8e9   :  { %7852 = vrot.lane.b32.xlu1 %v15491_v62, %s12980_s0 }
 0x8ed   :  { %7850 = vrot.lane.b32.xlu1 %v15484_v47, %s12980_s0 }
 0x8f1   :  { %7848 = vrot.lane.b32.xlu1 %v15486_v34, %s12980_s0 }
 0x939   :  { %v7775_v39 = vpop.permute.xlu0 %7774 }
 0x93a   :  { %v7791_v13 = vadd.f32 %v7775_v39, %v15522_v1 }
 0x93b   :  { %v7773_v42 = vpop.permute.xlu1 %7772 }
 0x93c   :  { %v10673_v29 = vmul.f32 -1.442695, %v7791_v13  ;;  %v7790_v31 = vadd.f32 %v7773_v42, %v15524_v55 }
 0x93d   :  { %v7771_v61 = vpop.permute.xlu0 %7770 }
 0x93e   :  { %12917 = vpow2.f32 %v10673_v29  ;;  %v10672_v5 = vmul.f32 -1.442695, %v7790_v31  ;;  %v7789_v26 = vadd.f32 %v7771_v61, %v15514_v63 }
 0x93f   :  { %v7769_v8 = vpop.permute.xlu1 %7768 }
 0x940   :  { %12919 = vpow2.f32 %v10672_v5  ;;  %v10671_v62 = vmul.f32 -1.442695, %v7789_v26  ;;  %v7788_v36 = vadd.f32 %v7769_v8, %v15518_v11  ;;  %v7744_v11 = vadd.f32 %v15486_v34, %v16519_v6 }
 0x941   :  { %v7767_v53 = vpop.permute.xlu0 %7766 }
 0x942   :  { %12921 = vpow2.f32 %v10671_v62  ;;  %v10670_v33 = vmul.f32 -1.442695, %v7788_v36  ;;  %v7787_v27 = vadd.f32 %v7767_v53, %v15497_v2 }
 0x943   :  { %v7765_v1 = vpop.permute.xlu1 %7764 }
 0x944   :  { %12923 = vpow2.f32 %v10670_v33  ;;  %v10669_v32 = vmul.f32 -1.442695, %v7787_v27  ;;  %v7786_v55 = vadd.f32 %v7765_v1, %v15506_v14 }
 0x945   :  { %v7763_v10 = vpop.permute.xlu0 %7762 }
 0x946   :  { %12925 = vpow2.f32 %v10669_v32  ;;  %v10668_v63 = vmul.f32 -1.442695, %v7786_v55  ;;  %v7785_v56 = vadd.f32 %v7763_v10, %v7745_v16 }
 0x947   :  { %v7761_v25 = vpop.permute.xlu1 %7760 }
 0x948   :  { %12927 = vpow2.f32 %v10668_v63  ;;  %v10667_v35 = vmul.f32 -1.442695, %v7785_v56  ;;  %v7784_v40 = vadd.f32 %v7761_v25, %v7744_v11 }
 0x949   :  { %v7863_v58 = vpop.permute.xlu0 %7862 }
 0x94a   :  { %12929 = vpow2.f32 %v10667_v35  ;;  %v10666_v2 = vmul.f32 -1.442695, %v7784_v40 }
 0x94b   :  { %v12918_v43 = vpop.eup %12917  ;;  %v7861_v15 = vpop.permute.xlu1 %7860 }
 0x94c   :  { %v7823_v38 = vadd.f32 1.0, %v12918_v43  ;;  %12931 = vpow2.f32 %v10666_v2 }
 0x94d   :  { %v12920_v14 = vpop.eup %12919 }
 0x94e   :  { %12933 = vrcp.f32 %v7823_v38  ;;  %v7822_v47 = vadd.f32 1.0, %v12920_v14 }
 0x94f   :  { %v12922_v54 = vpop.eup %12921  ;;  %v7859_v7 = vpop.permute.xlu1 %7858 }
 0x950   :  { %12935 = vrcp.f32 %v7822_v47  ;;  %v7821_v17 = vadd.f32 1.0, %v12922_v54 }
 0x951   :  { %v12924_v60 = vpop.eup %12923 }
 0x952   :  { %12937 = vrcp.f32 %v7821_v17  ;;  %v7820_v34 = vadd.f32 1.0, %v12924_v60 }
 0x953   :  { %v12926_v37 = vpop.eup %12925  ;;  %v7857_v23 = vpop.permute.xlu1 %7856 }
 0x954   :  { %12939 = vrcp.f32 %v7820_v34  ;;  %v7819_v12 = vadd.f32 1.0, %v12926_v37 }
 0x955   :  { %v12928_v57 = vpop.eup %12927 }
 0x956   :  { %12941 = vrcp.f32 %v7819_v12  ;;  %v7818_v22 = vadd.f32 1.0, %v12928_v57 }
 0x957   :  { %v12930_v51 = vpop.eup %12929  ;;  %v7855_v46 = vpop.permute.xlu1 %7854 }
 0x958   :  { %12943 = vrcp.f32 %v7818_v22  ;;  %v7817_v49 = vadd.f32 1.0, %v12930_v51 }
 0x959   :  { %v12932_v30 = vpop.eup %12931 }
 0x95a   :  { %12945 = vrcp.f32 %v7817_v49  ;;  %v7816_v41 = vadd.f32 1.0, %v12932_v30 }
 0x95b   :  { %v12934_v24 = vpop.eup %12933  ;;  %v7853_v4 = vpop.permute.xlu1 %7852 }
 0x95c   :  { %12947 = vrcp.f32 %v7816_v41  ;;  %v7879_v48 = vmul.f32 %v12934_v24, %v7863_v58 }
 0x95d   :  { %v12936_v59 = vpop.eup %12935 }
 0x95e   :  { %7887 = vst.msk [vmem:[#allocation2 + $0x38] sm:$0xff] %vm1510_vm4, %v7879_v48  ;;  %v7878_v19 = vmul.f32 %v12936_v59, %v7861_v15 }
 0x95f   :  { %v12938_v9 = vpop.eup %12937  ;;  %v7851_v3 = vpop.permute.xlu1 %7850 }
 0x960   :  { %7886 = vst.msk [vmem:[#allocation2 + $0x30] sm:$0xff] %vm1510_vm4, %v7878_v19  ;;  %v7877_v0 = vmul.f32 %v12938_v9, %v7859_v7  ;;  %7906 = vrot.lane.b32.xlu0 %v12938_v9, %s12979_s27 }
 0x961   :  { %v12940_v45 = vpop.eup %12939 }
 0x962   :  { %7885 = vst.msk [vmem:[#allocation2 + $0x28] sm:$0xff] %vm1510_vm4, %v7877_v0  ;;  %v7876_v50 = vmul.f32 %v12940_v45, %v7857_v23 }
 0x963   :  { %v12942_v44 = vpop.eup %12941  ;;  %v7849_v42 = vpop.permute.xlu1 %7848 }
 0x964   :  { %7884 = vst.msk [vmem:[#allocation2 + $0x20] sm:$0xff] %vm1510_vm4, %v7876_v50  ;;  %v7875_v20 = vmul.f32 %v12942_v44, %v7855_v46  ;;  %7904 = vrot.lane.b32.xlu0 %v12940_v45, %s12979_s27 }
 0x965   :  { %v12944_v18 = vpop.eup %12943 }
 0x966   :  { %7883 = vst.msk [vmem:[#allocation2 + $0x18] sm:$0xff] %vm1510_vm4, %v7875_v20  ;;  %v7874_v52 = vmul.f32 %v12944_v18, %v7853_v4  ;;  %v16521_v20 = vld [vmem:[#allocation119_spill] sm:$0xff] }
 0x967   :  { %v12946_v28 = vpop.eup %12945 }
 0x968   :  { %7882 = vst.msk [vmem:[#allocation2 + $0x10] sm:$0xff] %vm1510_vm4, %v7874_v52  ;;  %v7873_v39 = vmul.f32 %v12946_v28, %v7851_v3  ;;  %7910 = vrot.lane.b32.xlu0 %v12934_v24, %s12979_s27  ;;  %v16522_v52 = vld [vmem:[#allocation116_spill] sm:$0xff] }
 0x969   :  { %v12948_v13 = vpop.eup %12947 }
 0x96a   :  { %7881 = vst.msk [vmem:[#allocation2 + $0x8] sm:$0xff] %vm1510_vm4, %v7873_v39  ;;  %v7872_v29 = vmul.f32 %v12948_v13, %v7849_v42  ;;  %7896 = vrot.lane.b32.xlu1 %v12948_v13, %s12979_s27  ;;  %v16524_v39 = vld [vmem:[#allocation114_spill] sm:$0xff]  ;;  %v16525_v13 = vld [vmem:[#allocation120_spill] sm:$0xff] }
 0x96b   :  { %v16526_v42 = vld [vmem:[#allocation118_spill] sm:$0xff] }
 0x96c   :  { %7880 = vst.msk [vmem:[#allocation2] sm:$0xff] %vm1510_vm4, %v7872_v29  ;;  %7908 = vrot.lane.b32.xlu0 %v12936_v59, %s12979_s27  ;;  %v16527_v29 = vld [vmem:[#allocation125_spill] sm:$0xff] }
 0x970   :  { %7902 = vrot.lane.b32.xlu0 %v12942_v44, %s12979_s27  ;;  %v16520_v44 = vld [vmem:[#allocation115_spill] sm:$0xff] }
 0x974   :  { %7900 = vrot.lane.b32.xlu0 %v12944_v18, %s12979_s27 }
 0x978   :  { %7898 = vrot.lane.b32.xlu0 %v12946_v28, %s12979_s27  ;;  %v16523_v28 = vld [vmem:[#allocation122_spill] sm:$0xff] }
 0x9d2   :  { %v7907_v31 = vpop.permute.xlu0 %7906 }
 0x9d3   :  { %7925 = vst.msk [vmem:[#allocation2 + $0x28] sm:$0xff] %vm4312_vm6, %v7907_v31  ;;  %v16528_v31 = vld [vmem:[#allocation127_spill] sm:$0xff] }
 0x9d6   :  { %v7905_v61 = vpop.permute.xlu0 %7904 }
 0x9d7   :  { %7924 = vst.msk [vmem:[#allocation2 + $0x20] sm:$0xff] %vm4312_vm6, %v7905_v61  ;;  %v16529_v61 = vld [vmem:[#allocation110_spill] sm:$0xff] }
 0x9da   :  { %v7911_v5 = vpop.permute.xlu0 %7910  ;;  %v7933_v62 = vld [vmem:[#allocation2 + $0x28] sm:$0xff] }
 0x9db   :  { %7927 = vst.msk [vmem:[#allocation2 + $0x38] sm:$0xff] %vm4312_vm6, %v7911_v5  ;;  %v15605_v53 = vand.u32 4294901760, %v7933_v62  ;;  %v16530_v5 = vld [vmem:[#allocation124_spill] sm:$0xff] }
 0x9dc   :  { %v7897_v26 = vpop.permute.xlu1 %7896 }
 0x9dd   :  { %7920 = vst.msk [vmem:[#allocation2] sm:$0xff] %vm4312_vm6, %v7897_v26  ;;  %v15617_v21 = vsub.f32 %v7933_v62, %v15605_v53  ;;  %v16531_v26 = vld [vmem:[#allocation117_spill] sm:$0xff] }
 0x9de   :  { %v7909_v8 = vpop.permute.xlu0 %7908  ;;  %v7932_v36 = vld [vmem:[#allocation2 + $0x20] sm:$0xff] }
 0x9df   :  { %7926 = vst.msk [vmem:[#allocation2 + $0x30] sm:$0xff] %vm4312_vm6, %v7909_v8  ;;  %v15610_v32 = vand.u32 4294901760, %v7932_v36  ;;  %v15636_v35 = vand.u32 4294901760, %v15617_v21  ;;  %v16532_v8 = vld [vmem:[#allocation111_spill] sm:$0xff]  ;;  %v16533_v62 = vld [vmem:[#allocation113_spill] sm:$0xff] }
 0x9e1   :  { %v15627_v6 = vsub.f32 %v7932_v36, %v15610_v32  ;;  %v8083_v7 = vsub.f32 %v15617_v21, %v15636_v35  ;;  %v16534_v36 = vld [vmem:[#allocation121_spill] sm:$0xff] }
 0x9e2   :  { %v7903_v33 = vpop.permute.xlu0 %7902  ;;  %v7935_v27 = vld [vmem:[#allocation2 + $0x38] sm:$0xff] }
 0x9e3   :  { %7923 = vst.msk [vmem:[#allocation2 + $0x18] sm:$0xff] %vm4312_vm6, %v7903_v33  ;;  %v15608_v1 = vand.u32 4294901760, %v7935_v27  ;;  %v15647_v47 = vand.u32 4294901760, %v15627_v6  ;;  %v8084_v22 = vand.u32 4294901760, %v8083_v7 }
 0x9e4   :  { %v7928_v43 = vld [vmem:[#allocation2] sm:$0xff] }
 0x9e5   :  { %12535 = vmatprep.subr.mxu0 %v15608_v1  ;;  %v15614_v55 = vsub.f32 %v7935_v27, %v15608_v1  ;;  %v15655_v17 = vand.u32 4294901760, %v7928_v43  ;;  %v8090_v12 = vsub.f32 %v15627_v6, %v15647_v47 }
 0x9e6   :  { %12536 = vmatpush3.msra.mxu0 %v15608_v1  ;;  %v7901_v16 = vpop.permute.xlu0 %7900  ;;  %v7934_v10 = vld [vmem:[#allocation2 + $0x30] sm:$0xff] }
 0x9e7   :  { %7922 = vst.msk [vmem:[#allocation2 + $0x10] sm:$0xff] %vm4312_vm6, %v7901_v16  ;;  %v15621_v63 = vand.u32 4294901760, %v7934_v10  ;;  %v15624_v56 = vand.u32 4294901760, %v15614_v55  ;;  %v8116_v49 = vsub.f32 %v7928_v43, %v15655_v17  ;;  %v8091_v24 = vand.u32 4294901760, %v8090_v12 }
 0x9e9   :  { %12537 = vmatprep.subr.mxu0 %v15621_v63  ;;  %v8069_v11 = vsub.f32 %v15614_v55, %v15624_v56  ;;  %v15633_v25 = vsub.f32 %v7934_v10, %v15621_v63  ;;  %v15679_v19 = vand.u32 4294901760, %v8116_v49 }
 0x9ea   :  { %v7899_v40 = vpop.permute.xlu0 %7898  ;;  %12538 = vmatpush3.msra.mxu0 %v15621_v63  ;;  %v7931_v2 = vld [vmem:[#allocation2 + $0x18] sm:$0xff] }
 0x9eb   :  { %7921 = vst.msk [vmem:[#allocation2 + $0x8] sm:$0xff] %vm4312_vm6, %v7899_v40  ;;  %12539 = vmatprep.subr.mxu0 %v15605_v53  ;;  %v8070_v15 = vand.u32 4294901760, %v8069_v11  ;;  %v15641_v38 = vand.u32 4294901760, %v7931_v2  ;;  %v15644_v14 = vand.u32 4294901760, %v15633_v25  ;;  %v8118_v50 = vsub.f32 %v8116_v49, %v15679_v19 }
 0x9ec   :  { %12540 = vmatpush3.msra.mxu0 %v15605_v53 }
 0x9ed   :  { %12541 = vmatprep.subr.mxu0 %v15610_v32  ;;  %12557 = vmatprep.subr.mxu1 %v8070_v15  ;;  %v8076_v54 = vsub.f32 %v15633_v25, %v15644_v14  ;;  %v8095_v60 = vsub.f32 %v7931_v2, %v15641_v38  ;;  %v8119_v18 = vand.u32 4294901760, %v8118_v50 }
 0x9ee   :  { %12542 = vmatpush3.msra.mxu0 %v15610_v32  ;;  %12558 = vmatpush3.msra.mxu1 %v8070_v15  ;;  %v7930_v34 = vld [vmem:[#allocation2 + $0x10] sm:$0xff] }
 0x9ef   :  { %12543 = vmatprep.subr.mxu0 %v15641_v38  ;;  %v15660_v37 = vand.u32 4294901760, %v7930_v34  ;;  %v8077_v23 = vand.u32 4294901760, %v8076_v54  ;;  %v15664_v57 = vand.u32 4294901760, %v8095_v60 }
 0x9f0   :  { %12544 = vmatpush3.msra.mxu0 %v15641_v38 }
 0x9f1   :  { %12545 = vmatprep.subr.mxu0 %v15660_v37  ;;  %12559 = vmatprep.subr.mxu1 %v8077_v23  ;;  %v8097_v51 = vsub.f32 %v8095_v60, %v15664_v57  ;;  %v8102_v46 = vsub.f32 %v7930_v34, %v15660_v37 }
 0x9f2   :  { %12546 = vmatpush3.msra.mxu0 %v15660_v37  ;;  %12560 = vmatpush3.msra.mxu1 %v8077_v23  ;;  %v7929_v30 = vld [vmem:[#allocation2 + $0x8] sm:$0xff] }
 0x9f3   :  { %12561 = vmatprep.subr.mxu1 %v8084_v22  ;;  %v15672_v41 = vand.u32 4294901760, %v7929_v30  ;;  %v15674_v58 = vand.u32 4294901760, %v8102_v46  ;;  %v8098_v48 = vand.u32 4294901760, %v8097_v51 }
 0x9f4   :  { %12562 = vmatpush3.msra.mxu1 %v8084_v22 }
 0x9f5   :  { %12547 = vmatprep.subr.mxu0 %v15672_v41  ;;  %12563 = vmatprep.subr.mxu1 %v8091_v24  ;;  %v8104_v59 = vsub.f32 %v8102_v46, %v15674_v58  ;;  %v8109_v4 = vsub.f32 %v7929_v30, %v15672_v41 }
 0x9f6   :  { %12548 = vmatpush3.msra.mxu0 %v15672_v41  ;;  %12564 = vmatpush3.msra.mxu1 %v8091_v24 }
 0x9f7   :  { %12549 = vmatprep.subr.mxu0 %v15655_v17  ;;  %12565 = vmatprep.subr.mxu1 %v8098_v48  ;;  %v8105_v9 = vand.u32 4294901760, %v8104_v59  ;;  %v15683_v0 = vand.u32 4294901760, %v8109_v4 }
 0x9f8   :  { %12550 = vmatpush3.msra.mxu0 %v15655_v17  ;;  %12566 = vmatpush3.msra.mxu1 %v8098_v48 }
 0x9f9   :  { %12567 = vmatprep.subr.mxu1 %v8105_v9  ;;  %12579 = vmatprep.subr.mxu0 %v15614_v55  ;;  %v8111_v45 = vsub.f32 %v8109_v4, %v15683_v0 }
 0x9fa   :  { %12552 = vmatmul.mubr.f32.vlgmr.msra.gmra.mxu0 %v16520_v44  ;;  %12568 = vmatpush3.msra.mxu1 %v8105_v9 }
 0x9fb   :  { %12580 = vmatpush3.msra.mxu0 %v15614_v55  ;;  %v8112_v3 = vand.u32 4294901760, %v8111_v45  ;;  %12554 = vmatprep.mubr.f32.mxu0 %v16521_v20  ;;  %v10675_v20 = vld [vmem:[%s16062_s13 + $0x1] ss:$0 sm:$0xff] }
 0x9fc   :  { %12581 = vmatprep.subr.mxu0 %v15633_v25 }
 0x9fd   :  { %12582 = vmatpush3.msra.mxu0 %v15633_v25  ;;  %12569 = vmatprep.subr.mxu1 %v8112_v3 }
 0x9fe   :  { %12583 = vmatprep.subr.mxu0 %v15617_v21  ;;  %12570 = vmatpush3.msra.mxu1 %v8112_v3 }
 0x9ff   :  { %12584 = vmatpush3.msra.mxu0 %v15617_v21  ;;  %12571 = vmatprep.subr.mxu1 %v8119_v18 }
 0xa00   :  { %12585 = vmatprep.subr.mxu0 %v15627_v6  ;;  %12572 = vmatpush3.msra.mxu1 %v8119_v18 }
 0xa01   :  { %12586 = vmatpush3.msra.mxu0 %v15627_v6  ;;  %12601 = vmatprep.subr.mxu1 %v15608_v1 }
 0xa02   :  { %12587 = vmatprep.subr.mxu0 %v8095_v60  ;;  %12574 = vmatmul.mubr.f32.vlgmr.msra.gmra.mxu1 %v16522_v52 }
 0xa03   :  { %12588 = vmatpush3.msra.mxu0 %v8095_v60  ;;  %12602 = vmatpush3.msra.mxu1 %v15608_v1 }
 0xa04   :  { %12589 = vmatprep.subr.mxu0 %v8102_v46  ;;  %12603 = vmatprep.subr.mxu1 %v15621_v63 }
 0xa05   :  { %12590 = vmatpush3.msra.mxu0 %v8102_v46  ;;  %12604 = vmatpush3.msra.mxu1 %v15621_v63 }
 0xa06   :  { %12591 = vmatprep.subr.mxu0 %v8109_v4  ;;  %12605 = vmatprep.subr.mxu1 %v15605_v53 }
 0xa07   :  { %12555 = vmatmul.mubr.f32.gmra.mxu0 %v16523_v28  ;;  %12606 = vmatpush3.msra.mxu1 %v15605_v53 }
 0xa08   :  { %12592 = vmatpush3.msra.mxu0 %v8109_v4  ;;  %12607 = vmatprep.subr.mxu1 %v15610_v32 }
 0xa09   :  { %12593 = vmatprep.subr.mxu0 %v8116_v49  ;;  %12608 = vmatpush3.msra.mxu1 %v15610_v32 }
 0xa0a   :  { %12594 = vmatpush3.msra.mxu0 %v8116_v49  ;;  %12595 = vmatprep.mubr.f32.mxu0 %v16524_v39 }
 0xa0b   :  { %12609 = vmatprep.subr.mxu1 %v15641_v38  ;;  %12623 = vmatprep.subr.mxu0 %v15624_v56 }
 0xa0c   :  { %12596 = vmatmul.mubr.f32.vlgmr.msra.gmra.mxu0 %v16525_v13  ;;  %12610 = vmatpush3.msra.mxu1 %v15641_v38 }
 0xa0d   :  { %12624 = vmatpush3.msra.mxu0 %v15624_v56  ;;  %12611 = vmatprep.subr.mxu1 %v15660_v37 }
 0xa0e   :  { %12625 = vmatprep.subr.mxu0 %v15644_v14  ;;  %12576 = vmatprep.mubr.f32.mxu1 %v16526_v42 }
 0xa0f   :  { %12612 = vmatpush3.msra.mxu1 %v15660_v37  ;;  %12626 = vmatpush3.msra.mxu0 %v15644_v14 }
 0xa10   :  { %12577 = vmatmul.mubr.f32.gmra.mxu1 %v16527_v29  ;;  %12613 = vmatprep.subr.mxu1 %v15672_v41 }
 0xa11   :  { %12627 = vmatprep.subr.mxu0 %v15636_v35  ;;  %12614 = vmatpush3.msra.mxu1 %v15672_v41 }
 0xa12   :  { %12628 = vmatpush3.msra.mxu0 %v15636_v35  ;;  %12615 = vmatprep.subr.mxu1 %v15655_v17 }
 0xa13   :  { %12629 = vmatprep.subr.mxu0 %v15647_v47  ;;  %12616 = vmatpush3.msra.mxu1 %v15655_v17 }
 0xa14   :  { %12617 = vmatprep.mubr.f32.mxu1 %v16528_v31  ;;  %12630 = vmatpush3.msra.mxu0 %v15647_v47  ;;  %v10677_v31 = vld [vmem:[%s16063_s14 + $0x1] ss:$0 sm:$0xff] }
 0xa15   :  { %12618 = vmatmul.mubr.f32.vlgmr.msra.gmra.mxu1 %v16529_v61  ;;  %12631 = vmatprep.subr.mxu0 %v15664_v57 }
 0xa16   :  { %12645 = vmatprep.subr.mxu1 %v15608_v1  ;;  %12632 = vmatpush3.msra.mxu0 %v15664_v57 }
 0xa17   :  { %12646 = vmatpush3.msra.mxu1 %v15608_v1  ;;  %12633 = vmatprep.subr.mxu0 %v15674_v58 }
 0xa18   :  { %12647 = vmatprep.subr.mxu1 %v15621_v63  ;;  %12598 = vmatprep.mubr.f32.mxu0 %v16530_v5 }
 0xa19   :  { %12634 = vmatpush3.msra.mxu0 %v15674_v58  ;;  %12648 = vmatpush3.msra.mxu1 %v15621_v63 }
 0xa1a   :  { %12599 = vmatmul.mubr.f32.gmra.mxu0 %v16531_v26  ;;  %12635 = vmatprep.subr.mxu0 %v15683_v0 }
 0xa1b   :  { %12649 = vmatprep.subr.mxu1 %v15605_v53  ;;  %12636 = vmatpush3.msra.mxu0 %v15683_v0 }
 0xa1c   :  { %12650 = vmatpush3.msra.mxu1 %v15605_v53  ;;  %12637 = vmatprep.subr.mxu0 %v15679_v19  ;;  %v16535_v53 = vmov 0.0  }
 0xa1d   :  { %12651 = vmatprep.subr.mxu1 %v15610_v32  ;;  %12638 = vmatpush3.msra.mxu0 %v15679_v19 }
 0xa1e   :  { %12639 = vmatprep.mubr.f32.mxu0 %v16532_v8  ;;  %12652 = vmatpush3.msra.mxu1 %v15610_v32 }
 0xa1f   :  { %12620 = vmatprep.mubr.f32.mxu1 %v16533_v62  ;;  %12640 = vmatmul.mubr.f32.vlgmr.msra.gmra.mxu0 %v16522_v52 }
 0xa20   :  { %12653 = vmatprep.subr.mxu1 %v15641_v38  ;;  %12621 = vmatmul.mubr.f32.gmra.mxu1 %v16534_v36 }
 0xa21   :  { %12654 = vmatpush3.msra.mxu1 %v15641_v38  ;;  %12642 = vmatprep.mubr.f32.mxu0 %v16526_v42 }
 0xa22   :  { %12655 = vmatprep.subr.mxu1 %v15660_v37  ;;  %12661 = vmatprep.mubr.f32.mxu1 %v16532_v8 }
 0xa23   :  { %12656 = vmatpush3.msra.mxu1 %v15660_v37  ;;  %12643 = vmatmul.mubr.f32.gmra.mxu0 %v16527_v29 }
 0xa24   :  { %12657 = vmatprep.subr.mxu1 %v15672_v41  ;;  %12667 = vmatprep.subr.mxu0 %v16535_v53 }
 0xa25   :  { %12658 = vmatpush3.msra.mxu1 %v15672_v41  ;;  %12675 = vmatprep.mubr.msk.f32.mxu0 %vm12983_vm7, %v16535_v53 }
 0xa26   :  { %12659 = vmatprep.subr.mxu1 %v15655_v17 }
 0xa27   :  { %12660 = vmatpush3.msra.mxu1 %v15655_v17 }
 0xa28   :  { %12662 = vmatmul.mubr.f32.vlgmr.msra.gmra.mxu1 %v16522_v52  ;;  %12678 = vmatprep.subr.mxu1 %v16535_v53 }
 0xa29   :  { %12664 = vmatprep.mubr.f32.mxu1 %v16526_v42 }
 0xa2c   :  { %12665 = vmatmul.mubr.f32.gmra.mxu1 %v16527_v29 }
 0xa2d   :  { %12686 = vmatprep.mubr.msk.f32.mxu1 %vm12983_vm7, %v16535_v53 }
 0xaba   :  { %v12553_v33 = vpop.f32.mrf.mxu0 }
 0xabc   :  { %v8015_v27 = vpop.f32.mrf.mxu0 }
 0xac2   :  { %v12575_v32 = vpop.f32.mrf.mxu1 }
 0xac3   :  { %v8163_v54 = vadd.f32 %v12575_v32, %v12553_v33 }
 0xac4   :  { %v8156_v21 = vpop.f32.mrf.mxu1 }
 0xac5   :  { %v8157_v60 = vadd.f32 %v8156_v21, %v8015_v27  ;;  %v16536_v27 = vld [vmem:[#allocation52_spill] sm:$0xff] }
 0xac7   :  { %v12556_v1 = vpop.f32.mrf.mxu0 }
 0xac9   :  { %v8035_v55 = vpop.f32.mrf.mxu0 }
 0xacc   :  { %v12597_v16 = vpop.f32.mrf.mxu0 }
 0xacd   :  { %v8270_v34 = vadd.f32 %v12597_v16, %v8163_v54  ;;  %v16537_v16 = vld [vmem:[#allocation88_spill] sm:$0xff] }
 0xace   :  { %v8262_v63 = vpop.f32.mrf.mxu0 }
 0xacf   :  { %v8263_v22 = vadd.f32 %v8262_v63, %v8157_v60 }
 0xad0   :  { %v12578_v10 = vpop.f32.mrf.mxu1 }
 0xad1   :  { %v8175_v15 = vadd.f32 %v12578_v10, %v12556_v1 }
 0xad2   :  { %v8168_v56 = vpop.f32.mrf.mxu1 }
 0xad3   :  { %v8169_v38 = vadd.f32 %v8168_v56, %v8035_v55 }
 0xad5   :  { %v12619_v6 = vpop.f32.mrf.mxu1 }
 0xad6   :  { %v8373_v51 = vadd.f32 %v12619_v6, %v8270_v34 }
 0xad7   :  { %v8364_v35 = vpop.f32.mrf.mxu1 }
 0xad8   :  { %v8365_v41 = vadd.f32 %v8364_v35, %v8263_v22 }
 0xada   :  { %v12600_v11 = vpop.f32.mrf.mxu0 }
 0xadb   :  { %v8284_v7 = vadd.f32 %v12600_v11, %v8175_v15 }
 0xadc   :  { %v8276_v25 = vpop.f32.mrf.mxu0 }
 0xadd   :  { %v8277_v37 = vadd.f32 %v8276_v25, %v8169_v38  ;;  %v16538_v25 = vld [vmem:[#allocation101_spill] sm:$0xff] }
 0xade   :  { %v16539_v38 = vld [vmem:[#allocation61_spill] sm:$0xff] }
 0xadf   :  { %v12641_v40 = vpop.f32.mrf.mxu0 }
 0xae0   :  { %v12622_v2 = vpop.f32.mrf.mxu1  ;;  %v8490_v24 = vadd.f32 %v12641_v40, %v8373_v51 }
 0xae1   :  { %v8483_v43 = vpop.f32.mrf.mxu0  ;;  %v8389_v23 = vadd.f32 %v12622_v2, %v8284_v7 }
 0xae2   :  { %v8380_v14 = vpop.f32.mrf.mxu1  ;;  %v8484_v4 = vadd.f32 %v8483_v43, %v8365_v41  ;;  %v16542_v41 = vld [vmem:[#allocation81_spill] sm:$0xff] }
 0xae3   :  { %v12644_v47 = vpop.f32.mrf.mxu0  ;;  %v8381_v46 = vadd.f32 %v8380_v14, %v8277_v37 }
 0xae4   :  { %v8502_v49 = vadd.f32 %v12644_v47, %v8389_v23 }
 0xae5   :  { %v8495_v12 = vpop.f32.mrf.mxu0 }
 0xae6   :  { %v8496_v58 = vadd.f32 %v8495_v12, %v8381_v46 }
 0xae8   :  { %v12663_v17 = vpop.f32.mrf.mxu1 }
 0xae9   :  { %v8587_v19 = vadd.f32 %v12663_v17, %v8490_v24 }
 0xaea   :  { %v8580_v57 = vpop.f32.mrf.mxu1 }
 0xaeb   :  { %v8581_v45 = vadd.f32 %v8580_v57, %v8484_v4  ;;  %v8603_v44 = vadd.f32 1e-06, %v8587_v19  ;;  %v16541_v57 = vld [vmem:[#allocation62_spill] sm:$0xff] }
 0xaec   :  { %v12666_v30 = vpop.f32.mrf.mxu1 }
 0xaed   :  { %v8599_v48 = vadd.f32 %v12666_v30, %v8502_v49  ;;  %v8602_v3 = vadd.f32 1e-06, %v8581_v45 }
 0xaee   :  { %v8592_v59 = vpop.f32.mrf.mxu1 }
 0xaef   :  { %v8605_v9 = vadd.f32 1e-06, %v8599_v48  ;;  %v8593_v0 = vadd.f32 %v8592_v59, %v8496_v58 }
 0xaf1   :  { %v8604_v50 = vadd.f32 1e-06, %v8593_v0  ;;  %8616 = vrot.lane.b32.xlu0 %v8605_v9, %s12980_s0 }
 0xaf3   :  { %8614 = vrot.lane.b32.xlu1 %v8604_v50, %s12980_s0 }
 0xaf5   :  { %8612 = vrot.lane.b32.xlu0 %v8603_v44, %s12980_s0 }
 0xaf7   :  { %8610 = vrot.lane.b32.xlu1 %v8602_v3, %s12980_s0  ;;  %s16540_s0 = sld [smem:[#allocation134_spill]] }
 0xaf9   :  { %8657 = vrot.lane.b32.xlu0 %v10675_v20, %s12982_s28 }
 0xafd   :  { %v8702_v34 = vld [vmem:[%s16540_s0] sm:$0xf] }
 0xafe   :  { %v8704_v37 = vsel %vm1510_vm4, %v8702_v34, 0 }
 0xaff   :  { %v15800_v23 = vand.u32 4294901760, %v8704_v37 }
 0xb01   :  { %v15804_v51 = vsub.f32 %v8704_v37, %v15800_v23 }
 0xb03   :  { %v8777_v58 = vand.u32 4294901760, %v15804_v51 }
 0xb05   :  { %v8778_v50 = vsub.f32 %v15804_v51, %v8777_v58 }
 0xb63   :  { %v8617_v18 = vpop.permute.xlu0 %8616 }
 0xb64   :  { %12949 = vrcp.f32 %v8617_v18 }
 0xb65   :  { %v8615_v52 = vpop.permute.xlu1 %8614 }
 0xb67   :  { %v8613_v28 = vpop.permute.xlu0 %8612 }
 0xb68   :  { %12951 = vrcp.f32 %v8613_v28  ;;  %v16544_v28 = vld [vmem:[#allocation51_spill] sm:$0xff] }
 0xb69   :  { %12953 = vrcp.f32 %v8615_v52  ;;  %v8611_v39 = vpop.permute.xlu1 %8610 }
 0xb6a   :  { %12955 = vrcp.f32 %v8611_v39 }
 0xb6b   :  { %v8658_v36 = vpop.permute.xlu0 %8657 }
 0xb71   :  { %v12950_v13 = vpop.eup %12949 }
 0xb72   :  { %v8629_v42 = vmul.f32 %v12950_v13, %v8599_v48  ;;  %v8779_v13 = vand.u32 4294901760, %v8778_v50 }
 0xb74   :  { %8640 = vrot.lane.b32.xlu0 %v8629_v42, %s12982_s28 }
 0xb75   :  { %v12952_v29 = vpop.eup %12951 }
 0xb76   :  { %v8625_v61 = vmul.f32 %v12952_v29, %v8587_v19  ;;  %v12954_v5 = vpop.eup %12953 }
 0xb77   :  { %v8627_v26 = vmul.f32 %v12954_v5, %v8593_v0  ;;  %v12956_v8 = vpop.eup %12955  ;;  %v16543_v0 = vld [vmem:[#allocation71_spill] sm:$0xff] }
 0xb78   :  { %8671 = vrot.lane.b32.xlu0 %v10677_v31, %s12982_s28  ;;  %8636 = vrot.lane.b32.xlu1 %v8625_v61, %s12982_s28  ;;  %v8623_v62 = vmul.f32 %v12956_v8, %v8581_v45 }
 0xb7c   :  { %8638 = vrot.lane.b32.xlu1 %v8627_v26, %s12982_s28 }
 0xb80   :  { %8634 = vrot.lane.b32.xlu1 %v8623_v62, %s12982_s28 }
 0xbe6   :  { %v8641_v33 = vpop.permute.xlu0 %8640 }
 0xbe7   :  { %v8649_v1 = vadd.f32 %v8641_v33, %v16536_v27  ;;  %v9194_v27 = vld [vmem:[%s16066_s17 + $0x18] sm:$0xff] }
 0xbe9   :  { %v8663_v32 = vmul.f32 %v8658_v36, %v8649_v1  ;;  %v15876_v1 = vand.u32 4294901760, %v9194_v27 }
 0xbea   :  { %v8672_v55 = vpop.permute.xlu0 %8671  ;;  %v8637_v21 = vpop.permute.xlu1 %8636 }
 0xbeb   :  { %v8647_v10 = vadd.f32 %v8637_v21, %v16537_v16  ;;  %v8677_v63 = vadd.f32 %v8672_v55, %v8663_v32  ;;  %v9193_v32 = vld [vmem:[%s16066_s17 + $0x10] sm:$0xff]  ;;  %v9192_v16 = vld [vmem:[%s16066_s17 + $0x8] sm:$0xff] }
 0xbec   :  { %v15884_v21 = vand.u32 4294901760, %v9193_v32 }
 0xbed   :  { %v8661_v56 = vmul.f32 %v8658_v36, %v8647_v10  ;;  %v8681_v6 = vmax.f32 %v8677_v63, 0.0 }
 0xbee   :  { %v8639_v11 = vpop.permute.xlu1 %8638  ;;  %v15893_v63 = vsub.f32 %v9193_v32, %v15884_v21  ;;  %v10678_v32 = vld [vmem:[%s16067_s18] ss:$0 sm:$0xff] }
 0xbef   :  { %v8648_v35 = vadd.f32 %v8639_v11, %v16538_v25  ;;  %8692 = vrot.lane.b32.xlu0 %v8681_v6, %s12982_s28  ;;  %v8675_v40 = vadd.f32 %v8672_v55, %v8661_v56  ;;  %v15895_v56 = vand.u32 4294901760, %v9192_v16  ;;  %v9191_v6 = vld [vmem:[%s16066_s17] sm:$0xff] }
 0xbf0   :  { %v9318_v25 = vand.u32 4294901760, %v15893_v63 }
 0xbf1   :  { %v8662_v2 = vmul.f32 %v8658_v36, %v8648_v35  ;;  %v8679_v43 = vmax.f32 %v8675_v40, 0.0  ;;  %v15907_v35 = vsub.f32 %v9192_v16, %v15895_v56  ;;  %v15909_v40 = vand.u32 4294901760, %v9191_v6 }
 0xbf2   :  { %v8635_v15 = vpop.permute.xlu1 %8634 }
 0xbf3   :  { %v8646_v14 = vadd.f32 %v8635_v15, %v16539_v38  ;;  %8688 = vrot.lane.b32.xlu0 %v8679_v43, %s12982_s28  ;;  %v8676_v47 = vadd.f32 %v8672_v55, %v8662_v2  ;;  %v9319_v43 = vsub.f32 %v15893_v63, %v9318_v25  ;;  %v9325_v15 = vand.u32 4294901760, %v15907_v35 }
 0xbf4   :  { %v15918_v38 = vsub.f32 %v9191_v6, %v15909_v40 }
 0xbf5   :  { %v8660_v54 = vmul.f32 %v8658_v36, %v8646_v14  ;;  %v8680_v7 = vmax.f32 %v8676_v47, 0.0  ;;  %v9320_v14 = vand.u32 4294901760, %v9319_v43  ;;  %v9326_v47 = vsub.f32 %v15907_v35, %v9325_v15 }
 0xbf7   :  { %8690 = vrot.lane.b32.xlu1 %v8680_v7, %s12982_s28  ;;  %v8674_v17 = vadd.f32 %v8672_v55, %v8660_v54  ;;  %v15882_v55 = vsub.f32 %v9194_v27, %v15876_v1  ;;  %v9332_v54 = vand.u32 4294901760, %v15918_v38  ;;  %v9327_v7 = vand.u32 4294901760, %v9326_v47 }
 0xbf9   :  { %v8678_v60 = vmax.f32 %v8674_v17, 0.0  ;;  %v9311_v10 = vand.u32 4294901760, %v15882_v55  ;;  %v9333_v17 = vsub.f32 %v15918_v38, %v9332_v54 }
 0xbfb   :  { %8686 = vrot.lane.b32.xlu1 %v8678_v60, %s12982_s28  ;;  %v9312_v11 = vsub.f32 %v15882_v55, %v9311_v10  ;;  %v9334_v60 = vand.u32 4294901760, %v9333_v17  ;;  %v10164_v17 = vld [vmem:[%s16070_s21] sm:$0xff] }
 0xbfd   :  { %v9313_v2 = vand.u32 4294901760, %v9312_v11 }
 0xc61   :  { %v8693_v12 = vpop.permute.xlu0 %8692 }
 0xc62   :  { %v8701_v22 = vadd.f32 %v8693_v12, %v16541_v57 }
 0xc64   :  { %v15806_v46 = vand.u32 4294901760, %v8701_v22 }
 0xc65   :  { %v8689_v49 = vpop.permute.xlu0 %8688 }
 0xc66   :  { %v8811_v30 = vsub.f32 %v8701_v22, %v15806_v46  ;;  %v8699_v24 = vadd.f32 %v8689_v49, %v16542_v41  ;;  %12668 = vmatpush3.msra.mxu0 %v15806_v46 }
 0xc67   :  { %12669 = vmatprep.subr.mxu0 %v16535_v53 }
 0xc68   :  { %v8812_v48 = vand.u32 4294901760, %v8811_v30  ;;  %v15813_v59 = vand.u32 4294901760, %v8699_v24 }
 0xc69   :  { %v8691_v4 = vpop.permute.xlu1 %8690 }
 0xc6a   :  { %v8813_v19 = vsub.f32 %v8811_v30, %v8812_v48  ;;  %v8825_v9 = vsub.f32 %v8699_v24, %v15813_v59  ;;  %v8700_v45 = vadd.f32 %v8691_v4, %v16543_v0 }
 0xc6c   :  { %v15820_v44 = vand.u32 4294901760, %v8700_v45  ;;  %v8814_v3 = vand.u32 4294901760, %v8813_v19  ;;  %v8826_v18 = vand.u32 4294901760, %v8825_v9 }
 0xc6d   :  { %v8687_v20 = vpop.permute.xlu1 %8686 }
 0xc6e   :  { %v8818_v52 = vsub.f32 %v8700_v45, %v15820_v44  ;;  %v8698_v39 = vadd.f32 %v8687_v20, %v16544_v28  ;;  %12670 = vmatpush3.msra.mxu0 %v15820_v44  ;;  %12679 = vmatpush3.msra.mxu1 %v8814_v3  ;;  %v8827_v31 = vsub.f32 %v8825_v9, %v8826_v18  ;;  %v9692_v20 = vld [vmem:[%s16068_s19 + $0x8] sm:$0xff] }
 0xc6f   :  { %12671 = vmatprep.subr.mxu0 %v16535_v53  ;;  %12680 = vmatprep.subr.mxu1 %v16535_v53 }
 0xc70   :  { %v8819_v42 = vand.u32 4294901760, %v8818_v52  ;;  %v8740_v29 = vand.u32 4294901760, %v8698_v39  ;;  %12672 = vmatpush3.msra.mxu0 %v15813_v59  ;;  %v8828_v36 = vand.u32 4294901760, %v8827_v31 }
 0xc71   :  { %12673 = vmatprep.subr.mxu0 %v16535_v53 }
 0xc72   :  { %v8820_v61 = vsub.f32 %v8818_v52, %v8819_v42  ;;  %v8832_v5 = vsub.f32 %v8698_v39, %v8740_v29  ;;  %12674 = vmatpush3.msra.mxu0 %v8740_v29 }
 0xc73   :  { %12689 = vmatprep.subr.mxu0 %v16535_v53  ;;  %12676 = vmatmul.mubr.f32.vlgmr.msra.gmra.mxu0 %v8779_v13 }
 0xc74   :  { %v8833_v26 = vand.u32 4294901760, %v8832_v5  ;;  %12690 = vmatpush3.msra.mxu0 %v8811_v30  ;;  %v8821_v8 = vand.u32 4294901760, %v8820_v61  ;;  %12697 = vmatprep.mubr.msk.f32.mxu0 %vm12983_vm7, %v16535_v53 }
 0xc75   :  { %12691 = vmatprep.subr.mxu0 %v16535_v53 }
 0xc76   :  { %v8834_v62 = vsub.f32 %v8832_v5, %v8833_v26  ;;  %12681 = vmatpush3.msra.mxu1 %v8821_v8  ;;  %12692 = vmatpush3.msra.mxu0 %v8818_v52  ;;  %v9691_v52 = vld [vmem:[%s16068_s19] sm:$0xff] }
 0xc77   :  { %12682 = vmatprep.subr.mxu1 %v16535_v53  ;;  %12693 = vmatprep.subr.mxu0 %v16535_v53  ;;  %v9736_v39 = vand.u32 4294901760, %v9691_v52 }
 0xc78   :  { %12683 = vmatpush3.msra.mxu1 %v8828_v36  ;;  %12694 = vmatpush3.msra.mxu0 %v8825_v9  ;;  %v8835_v33 = vand.u32 4294901760, %v8834_v62 }
 0xc79   :  { %12684 = vmatprep.subr.mxu1 %v16535_v53  ;;  %12695 = vmatprep.subr.mxu0 %v16535_v53 }
 0xc7a   :  { %12685 = vmatpush3.msra.mxu1 %v8835_v33  ;;  %12696 = vmatpush3.msra.mxu0 %v8832_v5 }
 0xc7b   :  { %12700 = vmatprep.subr.mxu1 %v16535_v53  ;;  %12711 = vmatprep.subr.mxu0 %v16535_v53 }
 0xc7c   :  { %12687 = vmatmul.mubr.f32.vlgmr.msra.gmra.mxu1 %v15800_v23  ;;  %12698 = vmatmul.mubr.f32.vlgmr.msra.gmra.mxu0 %v15804_v51 }
 0xc7d   :  { %12701 = vmatpush3.msra.mxu1 %v15806_v46  ;;  %12712 = vmatpush3.msra.mxu0 %v8812_v48 }
 0xc7e   :  { %12702 = vmatprep.subr.mxu1 %v16535_v53  ;;  %12713 = vmatprep.subr.mxu0 %v16535_v53 }
 0xc7f   :  { %12703 = vmatpush3.msra.mxu1 %v15820_v44  ;;  %12714 = vmatpush3.msra.mxu0 %v8819_v42  ;;  %v15992_v42 = vsub.f32 %v9691_v52, %v9736_v39 }
 0xc80   :  { %12704 = vmatprep.subr.mxu1 %v16535_v53  ;;  %12715 = vmatprep.subr.mxu0 %v16535_v53 }
 0xc81   :  { %12705 = vmatpush3.msra.mxu1 %v15813_v59  ;;  %12716 = vmatpush3.msra.mxu0 %v8826_v18  ;;  %v9733_v18 = vand.u32 4294901760, %v9692_v20  ;;  %v9819_v31 = vand.u32 4294901760, %v15992_v42 }
 0xc82   :  { %12706 = vmatprep.subr.mxu1 %v16535_v53  ;;  %12717 = vmatprep.subr.mxu0 %v16535_v53 }
 0xc83   :  { %12707 = vmatpush3.msra.mxu1 %v8740_v29  ;;  %12718 = vmatpush3.msra.mxu0 %v8833_v26  ;;  %v15988_v28 = vsub.f32 %v9692_v20, %v9733_v18  ;;  %v9820_v5 = vsub.f32 %v15992_v42, %v9819_v31 }
 0xc84   :  { %12708 = vmatprep.mubr.msk.f32.mxu1 %vm12983_vm7, %v16535_v53  ;;  %12722 = vmatprep.subr.mxu1 %v16535_v53 }
 0xc85   :  { %12709 = vmatmul.mubr.f32.vlgmr.msra.gmra.mxu1 %v8777_v58  ;;  %12719 = vmatprep.mubr.msk.f32.mxu0 %vm12983_vm7, %v16535_v53  ;;  %v9812_v13 = vand.u32 4294901760, %v15988_v28  ;;  %v9821_v26 = vand.u32 4294901760, %v9820_v5 }
 0xc86   :  { %12723 = vmatpush3.msra.mxu1 %v15806_v46  ;;  %12720 = vmatmul.mubr.f32.vlgmr.msra.gmra.mxu0 %v15800_v23 }
 0xc87   :  { %12724 = vmatprep.subr.mxu1 %v16535_v53  ;;  %12730 = vmatprep.mubr.msk.f32.mxu1 %vm12983_vm7, %v16535_v53 }
 0xc88   :  { %12725 = vmatpush3.msra.mxu1 %v15820_v44  ;;  %12733 = vmatprep.subr.mxu0 %v16535_v53 }
 0xc89   :  { %12726 = vmatprep.subr.mxu1 %v16535_v53  ;;  %12741 = vmatprep.mubr.msk.f32.mxu0 %vm12983_vm7, %v16535_v53 }
 0xc8a   :  { %12727 = vmatpush3.msra.mxu1 %v15813_v59  ;;  %12734 = vmatpush3.msra.mxu0 %v15876_v1 }
 0xc8b   :  { %12728 = vmatprep.subr.mxu1 %v16535_v53  ;;  %12735 = vmatprep.subr.mxu0 %v16535_v53 }
 0xc8c   :  { %12729 = vmatpush3.msra.mxu1 %v8740_v29  ;;  %12736 = vmatpush3.msra.mxu0 %v15884_v21  ;;  %v9813_v29 = vsub.f32 %v15988_v28, %v9812_v13 }
 0xc8d   :  { %12731 = vmatmul.mubr.f32.vlgmr.msra.gmra.mxu1 %v15800_v23  ;;  %12744 = vmatprep.subr.mxu1 %v16535_v53 }
 0xc8e   :  { %12752 = vmatprep.mubr.msk.f32.mxu1 %vm12983_vm7, %v16535_v53  ;;  %12737 = vmatprep.subr.mxu0 %v16535_v53  ;;  %v9814_v61 = vand.u32 4294901760, %v9813_v29 }
 0xc8f   :  { %12738 = vmatpush3.msra.mxu0 %v15895_v56  ;;  %12745 = vmatpush3.msra.mxu1 %v9313_v2 }
 0xc90   :  { %12739 = vmatprep.subr.mxu0 %v16535_v53  ;;  %12746 = vmatprep.subr.mxu1 %v16535_v53 }
 0xc91   :  { %12740 = vmatpush3.msra.mxu0 %v15909_v40  ;;  %12747 = vmatpush3.msra.mxu1 %v9320_v14 }
 0xc92   :  { %12755 = vmatprep.subr.mxu0 %v16535_v53  ;;  %12748 = vmatprep.subr.mxu1 %v16535_v53 }
 0xc93   :  { %12749 = vmatpush3.msra.mxu1 %v9327_v7 }
 0xc94   :  { %12750 = vmatprep.subr.mxu1 %v16535_v53 }
 0xc95   :  { %12751 = vmatpush3.msra.mxu1 %v9334_v60  ;;  %v10207_v60 = vand.u32 4294901760, %v10164_v17 }
 0xc96   :  { %12766 = vmatprep.subr.mxu1 %v16535_v53 }
 0xd33   :  { %v8781_v34 = vpop.f32.mrf.mxu0 }
 0xd35   :  { %v12677_v37 = vpop.f32.mrf.mxu0 }
 0xd3c   :  { %v8872_v23 = vpop.f32.mrf.mxu1  ;;  %v8952_v12 = vpop.f32.mrf.mxu0 }
 0xd3d   :  { %v8873_v51 = vadd.f32 %v8872_v23, %v8781_v34  ;;  %v10284_v34 = vsub.f32 %v10164_v17, %v10207_v60 }
 0xd3e   :  { %v12688_v57 = vpop.f32.mrf.mxu1  ;;  %v12699_v22 = vpop.f32.mrf.mxu0 }
 0xd3f   :  { %v8953_v49 = vadd.f32 %v8952_v12, %v8873_v51  ;;  %v10285_v37 = vand.u32 4294901760, %v10284_v34 }
 0xd41   :  { %v10286_v23 = vsub.f32 %v10284_v34, %v10285_v37 }
 0xd43   :  { %v10287_v12 = vand.u32 4294901760, %v10286_v23 }
 0xd45   :  { %v9029_v46 = vpop.f32.mrf.mxu1 }
 0xd46   :  { %v9112_v30 = vpop.f32.mrf.mxu0  ;;  %v9030_v24 = vadd.f32 %v9029_v46, %v8953_v49  ;;  %v10679_v49 = vld [vmem:[%s16069_s20] ss:$0 sm:$0xff] }
 0xd47   :  { %v12710_v41 = vpop.f32.mrf.mxu1 }
 0xd48   :  { %v12721_v58 = vpop.f32.mrf.mxu0  ;;  %v9113_v48 = vadd.f32 %v9112_v30, %v9030_v24 }
 0xd4d   :  { %v9187_v59 = vpop.f32.mrf.mxu1 }
 0xd4e   :  { %v9188_v4 = vadd.f32 %v9187_v59, %v9113_v48 }
 0xd4f   :  { %v12732_v19 = vpop.f32.mrf.mxu1 }
 0xd50   :  { %v9203_v9 = vsel %vm1510_vm4, %v9188_v4, 0 }
 0xd51   :  { %v9274_v0 = vand.u32 4294901760, %v9203_v9 }
 0xd53   :  { %v9275_v45 = vsub.f32 %v9203_v9, %v9274_v0  ;;  %12753 = vmatmul.mubr.f32.vlgmr.msra.gmra.mxu1 %v9274_v0 }
 0xd54   :  { %12767 = vmatpush3.msra.mxu1 %v15876_v1  ;;  %12774 = vmatprep.mubr.msk.f32.mxu1 %vm12983_vm7, %v16535_v53 }
 0xd55   :  { %v9276_v50 = vand.u32 4294901760, %v9275_v45  ;;  %12768 = vmatprep.subr.mxu1 %v16535_v53 }
 0xd56   :  { %12769 = vmatpush3.msra.mxu1 %v15884_v21 }
 0xd57   :  { %v9277_v44 = vsub.f32 %v9275_v45, %v9276_v50  ;;  %12770 = vmatprep.subr.mxu1 %v16535_v53 }
 0xd58   :  { %12771 = vmatpush3.msra.mxu1 %v15895_v56 }
 0xd59   :  { %v9278_v3 = vand.u32 4294901760, %v9277_v44  ;;  %12772 = vmatprep.subr.mxu1 %v16535_v53 }
 0xd5a   :  { %12773 = vmatpush3.msra.mxu1 %v15909_v40 }
 0xd5b   :  { %12775 = vmatmul.mubr.f32.vlgmr.msra.gmra.mxu1 %v9276_v50  ;;  %12788 = vmatprep.subr.mxu1 %v16535_v53 }
 0xd5c   :  { %12742 = vmatmul.mubr.f32.vlgmr.msra.gmra.mxu0 %v9278_v3  ;;  %12789 = vmatpush3.msra.mxu1 %v15876_v1 }
 0xd5d   :  { %12756 = vmatpush3.msra.mxu0 %v15882_v55  ;;  %12790 = vmatprep.subr.mxu1 %v16535_v53 }
 0xd5e   :  { %12757 = vmatprep.subr.mxu0 %v16535_v53  ;;  %12791 = vmatpush3.msra.mxu1 %v15884_v21 }
 0xd5f   :  { %12758 = vmatpush3.msra.mxu0 %v15893_v63  ;;  %12792 = vmatprep.subr.mxu1 %v16535_v53 }
 0xd60   :  { %12759 = vmatprep.subr.mxu0 %v16535_v53  ;;  %12793 = vmatpush3.msra.mxu1 %v15895_v56 }
 0xd61   :  { %12760 = vmatpush3.msra.mxu0 %v15907_v35  ;;  %12794 = vmatprep.subr.mxu1 %v16535_v53 }
 0xd62   :  { %12761 = vmatprep.subr.mxu0 %v16535_v53  ;;  %12763 = vmatprep.mubr.msk.f32.mxu0 %vm12983_vm7, %v16535_v53 }
 0xd63   :  { %12762 = vmatpush3.msra.mxu0 %v15918_v38  ;;  %12795 = vmatpush3.msra.mxu1 %v15909_v40 }
 0xd64   :  { %12796 = vmatprep.mubr.msk.f32.mxu1 %vm12983_vm7, %v16535_v53  ;;  %12764 = vmatmul.mubr.f32.vlgmr.msra.gmra.mxu0 %v9275_v45 }
 0xd65   :  { %12777 = vmatprep.subr.mxu0 %v16535_v53  ;;  %12797 = vmatmul.mubr.f32.vlgmr.msra.gmra.mxu1 %v9274_v0 }
 0xd66   :  { %12778 = vmatpush3.msra.mxu0 %v9311_v10  ;;  %12785 = vmatprep.mubr.msk.f32.mxu0 %vm12983_vm7, %v16535_v53 }
 0xd67   :  { %12779 = vmatprep.subr.mxu0 %v16535_v53  ;;  %12806 = vmatprep.subr.mxu1 %v16535_v53 }
 0xd68   :  { %12780 = vmatpush3.msra.mxu0 %v9318_v25  ;;  %12810 = vmatprep.mubr.msk.f32.mxu1 %vm12983_vm7, %v16535_v53 }
 0xd69   :  { %12781 = vmatprep.subr.mxu0 %v16535_v53  ;;  %12807 = vmatpush3.msra.mxu1 %v9814_v61 }
 0xd6a   :  { %12782 = vmatpush3.msra.mxu0 %v9325_v15  ;;  %12808 = vmatprep.subr.mxu1 %v16535_v53 }
 0xd6b   :  { %12783 = vmatprep.subr.mxu0 %v16535_v53  ;;  %12809 = vmatpush3.msra.mxu1 %v9821_v26  ;;  %v10680_v26 = vld [vmem:[%s16071_s22] ss:$0 sm:$0xff]  ;;  %s12957_s22 = scalar_lea.vmem %s10631_s1, 64 }
 0xd6c   :  { %12784 = vmatpush3.msra.mxu0 %v9332_v54  ;;  %12820 = vmatprep.subr.mxu1 %v16535_v53  ;;  %p12958_p0 = scmp.ne.s32.totalorder %s10631_s1, %s12957_s22  ;;  %p12963_p2 = scmp.lt.s32.totalorder %s12957_s22, %s12957_s22 }
 0xd6d   :  { %12786 = vmatmul.mubr.f32.vlgmr.msra.gmra.mxu0 %v9274_v0  ;;  %12799 = vmatprep.subr.mxu0 %v16535_v53 }
 0xd6e   :  { %12803 = vmatprep.mubr.msk.f32.mxu0 %vm12983_vm7, %v16535_v53  ;;  %12800 = vmatpush3.msra.mxu0 %v9733_v18  ;;  %p12964_p3 = por %p12963_p2, %p12962_p1 }
 0xd6f   :  { %12801 = vmatprep.subr.mxu0 %v16535_v53 }
 0xd70   :  { %12802 = vmatpush3.msra.mxu0 %v9736_v39  ;;  %p12965_p4 = pnand %p12964_p3, %p12958_p0 }
 0xd71   :  { %12813 = vmatprep.subr.mxu0 %v16535_v53 }
 0xe13   :  { %v9371_v8 = vpop.f32.mrf.mxu1 }
 0xe15   :  { %v12754_v62 = vpop.f32.mrf.mxu1 }
 0xe1b   :  { %v9528_v36 = vpop.f32.mrf.mxu1 }
 0xe1c   :  { %v9280_v33 = vpop.f32.mrf.mxu0 }
 0xe1d   :  { %v12776_v27 = vpop.f32.mrf.mxu1  ;;  %v9281_v55 = vadd.f32 %v10678_v32, %v9280_v33 }
 0xe1e   :  { %v12743_v1 = vpop.f32.mrf.mxu0 }
 0xe1f   :  { %v9372_v10 = vadd.f32 %v9371_v8, %v9281_v55 }
 0xe24   :  { %v9451_v21 = vpop.f32.mrf.mxu0 }
 0xe25   :  { %v9686_v16 = vpop.f32.mrf.mxu1  ;;  %v9452_v6 = vadd.f32 %v9451_v21, %v9372_v10 }
 0xe26   :  { %v12765_v63 = vpop.f32.mrf.mxu0 }
 0xe27   :  { %v12798_v56 = vpop.f32.mrf.mxu1  ;;  %v9529_v11 = vadd.f32 %v9528_v36, %v9452_v6 }
 0xe2d   :  { %v9611_v25 = vpop.f32.mrf.mxu0 }
 0xe2e   :  { %v9612_v35 = vadd.f32 %v9611_v25, %v9529_v11 }
 0xe2f   :  { %v12787_v40 = vpop.f32.mrf.mxu0 }
 0xe30   :  { %v9687_v2 = vadd.f32 %v9686_v16, %v9612_v35 }
 0xe32   :  { %v9690_v43 = vmax.f32 %v9687_v2, 0.0 }
 0xe34   :  { %v9702_v15 = vsel %vm9700_vm8, %v9690_v43, 0 }
 0xe35   :  { %v9771_v38 = vand.u32 4294901760, %v9702_v15 }
 0xe37   :  { %v9772_v14 = vsub.f32 %v9702_v15, %v9771_v38  ;;  %12811 = vmatmul.mubr.f32.vlgmr.msra.gmra.mxu1 %v9771_v38 }
 0xe38   :  { %12821 = vmatpush3.msra.mxu1 %v9733_v18  ;;  %12824 = vmatprep.mubr.msk.f32.mxu1 %vm12983_vm7, %v16535_v53 }
 0xe39   :  { %v9773_v47 = vand.u32 4294901760, %v9772_v14  ;;  %12822 = vmatprep.subr.mxu1 %v16535_v53 }
 0xe3a   :  { %12823 = vmatpush3.msra.mxu1 %v9736_v39 }
 0xe3b   :  { %v9774_v54 = vsub.f32 %v9772_v14, %v9773_v47  ;;  %12825 = vmatmul.mubr.f32.vlgmr.msra.gmra.mxu1 %v9773_v47  ;;  %12834 = vmatprep.subr.mxu1 %v16535_v53 }
 0xe3c   :  { %12835 = vmatpush3.msra.mxu1 %v9733_v18  ;;  %12838 = vmatprep.mubr.msk.f32.mxu1 %vm12983_vm7, %v16535_v53 }
 0xe3d   :  { %v9775_v7 = vand.u32 4294901760, %v9774_v54  ;;  %12836 = vmatprep.subr.mxu1 %v16535_v53 }
 0xe3e   :  { %12837 = vmatpush3.msra.mxu1 %v9736_v39 }
 0xe3f   :  { %12804 = vmatmul.mubr.f32.vlgmr.msra.gmra.mxu0 %v9775_v7  ;;  %12839 = vmatmul.mubr.f32.vlgmr.msra.gmra.mxu1 %v9771_v38 }
 0xe40   :  { %12814 = vmatpush3.msra.mxu0 %v15988_v28  ;;  %12817 = vmatprep.mubr.msk.f32.mxu0 %vm12983_vm7, %v16535_v53 }
 0xe41   :  { %12815 = vmatprep.subr.mxu0 %v16535_v53  ;;  %12846 = vmatprep.subr.mxu1 %v16535_v53 }
 0xe42   :  { %12816 = vmatpush3.msra.mxu0 %v15992_v42  ;;  %12848 = vmatprep.mubr.msk.f32.mxu1 %vm12983_vm7, %v16535_v53 }
 0xe43   :  { %12818 = vmatmul.mubr.f32.vlgmr.msra.gmra.mxu0 %v9772_v14  ;;  %12827 = vmatprep.subr.mxu0 %v16535_v53 }
 0xe44   :  { %12828 = vmatpush3.msra.mxu0 %v9812_v13  ;;  %12831 = vmatprep.mubr.msk.f32.mxu0 %vm12983_vm7, %v16535_v53 }
 0xe45   :  { %12829 = vmatprep.subr.mxu0 %v16535_v53  ;;  %12847 = vmatpush3.msra.mxu1 %v10287_v12 }
 0xe46   :  { %12830 = vmatpush3.msra.mxu0 %v9819_v31  ;;  %12856 = vmatprep.subr.mxu1 %v16535_v53 }
 0xe47   :  { %12832 = vmatmul.mubr.f32.vlgmr.msra.gmra.mxu0 %v9771_v38  ;;  %12841 = vmatprep.subr.mxu0 %v16535_v53 }
 0xe48   :  { %12843 = vmatprep.mubr.msk.f32.mxu0 %vm12983_vm7, %v16535_v53  ;;  %12842 = vmatpush3.msra.mxu0 %v10207_v60 }
 0xe49   :  { %12851 = vmatprep.subr.mxu0 %v16535_v53 }
 0xef7   :  { %v9858_v57 = vpop.f32.mrf.mxu1 }
 0xef9   :  { %v12812_v22 = vpop.f32.mrf.mxu1 }
 0xefb   :  { %v10009_v51 = vpop.f32.mrf.mxu1 }
 0xefd   :  { %v12826_v46 = vpop.f32.mrf.mxu1 }
 0xeff   :  { %v9777_v30 = vpop.f32.mrf.mxu0  ;;  %v10159_v41 = vpop.f32.mrf.mxu1 }
 0xf00   :  { %v9778_v24 = vadd.f32 %v10679_v49, %v9777_v30 }
 0xf01   :  { %v12805_v58 = vpop.f32.mrf.mxu0  ;;  %v12840_v48 = vpop.f32.mrf.mxu1 }
 0xf02   :  { %v9859_v59 = vadd.f32 %v9858_v57, %v9778_v24 }
 0xf03   :  { %v9934_v4 = vpop.f32.mrf.mxu0 }
 0xf04   :  { %v9935_v19 = vadd.f32 %v9934_v4, %v9859_v59 }
 0xf05   :  { %v12819_v9 = vpop.f32.mrf.mxu0 }
 0xf06   :  { %v10010_v0 = vadd.f32 %v10009_v51, %v9935_v19 }
 0xf07   :  { %v10086_v45 = vpop.f32.mrf.mxu0 }
 0xf08   :  { %v10087_v50 = vadd.f32 %v10086_v45, %v10010_v0 }
 0xf09   :  { %v12833_v44 = vpop.f32.mrf.mxu0 }
 0xf0a   :  { %v10160_v3 = vadd.f32 %v10159_v41, %v10087_v50 }
 0xf0c   :  { %v10163_v20 = vmax.f32 %v10160_v3, 0.0 }
 0xf0e   :  { %v10174_v18 = vsel %vm10172_vm9, %v10163_v20, 0 }
 0xf0f   :  { %v10242_v52 = vand.u32 4294901760, %v10174_v18 }
 0xf11   :  { %v10243_v28 = vsub.f32 %v10174_v18, %v10242_v52  ;;  %12849 = vmatmul.mubr.f32.vlgmr.msra.gmra.mxu1 %v10242_v52 }
 0xf12   :  { %12857 = vmatpush3.msra.mxu1 %v10207_v60  ;;  %12858 = vmatprep.mubr.msk.f32.mxu1 %vm12983_vm7, %v16535_v53 }
 0xf13   :  { %v10244_v39 = vand.u32 4294901760, %v10243_v28  ;;  %12866 = vmatprep.subr.mxu1 %v16535_v53 }
 0xf15   :  { %v10245_v13 = vsub.f32 %v10243_v28, %v10244_v39  ;;  %12859 = vmatmul.mubr.f32.vlgmr.msra.gmra.mxu1 %v10244_v39 }
 0xf16   :  { %12867 = vmatpush3.msra.mxu1 %v10207_v60  ;;  %12868 = vmatprep.mubr.msk.f32.mxu1 %vm12983_vm7, %v16535_v53 }
 0xf17   :  { %v10246_v42 = vand.u32 4294901760, %v10245_v13 }
 0xf19   :  { %12844 = vmatmul.mubr.f32.vlgmr.msra.gmra.mxu0 %v10246_v42  ;;  %12869 = vmatmul.mubr.f32.vlgmr.msra.gmra.mxu1 %v10242_v52 }
 0xf1a   :  { %12852 = vmatpush3.msra.mxu0 %v10284_v34  ;;  %12853 = vmatprep.mubr.msk.f32.mxu0 %vm12983_vm7, %v16535_v53 }
 0xf1b   :  { %12861 = vmatprep.subr.mxu0 %v16535_v53 }
 0xf1d   :  { %12854 = vmatmul.mubr.f32.vlgmr.msra.gmra.mxu0 %v10243_v28 }
 0xf1e   :  { %12862 = vmatpush3.msra.mxu0 %v10285_v37  ;;  %12863 = vmatprep.mubr.msk.f32.mxu0 %vm12983_vm7, %v16535_v53 }
 0xf21   :  { %12864 = vmatmul.mubr.f32.vlgmr.msra.gmra.mxu0 %v10242_v52 }
 0xfd1   :  { %v10324_v29 = vpop.f32.mrf.mxu1 }
 0xfd3   :  { %v12850_v31 = vpop.f32.mrf.mxu1 }
 0xfd5   :  { %v10472_v61 = vpop.f32.mrf.mxu1 }
 0xfd7   :  { %v12860_v5 = vpop.f32.mrf.mxu1 }
 0xfd9   :  { %v10248_v8 = vpop.f32.mrf.mxu0  ;;  %v10618_v62 = vpop.f32.mrf.mxu1 }
 0xfda   :  { %v10249_v36 = vadd.f32 %v10680_v26, %v10248_v8 }
 0xfdb   :  { %v12845_v33 = vpop.f32.mrf.mxu0  ;;  %v12870_v27 = vpop.f32.mrf.mxu1 }
 0xfdc   :  { %v10325_v1 = vadd.f32 %v10324_v29, %v10249_v36 }
 0xfdd   :  { %v10398_v32 = vpop.f32.mrf.mxu0 }
 0xfde   :  { %v10399_v55 = vadd.f32 %v10398_v32, %v10325_v1 }
 0xfdf   :  { %v12855_v21 = vpop.f32.mrf.mxu0 }
 0xfe0   :  { %v10473_v16 = vadd.f32 %v10472_v61, %v10399_v55 }
 0xfe1   :  { %v10546_v53 = vpop.f32.mrf.mxu0 }
 0xfe2   :  { %v10547_v10 = vadd.f32 %v10546_v53, %v10473_v16 }
 0xfe3   :  { %v12865_v63 = vpop.f32.mrf.mxu0 }
 0xfe4   :  { %v10619_v56 = vadd.f32 %v10618_v62, %v10547_v10 }
 0xfe6   :  { %10623 = vst.msk [vmem:[#allocation3] sm:$0xf] %vm10622_vm10, %v10619_v56 }
 0xfe7   :  { %12968 = shalt.err (!%p12965_p4)
}
 0xfe8   :  { %10633 = dma.vmem_to_hbm [thread:$0]  %s10631_s1, 64, %s16072_s23, [#allocation4]  }
 0xfe9   :  { %12977 = dma.done.wait [#allocation4], 64  }
 0xfea   :  { %12978 = vsyncadd [#allocation4], 4294967232 }
 0xfeb   :  { %10637 = vsyncpa [#allocation4], 1 }

</bundles_post_ra>
